<compile_context>
chip_gen: v7x
topology: tpu7x:2x2x1
jax: 0.10.0
libtpu: 0.0.40
codegen_flags: <defaults>
</compile_context>

<pallas_src>
import functools

import jax
import jax.numpy as jnp
import numpy as np
from jax import lax
from jax.experimental import pallas as pl
from jax.experimental.pallas import tpu as pltpu

_DN_T_LHS = (((0,), (0,)), ((), ()))   # contract dim0 of both:  A^T @ B
_DN_T_RHS = (((1,), (1,)), ((), ()))   # contract dim1 of both:  A @ B^T
_HI = lax.Precision.HIGHEST            # reference (plain XLA) only


def _pyramid_attn_kernel(num_heads, head_dim, scale,
                         xf_ref, xq_ref, wq_ref, bq_ref, wkv_ref, bkv_ref,
                         wp_ref, bp_ref, o_ref, o_scr):
    """One (batch, query-tile) pair per grid step.

    xf_ref  : (1, C, N)   full token map (k/v source), bf16
    xq_ref  : (1, C, TQ)  query-tile columns of the same x, bf16
    wq_ref  : (C, C)  bf16   bq_ref : (C, 1)  f32
    wkv_ref : (2C, C) bf16   bkv_ref: (2C, 1) f32
    wp_ref  : (C, C)  bf16   bp_ref : (C, 1)  f32
    o_ref   : (1, C, TQ)  output tile, f32
    o_scr   : (C, TQ) f32 VMEM scratch holding the per-head attention outputs
    """
    C = num_heads * head_dim
    xf = xf_ref[0]                      # (C, N)   bf16
    xq = xq_ref[0]                      # (C, TQ)  bf16
    n_kv = xf.shape[-1]

    # Fused full-width projections, f32 accumulation on the MXU.
    kv = jnp.dot(wkv_ref[...], xf, preferred_element_type=jnp.float32)
    kv = kv + bkv_ref[...]              # (2C, N) f32
    q = jnp.dot(wq_ref[...], xq, preferred_element_type=jnp.float32)
    q = (q + bq_ref[...]) * scale       # (C, TQ) f32

    q_bf = q.astype(jnp.bfloat16)
    k_bf = kv[:C].astype(jnp.bfloat16)
    v_bf = kv[C:].astype(jnp.bfloat16)
    ones_row = jnp.ones((1, n_kv), jnp.bfloat16)   # hoisted out of head loop

    for h in range(num_heads):
        lo, hi = h * head_dim, (h + 1) * head_dim
        qh = q_bf[lo:hi]                # (hd, TQ)
        kh = k_bf[lo:hi]                # (hd, N)
        vh = v_bf[lo:hi]                # (hd, N)

        # Attention logits (TQ, N); softmax elementwise math in f32.
        s = lax.dot_general(qh, kh, _DN_T_LHS,
                            preferred_element_type=jnp.float32)
        s = s - jnp.max(s, axis=-1, keepdims=True)
        p = jnp.exp(s).astype(jnp.bfloat16)          # unnormalized probs

        num = lax.dot_general(vh, p, _DN_T_RHS,
                              preferred_element_type=jnp.float32)   # (hd, TQ)
        den = lax.dot_general(ones_row, p, _DN_T_RHS,
                              preferred_element_type=jnp.float32)   # (1, TQ)
        o_scr[lo:hi, :] = num * pl.reciprocal(den, approx=True)

    # Single fused output projection over all heads.
    y = jnp.dot(wp_ref[...], o_scr[...].astype(jnp.bfloat16),
                preferred_element_type=jnp.float32) + bp_ref[...]
    o_ref[0] = y


def pyramid_attention(x_nchw, params, num_heads=8, sr_ratio=1):
    """Matches PyramidAttention.forward (eval mode, dropout p=0, sr_ratio=1)."""
    assert sr_ratio == 1
    wq, bq = params["wq"], params["bq"]
    wkv, bkv = params["wkv"], params["bkv"]
    wp, bp = params["wp"], params["bp"]

    B, C, H, W = x_nchw.shape
    N = H * W
    hd = C // num_heads
    scale = float(hd) ** -0.5

    # Lane-dense query tile (128 tokens) when N allows it.
    TQ = 128 if N % 128 == 0 else N
    n_qt = N // TQ

    # NCHW -> (B, C, N): pure reshape, no transpose; cast operands to bf16.
    x = x_nchw.reshape(B, C, N).astype(jnp.bfloat16)
    wq_bf = wq.astype(jnp.bfloat16)
    wkv_bf = wkv.astype(jnp.bfloat16)
    wp_bf = wp.astype(jnp.bfloat16)
    bq2 = bq.reshape(C, 1).astype(jnp.float32)
    bkv2 = bkv.reshape(2 * C, 1).astype(jnp.float32)
    bp2 = bp.reshape(C, 1).astype(jnp.float32)

    kernel = functools.partial(_pyramid_attn_kernel, num_heads, hd, scale)

    def fixed(shape):
        return pl.BlockSpec(shape, lambda b, qi: (0, 0))

    out = pl.pallas_call(
        kernel,
        out_shape=jax.ShapeDtypeStruct((B, C, N), jnp.float32),
        grid_spec=pltpu.PrefetchScalarGridSpec(
            num_scalar_prefetch=0,
            grid=(B, n_qt),
            in_specs=[
                pl.BlockSpec((1, C, N), lambda b, qi: (b, 0, 0)),    # x (k/v)
                pl.BlockSpec((1, C, TQ), lambda b, qi: (b, 0, qi)),  # x (q)
                fixed((C, C)),          # wq
                fixed((C, 1)),          # bq
                fixed((2 * C, C)),      # wkv
                fixed((2 * C, 1)),      # bkv
                fixed((C, C)),          # wp
                fixed((C, 1)),          # bp
            ],
            out_specs=pl.BlockSpec((1, C, TQ), lambda b, qi: (b, 0, qi)),
            scratch_shapes=[pltpu.VMEM((C, TQ), jnp.float32)],
        ),
        compiler_params=pltpu.CompilerParams(
            dimension_semantics=("parallel", "parallel"),
            vmem_limit_bytes=32 * 1024 * 1024),
    )(x, x, wq_bf, bq2, wkv_bf, bkv2, wp_bf, bp2)

    y = out.reshape(B, C, H, W)
    return y, None, None


def pyramid_attention_reference(x_nchw, params, num_heads=8):
    """Pure-JAX f32 transcription of the PyTorch forward (sr_ratio=1)."""
    wq, bq = params["wq"], params["bq"]
    wkv, bkv = params["wkv"], params["bkv"]
    wp, bp = params["wp"], params["bp"]
    B, C, H, W = x_nchw.shape
    N = H * W
    hd = C // num_heads
    scale = float(hd) ** -0.5

    xf = x_nchw.reshape(B, C, N)  # (B, C, N)
    q = jnp.einsum("oc,bcn->bon", wq, xf, precision=_HI) + bq[None, :, None]
    kv = jnp.einsum("oc,bcn->bon", wkv, xf, precision=_HI) + bkv[None, :, None]
    k, v = kv[:, :C], kv[:, C:]

    q = q.reshape(B * num_heads, hd, N) * scale
    k = k.reshape(B * num_heads, hd, N)
    v = v.reshape(B * num_heads, hd, N)

    attn = jnp.einsum("bcm,bcn->bmn", q, k, precision=_HI)
    attn = jax.nn.softmax(attn, axis=2)
    o = jnp.einsum("bmn,bcn->bcm", attn, v, precision=_HI)
    o = o.reshape(B, C, N)
    y = jnp.einsum("oc,bcn->bon", wp, o, precision=_HI) + bp[None, :, None]
    return y.reshape(B, C, H, W)


def init_params(key, dim):
    """Deterministic synthetic init of the 1x1-conv weights (squeezed to 2D)."""
    ks = jax.random.split(key, 6)
    s = 0.1
    return {
        "wq": jax.random.normal(ks[0], (dim, dim), jnp.float32) * s,
        "bq": jax.random.normal(ks[1], (dim,), jnp.float32) * s,
        "wkv": jax.random.normal(ks[2], (2 * dim, dim), jnp.float32) * s,
        "bkv": jax.random.normal(ks[3], (2 * dim,), jnp.float32) * s,
        "wp": jax.random.normal(ks[4], (dim, dim), jnp.float32) * s,
        "bp": jax.random.normal(ks[5], (dim,), jnp.float32) * s,
    }


if __name__ == "__main__":
    B, C, H, W = 2, 32, 16, 16
    num_heads = 8

    key = jax.random.PRNGKey(0)
    k_x, k_p = jax.random.split(key)
    x = jax.random.normal(k_x, (B, C, H, W), jnp.float32)
    params = init_params(k_p, C)

    y, _, _ = pyramid_attention(x, params, num_heads=num_heads, sr_ratio=1)
    y = jax.block_until_ready(y)

    y_ref = jax.block_until_ready(
        pyramid_attention_reference(x, params, num_heads=num_heads))
    # bf16 matmul operands inside the kernel -> bf16-level tolerance.
    np.testing.assert_allclose(np.asarray(y), np.asarray(y_ref),
                               rtol=5e-2, atol=5e-3)
    print("KERNEL_OK")
</pallas_src>

<mosaic_0001>
module attributes {stable_mosaic.version = 11 : i64} {
  func.func @_pyramid_attn_kernel(%arg0: i32, %arg1: i32, %arg2: memref<1x32x256xbf16, #tpu.memory_space<vmem>>, %arg3: memref<1x32x128xbf16, #tpu.memory_space<vmem>>, %arg4: memref<32x32xbf16, #tpu.memory_space<vmem>>, %arg5: memref<32x1xf32, #tpu.memory_space<vmem>>, %arg6: memref<64x32xbf16, #tpu.memory_space<vmem>>, %arg7: memref<64x1xf32, #tpu.memory_space<vmem>>, %arg8: memref<32x32xbf16, #tpu.memory_space<vmem>>, %arg9: memref<32x1xf32, #tpu.memory_space<vmem>>, %arg10: memref<1x32x128xf32, #tpu.memory_space<vmem>>, %arg11: memref<32x128xf32, #tpu.memory_space<vmem>>) attributes {dimension_semantics = [#tpu.dimension_semantics<parallel>, #tpu.dimension_semantics<parallel>], iteration_bounds = array<i64: 2, 2>, scalar_prefetch = 0 : i64, scratch_operands = 1 : i64, tpu.core_type = #tpu.core_type<tc>, window_params = [{transform_indices = @transform_0, window_bounds = array<i64: 1, 32, 256>}, {transform_indices = @transform_1, window_bounds = array<i64: 1, 32, 128>}, {pipeline_mode = #tpu.pipeline_mode<synchronous>, transform_indices = @transform_2, window_bounds = array<i64: 32, 32>}, {pipeline_mode = #tpu.pipeline_mode<synchronous>, transform_indices = @transform_3, window_bounds = array<i64: 32, 1>}, {pipeline_mode = #tpu.pipeline_mode<synchronous>, transform_indices = @transform_4, window_bounds = array<i64: 64, 32>}, {pipeline_mode = #tpu.pipeline_mode<synchronous>, transform_indices = @transform_5, window_bounds = array<i64: 64, 1>}, {pipeline_mode = #tpu.pipeline_mode<synchronous>, transform_indices = @transform_6, window_bounds = array<i64: 32, 32>}, {pipeline_mode = #tpu.pipeline_mode<synchronous>, transform_indices = @transform_7, window_bounds = array<i64: 32, 1>}, {transform_indices = @transform_8, window_bounds = array<i64: 1, 32, 128>}]} {
    %c0 = arith.constant 0 : index
    %c0_0 = arith.constant 0 : index
    %c0_1 = arith.constant 0 : index
    %0 = vector.load %arg2[%c0, %c0_0, %c0_1] : memref<1x32x256xbf16, #tpu.memory_space<vmem>>, vector<1x32x256xbf16>
    %1 = vector.shape_cast %0 : vector<1x32x256xbf16> to vector<32x256xbf16>
    %c0_2 = arith.constant 0 : index
    %c0_3 = arith.constant 0 : index
    %c0_4 = arith.constant 0 : index
    %2 = vector.load %arg3[%c0_2, %c0_3, %c0_4] : memref<1x32x128xbf16, #tpu.memory_space<vmem>>, vector<1x32x128xbf16>
    %3 = vector.shape_cast %2 : vector<1x32x128xbf16> to vector<32x128xbf16>
    %c0_5 = arith.constant 0 : index
    %c0_6 = arith.constant 0 : index
    %4 = vector.load %arg6[%c0_5, %c0_6] : memref<64x32xbf16, #tpu.memory_space<vmem>>, vector<64x32xbf16>
    %cst = arith.constant dense<0.000000e+00> : vector<64x256xf32>
    %5 = tpu.matmul %4, %1, %cst {dimension_numbers = #tpu.dot_dimension_numbers<[1], [0], [0], [1], [0, 0, 1, 1], [], []>} : vector<64x32xbf16>, vector<32x256xbf16>, vector<64x256xf32> -> vector<64x256xf32>
    %c0_7 = arith.constant 0 : index
    %c0_8 = arith.constant 0 : index
    %6 = vector.load %arg7[%c0_7, %c0_8] : memref<64x1xf32, #tpu.memory_space<vmem>>, vector<64x1xf32>
    %7 = vector.broadcast %6 : vector<64x1xf32> to vector<64x256xf32>
    %8 = arith.addf %5, %7 : vector<64x256xf32>
    %c0_9 = arith.constant 0 : index
    %c0_10 = arith.constant 0 : index
    %9 = vector.load %arg4[%c0_9, %c0_10] : memref<32x32xbf16, #tpu.memory_space<vmem>>, vector<32x32xbf16>
    %cst_11 = arith.constant dense<0.000000e+00> : vector<32x128xf32>
    %10 = tpu.matmul %9, %3, %cst_11 {dimension_numbers = #tpu.dot_dimension_numbers<[1], [0], [0], [1], [0, 0, 1, 1], [], []>} : vector<32x32xbf16>, vector<32x128xbf16>, vector<32x128xf32> -> vector<32x128xf32>
    %c0_12 = arith.constant 0 : index
    %c0_13 = arith.constant 0 : index
    %11 = vector.load %arg5[%c0_12, %c0_13] : memref<32x1xf32, #tpu.memory_space<vmem>>, vector<32x1xf32>
    %12 = vector.broadcast %11 : vector<32x1xf32> to vector<32x128xf32>
    %13 = arith.addf %10, %12 : vector<32x128xf32>
    %cst_14 = arith.constant 5.000000e-01 : f32
    %14 = vector.broadcast %cst_14 : f32 to vector<32x128xf32>
    %15 = arith.mulf %13, %14 : vector<32x128xf32>
    %16 = arith.truncf %15 : vector<32x128xf32> to vector<32x128xbf16>
    %17 = vector.extract_strided_slice %8 {offsets = [0, 0], sizes = [32, 256], strides = [1, 1]} : vector<64x256xf32> to vector<32x256xf32>
    %18 = arith.truncf %17 : vector<32x256xf32> to vector<32x256xbf16>
    %19 = vector.extract_strided_slice %8 {offsets = [32, 0], sizes = [32, 256], strides = [1, 1]} : vector<64x256xf32> to vector<32x256xf32>
    %20 = arith.truncf %19 : vector<32x256xf32> to vector<32x256xbf16>
    %cst_15 = arith.constant 1.000000e+00 : bf16
    %21 = vector.broadcast %cst_15 : bf16 to vector<1x256xbf16>
    %22 = vector.extract_strided_slice %16 {offsets = [0, 0], sizes = [4, 128], strides = [1, 1]} : vector<32x128xbf16> to vector<4x128xbf16>
    %23 = vector.extract_strided_slice %18 {offsets = [0, 0], sizes = [4, 256], strides = [1, 1]} : vector<32x256xbf16> to vector<4x256xbf16>
    %24 = vector.extract_strided_slice %20 {offsets = [0, 0], sizes = [4, 256], strides = [1, 1]} : vector<32x256xbf16> to vector<4x256xbf16>
    %cst_16 = arith.constant dense<0.000000e+00> : vector<128x256xf32>
    %25 = tpu.matmul %22, %23, %cst_16 {dimension_numbers = #tpu.dot_dimension_numbers<[0], [0], [1], [1], [0, 1, 1, 1], [], []>} : vector<4x128xbf16>, vector<4x256xbf16>, vector<128x256xf32> -> vector<128x256xf32>
    %cst_17 = arith.constant dense<0xFF800000> : vector<128xf32>
    %26 = vector.multi_reduction <maximumf>, %25, %cst_17 [1] : vector<128x256xf32> to vector<128xf32>
    %27 = vector.shape_cast %26 : vector<128xf32> to vector<128x1xf32>
    %28 = vector.broadcast %27 : vector<128x1xf32> to vector<128x256xf32>
    %29 = arith.subf %25, %28 : vector<128x256xf32>
    %30 = math.exp %29 : vector<128x256xf32>
    %31 = arith.truncf %30 : vector<128x256xf32> to vector<128x256xbf16>
    %cst_18 = arith.constant dense<0.000000e+00> : vector<4x128xf32>
    %32 = tpu.matmul %24, %31, %cst_18 {dimension_numbers = #tpu.dot_dimension_numbers<[1], [1], [0], [0], [0, 0, 1, 0], [], []>} : vector<4x256xbf16>, vector<128x256xbf16>, vector<4x128xf32> -> vector<4x128xf32>
    %cst_19 = arith.constant dense<0.000000e+00> : vector<1x128xf32>
    %33 = tpu.matmul %21, %31, %cst_19 {dimension_numbers = #tpu.dot_dimension_numbers<[1], [1], [0], [0], [0, 0, 1, 0], [], []>} : vector<1x256xbf16>, vector<128x256xbf16>, vector<1x128xf32> -> vector<1x128xf32>
    %34 = tpu.reciprocal %33 {approx = true} : vector<1x128xf32> -> vector<1x128xf32>
    %35 = vector.broadcast %34 : vector<1x128xf32> to vector<4x128xf32>
    %36 = arith.mulf %32, %35 : vector<4x128xf32>
    %c0_20 = arith.constant 0 : index
    %c0_21 = arith.constant 0 : index
    %37 = vector.load %arg11[%c0_20, %c0_21] : memref<32x128xf32, #tpu.memory_space<vmem>>, vector<4x128xf32>
    tpu.vector_store %arg11[%c0_20, %c0_21], %36 {strides = array<i32>} : memref<32x128xf32, #tpu.memory_space<vmem>>, vector<4x128xf32>,
    %38 = vector.extract_strided_slice %16 {offsets = [4, 0], sizes = [4, 128], strides = [1, 1]} : vector<32x128xbf16> to vector<4x128xbf16>
    %39 = vector.extract_strided_slice %18 {offsets = [4, 0], sizes = [4, 256], strides = [1, 1]} : vector<32x256xbf16> to vector<4x256xbf16>
    %40 = vector.extract_strided_slice %20 {offsets = [4, 0], sizes = [4, 256], strides = [1, 1]} : vector<32x256xbf16> to vector<4x256xbf16>
    %cst_22 = arith.constant dense<0.000000e+00> : vector<128x256xf32>
    %41 = tpu.matmul %38, %39, %cst_22 {dimension_numbers = #tpu.dot_dimension_numbers<[0], [0], [1], [1], [0, 1, 1, 1], [], []>} : vector<4x128xbf16>, vector<4x256xbf16>, vector<128x256xf32> -> vector<128x256xf32>
    %cst_23 = arith.constant dense<0xFF800000> : vector<128xf32>
    %42 = vector.multi_reduction <maximumf>, %41, %cst_23 [1] : vector<128x256xf32> to vector<128xf32>
    %43 = vector.shape_cast %42 : vector<128xf32> to vector<128x1xf32>
    %44 = vector.broadcast %43 : vector<128x1xf32> to vector<128x256xf32>
    %45 = arith.subf %41, %44 : vector<128x256xf32>
    %46 = math.exp %45 : vector<128x256xf32>
    %47 = arith.truncf %46 : vector<128x256xf32> to vector<128x256xbf16>
    %cst_24 = arith.constant dense<0.000000e+00> : vector<4x128xf32>
    %48 = tpu.matmul %40, %47, %cst_24 {dimension_numbers = #tpu.dot_dimension_numbers<[1], [1], [0], [0], [0, 0, 1, 0], [], []>} : vector<4x256xbf16>, vector<128x256xbf16>, vector<4x128xf32> -> vector<4x128xf32>
    %cst_25 = arith.constant dense<0.000000e+00> : vector<1x128xf32>
    %49 = tpu.matmul %21, %47, %cst_25 {dimension_numbers = #tpu.dot_dimension_numbers<[1], [1], [0], [0], [0, 0, 1, 0], [], []>} : vector<1x256xbf16>, vector<128x256xbf16>, vector<1x128xf32> -> vector<1x128xf32>
    %50 = tpu.reciprocal %49 {approx = true} : vector<1x128xf32> -> vector<1x128xf32>
    %51 = vector.broadcast %50 : vector<1x128xf32> to vector<4x128xf32>
    %52 = arith.mulf %48, %51 : vector<4x128xf32>
    %c4 = arith.constant 4 : index
    %c0_26 = arith.constant 0 : index
    %53 = vector.load %arg11[%c4, %c0_26] : memref<32x128xf32, #tpu.memory_space<vmem>>, vector<4x128xf32>
    tpu.vector_store %arg11[%c4, %c0_26], %52 {strides = array<i32>} : memref<32x128xf32, #tpu.memory_space<vmem>>, vector<4x128xf32>,
    %54 = vector.extract_strided_slice %16 {offsets = [8, 0], sizes = [4, 128], strides = [1, 1]} : vector<32x128xbf16> to vector<4x128xbf16>
    %55 = vector.extract_strided_slice %18 {offsets = [8, 0], sizes = [4, 256], strides = [1, 1]} : vector<32x256xbf16> to vector<4x256xbf16>
    %56 = vector.extract_strided_slice %20 {offsets = [8, 0], sizes = [4, 256], strides = [1, 1]} : vector<32x256xbf16> to vector<4x256xbf16>
    %cst_27 = arith.constant dense<0.000000e+00> : vector<128x256xf32>
    %57 = tpu.matmul %54, %55, %cst_27 {dimension_numbers = #tpu.dot_dimension_numbers<[0], [0], [1], [1], [0, 1, 1, 1], [], []>} : vector<4x128xbf16>, vector<4x256xbf16>, vector<128x256xf32> -> vector<128x256xf32>
    %cst_28 = arith.constant dense<0xFF800000> : vector<128xf32>
    %58 = vector.multi_reduction <maximumf>, %57, %cst_28 [1] : vector<128x256xf32> to vector<128xf32>
    %59 = vector.shape_cast %58 : vector<128xf32> to vector<128x1xf32>
    %60 = vector.broadcast %59 : vector<128x1xf32> to vector<128x256xf32>
    %61 = arith.subf %57, %60 : vector<128x256xf32>
    %62 = math.exp %61 : vector<128x256xf32>
    %63 = arith.truncf %62 : vector<128x256xf32> to vector<128x256xbf16>
    %cst_29 = arith.constant dense<0.000000e+00> : vector<4x128xf32>
    %64 = tpu.matmul %56, %63, %cst_29 {dimension_numbers = #tpu.dot_dimension_numbers<[1], [1], [0], [0], [0, 0, 1, 0], [], []>} : vector<4x256xbf16>, vector<128x256xbf16>, vector<4x128xf32> -> vector<4x128xf32>
    %cst_30 = arith.constant dense<0.000000e+00> : vector<1x128xf32>
    %65 = tpu.matmul %21, %63, %cst_30 {dimension_numbers = #tpu.dot_dimension_numbers<[1], [1], [0], [0], [0, 0, 1, 0], [], []>} : vector<1x256xbf16>, vector<128x256xbf16>, vector<1x128xf32> -> vector<1x128xf32>
    %66 = tpu.reciprocal %65 {approx = true} : vector<1x128xf32> -> vector<1x128xf32>
    %67 = vector.broadcast %66 : vector<1x128xf32> to vector<4x128xf32>
    %68 = arith.mulf %64, %67 : vector<4x128xf32>
    %c8 = arith.constant 8 : index
    %c0_31 = arith.constant 0 : index
    %69 = vector.load %arg11[%c8, %c0_31] : memref<32x128xf32, #tpu.memory_space<vmem>>, vector<4x128xf32>
    tpu.vector_store %arg11[%c8, %c0_31], %68 {strides = array<i32>} : memref<32x128xf32, #tpu.memory_space<vmem>>, vector<4x128xf32>,
    %70 = vector.extract_strided_slice %16 {offsets = [12, 0], sizes = [4, 128], strides = [1, 1]} : vector<32x128xbf16> to vector<4x128xbf16>
    %71 = vector.extract_strided_slice %18 {offsets = [12, 0], sizes = [4, 256], strides = [1, 1]} : vector<32x256xbf16> to vector<4x256xbf16>
    %72 = vector.extract_strided_slice %20 {offsets = [12, 0], sizes = [4, 256], strides = [1, 1]} : vector<32x256xbf16> to vector<4x256xbf16>
    %cst_32 = arith.constant dense<0.000000e+00> : vector<128x256xf32>
    %73 = tpu.matmul %70, %71, %cst_32 {dimension_numbers = #tpu.dot_dimension_numbers<[0], [0], [1], [1], [0, 1, 1, 1], [], []>} : vector<4x128xbf16>, vector<4x256xbf16>, vector<128x256xf32> -> vector<128x256xf32>
    %cst_33 = arith.constant dense<0xFF800000> : vector<128xf32>
    %74 = vector.multi_reduction <maximumf>, %73, %cst_33 [1] : vector<128x256xf32> to vector<128xf32>
    %75 = vector.shape_cast %74 : vector<128xf32> to vector<128x1xf32>
    %76 = vector.broadcast %75 : vector<128x1xf32> to vector<128x256xf32>
    %77 = arith.subf %73, %76 : vector<128x256xf32>
    %78 = math.exp %77 : vector<128x256xf32>
    %79 = arith.truncf %78 : vector<128x256xf32> to vector<128x256xbf16>
    %cst_34 = arith.constant dense<0.000000e+00> : vector<4x128xf32>
    %80 = tpu.matmul %72, %79, %cst_34 {dimension_numbers = #tpu.dot_dimension_numbers<[1], [1], [0], [0], [0, 0, 1, 0], [], []>} : vector<4x256xbf16>, vector<128x256xbf16>, vector<4x128xf32> -> vector<4x128xf32>
    %cst_35 = arith.constant dense<0.000000e+00> : vector<1x128xf32>
    %81 = tpu.matmul %21, %79, %cst_35 {dimension_numbers = #tpu.dot_dimension_numbers<[1], [1], [0], [0], [0, 0, 1, 0], [], []>} : vector<1x256xbf16>, vector<128x256xbf16>, vector<1x128xf32> -> vector<1x128xf32>
    %82 = tpu.reciprocal %81 {approx = true} : vector<1x128xf32> -> vector<1x128xf32>
    %83 = vector.broadcast %82 : vector<1x128xf32> to vector<4x128xf32>
    %84 = arith.mulf %80, %83 : vector<4x128xf32>
    %c12 = arith.constant 12 : index
    %c0_36 = arith.constant 0 : index
    %85 = vector.load %arg11[%c12, %c0_36] : memref<32x128xf32, #tpu.memory_space<vmem>>, vector<4x128xf32>
    tpu.vector_store %arg11[%c12, %c0_36], %84 {strides = array<i32>} : memref<32x128xf32, #tpu.memory_space<vmem>>, vector<4x128xf32>,
    %86 = vector.extract_strided_slice %16 {offsets = [16, 0], sizes = [4, 128], strides = [1, 1]} : vector<32x128xbf16> to vector<4x128xbf16>
    %87 = vector.extract_strided_slice %18 {offsets = [16, 0], sizes = [4, 256], strides = [1, 1]} : vector<32x256xbf16> to vector<4x256xbf16>
    %88 = vector.extract_strided_slice %20 {offsets = [16, 0], sizes = [4, 256], strides = [1, 1]} : vector<32x256xbf16> to vector<4x256xbf16>
    %cst_37 = arith.constant dense<0.000000e+00> : vector<128x256xf32>
    %89 = tpu.matmul %86, %87, %cst_37 {dimension_numbers = #tpu.dot_dimension_numbers<[0], [0], [1], [1], [0, 1, 1, 1], [], []>} : vector<4x128xbf16>, vector<4x256xbf16>, vector<128x256xf32> -> vector<128x256xf32>
    %cst_38 = arith.constant dense<0xFF800000> : vector<128xf32>
    %90 = vector.multi_reduction <maximumf>, %89, %cst_38 [1] : vector<128x256xf32> to vector<128xf32>
    %91 = vector.shape_cast %90 : vector<128xf32> to vector<128x1xf32>
    %92 = vector.broadcast %91 : vector<128x1xf32> to vector<128x256xf32>
    %93 = arith.subf %89, %92 : vector<128x256xf32>
    %94 = math.exp %93 : vector<128x256xf32>
    %95 = arith.truncf %94 : vector<128x256xf32> to vector<128x256xbf16>
    %cst_39 = arith.constant dense<0.000000e+00> : vector<4x128xf32>
    %96 = tpu.matmul %88, %95, %cst_39 {dimension_numbers = #tpu.dot_dimension_numbers<[1], [1], [0], [0], [0, 0, 1, 0], [], []>} : vector<4x256xbf16>, vector<128x256xbf16>, vector<4x128xf32> -> vector<4x128xf32>
    %cst_40 = arith.constant dense<0.000000e+00> : vector<1x128xf32>
    %97 = tpu.matmul %21, %95, %cst_40 {dimension_numbers = #tpu.dot_dimension_numbers<[1], [1], [0], [0], [0, 0, 1, 0], [], []>} : vector<1x256xbf16>, vector<128x256xbf16>, vector<1x128xf32> -> vector<1x128xf32>
    %98 = tpu.reciprocal %97 {approx = true} : vector<1x128xf32> -> vector<1x128xf32>
    %99 = vector.broadcast %98 : vector<1x128xf32> to vector<4x128xf32>
    %100 = arith.mulf %96, %99 : vector<4x128xf32>
    %c16 = arith.constant 16 : index
    %c0_41 = arith.constant 0 : index
    %101 = vector.load %arg11[%c16, %c0_41] : memref<32x128xf32, #tpu.memory_space<vmem>>, vector<4x128xf32>
    tpu.vector_store %arg11[%c16, %c0_41], %100 {strides = array<i32>} : memref<32x128xf32, #tpu.memory_space<vmem>>, vector<4x128xf32>,
    %102 = vector.extract_strided_slice %16 {offsets = [20, 0], sizes = [4, 128], strides = [1, 1]} : vector<32x128xbf16> to vector<4x128xbf16>
    %103 = vector.extract_strided_slice %18 {offsets = [20, 0], sizes = [4, 256], strides = [1, 1]} : vector<32x256xbf16> to vector<4x256xbf16>
    %104 = vector.extract_strided_slice %20 {offsets = [20, 0], sizes = [4, 256], strides = [1, 1]} : vector<32x256xbf16> to vector<4x256xbf16>
    %cst_42 = arith.constant dense<0.000000e+00> : vector<128x256xf32>
    %105 = tpu.matmul %102, %103, %cst_42 {dimension_numbers = #tpu.dot_dimension_numbers<[0], [0], [1], [1], [0, 1, 1, 1], [], []>} : vector<4x128xbf16>, vector<4x256xbf16>, vector<128x256xf32> -> vector<128x256xf32>
    %cst_43 = arith.constant dense<0xFF800000> : vector<128xf32>
    %106 = vector.multi_reduction <maximumf>, %105, %cst_43 [1] : vector<128x256xf32> to vector<128xf32>
    %107 = vector.shape_cast %106 : vector<128xf32> to vector<128x1xf32>
    %108 = vector.broadcast %107 : vector<128x1xf32> to vector<128x256xf32>
    %109 = arith.subf %105, %108 : vector<128x256xf32>
    %110 = math.exp %109 : vector<128x256xf32>
    %111 = arith.truncf %110 : vector<128x256xf32> to vector<128x256xbf16>
    %cst_44 = arith.constant dense<0.000000e+00> : vector<4x128xf32>
    %112 = tpu.matmul %104, %111, %cst_44 {dimension_numbers = #tpu.dot_dimension_numbers<[1], [1], [0], [0], [0, 0, 1, 0], [], []>} : vector<4x256xbf16>, vector<128x256xbf16>, vector<4x128xf32> -> vector<4x128xf32>
    %cst_45 = arith.constant dense<0.000000e+00> : vector<1x128xf32>
    %113 = tpu.matmul %21, %111, %cst_45 {dimension_numbers = #tpu.dot_dimension_numbers<[1], [1], [0], [0], [0, 0, 1, 0], [], []>} : vector<1x256xbf16>, vector<128x256xbf16>, vector<1x128xf32> -> vector<1x128xf32>
    %114 = tpu.reciprocal %113 {approx = true} : vector<1x128xf32> -> vector<1x128xf32>
    %115 = vector.broadcast %114 : vector<1x128xf32> to vector<4x128xf32>
    %116 = arith.mulf %112, %115 : vector<4x128xf32>
    %c20 = arith.constant 20 : index
    %c0_46 = arith.constant 0 : index
    %117 = vector.load %arg11[%c20, %c0_46] : memref<32x128xf32, #tpu.memory_space<vmem>>, vector<4x128xf32>
    tpu.vector_store %arg11[%c20, %c0_46], %116 {strides = array<i32>} : memref<32x128xf32, #tpu.memory_space<vmem>>, vector<4x128xf32>,
    %118 = vector.extract_strided_slice %16 {offsets = [24, 0], sizes = [4, 128], strides = [1, 1]} : vector<32x128xbf16> to vector<4x128xbf16>
    %119 = vector.extract_strided_slice %18 {offsets = [24, 0], sizes = [4, 256], strides = [1, 1]} : vector<32x256xbf16> to vector<4x256xbf16>
    %120 = vector.extract_strided_slice %20 {offsets = [24, 0], sizes = [4, 256], strides = [1, 1]} : vector<32x256xbf16> to vector<4x256xbf16>
    %cst_47 = arith.constant dense<0.000000e+00> : vector<128x256xf32>
    %121 = tpu.matmul %118, %119, %cst_47 {dimension_numbers = #tpu.dot_dimension_numbers<[0], [0], [1], [1], [0, 1, 1, 1], [], []>} : vector<4x128xbf16>, vector<4x256xbf16>, vector<128x256xf32> -> vector<128x256xf32>
    %cst_48 = arith.constant dense<0xFF800000> : vector<128xf32>
    %122 = vector.multi_reduction <maximumf>, %121, %cst_48 [1] : vector<128x256xf32> to vector<128xf32>
    %123 = vector.shape_cast %122 : vector<128xf32> to vector<128x1xf32>
    %124 = vector.broadcast %123 : vector<128x1xf32> to vector<128x256xf32>
    %125 = arith.subf %121, %124 : vector<128x256xf32>
    %126 = math.exp %125 : vector<128x256xf32>
    %127 = arith.truncf %126 : vector<128x256xf32> to vector<128x256xbf16>
    %cst_49 = arith.constant dense<0.000000e+00> : vector<4x128xf32>
    %128 = tpu.matmul %120, %127, %cst_49 {dimension_numbers = #tpu.dot_dimension_numbers<[1], [1], [0], [0], [0, 0, 1, 0], [], []>} : vector<4x256xbf16>, vector<128x256xbf16>, vector<4x128xf32> -> vector<4x128xf32>
    %cst_50 = arith.constant dense<0.000000e+00> : vector<1x128xf32>
    %129 = tpu.matmul %21, %127, %cst_50 {dimension_numbers = #tpu.dot_dimension_numbers<[1], [1], [0], [0], [0, 0, 1, 0], [], []>} : vector<1x256xbf16>, vector<128x256xbf16>, vector<1x128xf32> -> vector<1x128xf32>
    %130 = tpu.reciprocal %129 {approx = true} : vector<1x128xf32> -> vector<1x128xf32>
    %131 = vector.broadcast %130 : vector<1x128xf32> to vector<4x128xf32>
    %132 = arith.mulf %128, %131 : vector<4x128xf32>
    %c24 = arith.constant 24 : index
    %c0_51 = arith.constant 0 : index
    %133 = vector.load %arg11[%c24, %c0_51] : memref<32x128xf32, #tpu.memory_space<vmem>>, vector<4x128xf32>
    tpu.vector_store %arg11[%c24, %c0_51], %132 {strides = array<i32>} : memref<32x128xf32, #tpu.memory_space<vmem>>, vector<4x128xf32>,
    %134 = vector.extract_strided_slice %16 {offsets = [28, 0], sizes = [4, 128], strides = [1, 1]} : vector<32x128xbf16> to vector<4x128xbf16>
    %135 = vector.extract_strided_slice %18 {offsets = [28, 0], sizes = [4, 256], strides = [1, 1]} : vector<32x256xbf16> to vector<4x256xbf16>
    %136 = vector.extract_strided_slice %20 {offsets = [28, 0], sizes = [4, 256], strides = [1, 1]} : vector<32x256xbf16> to vector<4x256xbf16>
    %cst_52 = arith.constant dense<0.000000e+00> : vector<128x256xf32>
    %137 = tpu.matmul %134, %135, %cst_52 {dimension_numbers = #tpu.dot_dimension_numbers<[0], [0], [1], [1], [0, 1, 1, 1], [], []>} : vector<4x128xbf16>, vector<4x256xbf16>, vector<128x256xf32> -> vector<128x256xf32>
    %cst_53 = arith.constant dense<0xFF800000> : vector<128xf32>
    %138 = vector.multi_reduction <maximumf>, %137, %cst_53 [1] : vector<128x256xf32> to vector<128xf32>
    %139 = vector.shape_cast %138 : vector<128xf32> to vector<128x1xf32>
    %140 = vector.broadcast %139 : vector<128x1xf32> to vector<128x256xf32>
    %141 = arith.subf %137, %140 : vector<128x256xf32>
    %142 = math.exp %141 : vector<128x256xf32>
    %143 = arith.truncf %142 : vector<128x256xf32> to vector<128x256xbf16>
    %cst_54 = arith.constant dense<0.000000e+00> : vector<4x128xf32>
    %144 = tpu.matmul %136, %143, %cst_54 {dimension_numbers = #tpu.dot_dimension_numbers<[1], [1], [0], [0], [0, 0, 1, 0], [], []>} : vector<4x256xbf16>, vector<128x256xbf16>, vector<4x128xf32> -> vector<4x128xf32>
    %cst_55 = arith.constant dense<0.000000e+00> : vector<1x128xf32>
    %145 = tpu.matmul %21, %143, %cst_55 {dimension_numbers = #tpu.dot_dimension_numbers<[1], [1], [0], [0], [0, 0, 1, 0], [], []>} : vector<1x256xbf16>, vector<128x256xbf16>, vector<1x128xf32> -> vector<1x128xf32>
    %146 = tpu.reciprocal %145 {approx = true} : vector<1x128xf32> -> vector<1x128xf32>
    %147 = vector.broadcast %146 : vector<1x128xf32> to vector<4x128xf32>
    %148 = arith.mulf %144, %147 : vector<4x128xf32>
    %c28 = arith.constant 28 : index
    %c0_56 = arith.constant 0 : index
    %149 = vector.load %arg11[%c28, %c0_56] : memref<32x128xf32, #tpu.memory_space<vmem>>, vector<4x128xf32>
    tpu.vector_store %arg11[%c28, %c0_56], %148 {strides = array<i32>} : memref<32x128xf32, #tpu.memory_space<vmem>>, vector<4x128xf32>,
    %c0_57 = arith.constant 0 : index
    %c0_58 = arith.constant 0 : index
    %150 = vector.load %arg8[%c0_57, %c0_58] : memref<32x32xbf16, #tpu.memory_space<vmem>>, vector<32x32xbf16>
    %c0_59 = arith.constant 0 : index
    %c0_60 = arith.constant 0 : index
    %151 = vector.load %arg11[%c0_59, %c0_60] : memref<32x128xf32, #tpu.memory_space<vmem>>, vector<32x128xf32>
    %152 = arith.truncf %151 : vector<32x128xf32> to vector<32x128xbf16>
    %cst_61 = arith.constant dense<0.000000e+00> : vector<32x128xf32>
    %153 = tpu.matmul %150, %152, %cst_61 {dimension_numbers = #tpu.dot_dimension_numbers<[1], [0], [0], [1], [0, 0, 1, 1], [], []>} : vector<32x32xbf16>, vector<32x128xbf16>, vector<32x128xf32> -> vector<32x128xf32>
    %c0_62 = arith.constant 0 : index
    %c0_63 = arith.constant 0 : index
    %154 = vector.load %arg9[%c0_62, %c0_63] : memref<32x1xf32, #tpu.memory_space<vmem>>, vector<32x1xf32>
    %155 = vector.broadcast %154 : vector<32x1xf32> to vector<32x128xf32>
    %156 = arith.addf %153, %155 : vector<32x128xf32>
    %c0_64 = arith.constant 0 : index
    %c0_65 = arith.constant 0 : index
    %c0_66 = arith.constant 0 : index
    %157 = vector.load %arg10[%c0_64, %c0_65, %c0_66] : memref<1x32x128xf32, #tpu.memory_space<vmem>>, vector<1x32x128xf32>
    %158 = vector.shape_cast %157 : vector<1x32x128xf32> to vector<32x128xf32>
    %159 = vector.shape_cast %156 : vector<32x128xf32> to vector<1x32x128xf32>
    tpu.vector_store %arg10[%c0_64, %c0_65, %c0_66], %159 {strides = array<i32>} : memref<1x32x128xf32, #tpu.memory_space<vmem>>, vector<1x32x128xf32>,
    return
  }
  func.func @transform_0(%arg0: i32, %arg1: i32) -> (i32, i32, i32) {
    %c0_i32 = arith.constant 0 : i32
    %c0_i32_0 = arith.constant 0 : i32
    %c0_i32_1 = arith.constant 0 : i32
    return %arg0, %c0_i32, %c0_i32_0 : i32, i32, i32
  }
  func.func @transform_1(%arg0: i32, %arg1: i32) -> (i32, i32, i32) {
    %c0_i32 = arith.constant 0 : i32
    %c0_i32_0 = arith.constant 0 : i32
    return %arg0, %c0_i32, %arg1 : i32, i32, i32
  }
  func.func @transform_2(%arg0: i32, %arg1: i32) -> (i32, i32) {
    %c0_i32 = arith.constant 0 : i32
    %c0_i32_0 = arith.constant 0 : i32
    %c0_i32_1 = arith.constant 0 : i32
    return %c0_i32, %c0_i32_0 : i32, i32
  }
  func.func @transform_3(%arg0: i32, %arg1: i32) -> (i32, i32) {
    %c0_i32 = arith.constant 0 : i32
    %c0_i32_0 = arith.constant 0 : i32
    %c0_i32_1 = arith.constant 0 : i32
    return %c0_i32, %c0_i32_0 : i32, i32
  }
  func.func @transform_4(%arg0: i32, %arg1: i32) -> (i32, i32) {
    %c0_i32 = arith.constant 0 : i32
    %c0_i32_0 = arith.constant 0 : i32
    %c0_i32_1 = arith.constant 0 : i32
    return %c0_i32, %c0_i32_0 : i32, i32
  }
  func.func @transform_5(%arg0: i32, %arg1: i32) -> (i32, i32) {
    %c0_i32 = arith.constant 0 : i32
    %c0_i32_0 = arith.constant 0 : i32
    %c0_i32_1 = arith.constant 0 : i32
    return %c0_i32, %c0_i32_0 : i32, i32
  }
  func.func @transform_6(%arg0: i32, %arg1: i32) -> (i32, i32) {
    %c0_i32 = arith.constant 0 : i32
    %c0_i32_0 = arith.constant 0 : i32
    %c0_i32_1 = arith.constant 0 : i32
    return %c0_i32, %c0_i32_0 : i32, i32
  }
  func.func @transform_7(%arg0: i32, %arg1: i32) -> (i32, i32) {
    %c0_i32 = arith.constant 0 : i32
    %c0_i32_0 = arith.constant 0 : i32
    %c0_i32_1 = arith.constant 0 : i32
    return %c0_i32, %c0_i32_0 : i32, i32
  }
  func.func @transform_8(%arg0: i32, %arg1: i32) -> (i32, i32, i32) {
    %c0_i32 = arith.constant 0 : i32
    %c0_i32_0 = arith.constant 0 : i32
    return %arg0, %c0_i32, %arg1 : i32, i32, i32
  }
}

</mosaic_0001>

<bundles_post_ra>
// kernel: tpu_custom_call.1
= control target key start
LH: loop header
LB: loop body
LE: loop exit
PB: predicated region body
PF: predicated region fallthrough
CT: control target
= control target key end

     0   :  { %s6670_s0 = inlined_call_operand.vmem [shape: bf16[2,32,256], index: 0, kind: input, shape index: {}]   ;;  %s6671_s1 = inlined_call_operand.vmem [shape: bf16[2,32,256], index: 1, kind: input, shape index: {}]   ;;  %s6672_s2 = inlined_call_operand.vmem [shape: bf16[32,32], index: 2, kind: input, shape index: {}]   ;;  %s6673_s3 = inlined_call_operand.vmem [shape: f32[32,1], index: 3, kind: input, shape index: {}]   ;;  %s6674_s4 = inlined_call_operand.vmem [shape: bf16[64,32], index: 4, kind: input, shape index: {}]   ;;  %s6675_s5 = inlined_call_operand.vmem [shape: f32[64,1], index: 5, kind: input, shape index: {}]   ;;  %s6676_s6 = inlined_call_operand.vmem [shape: bf16[32,32], index: 6, kind: input, shape index: {}]   ;;  %s6677_s7 = inlined_call_operand.vmem [shape: f32[32,1], index: 7, kind: input, shape index: {}]   ;;  %s6678_s8 = inlined_call_operand.hbm [shape: f32[2,32,256], index: 8, kind: output, shape index: {}]  }
   0x1   :  { %6681 = sst [smem:[#allocation9_spill]] %s6671_s1 }
   0x2   :  { %13 = vsyncpa [#allocation5], 0 }
   0x3   :  { %15 = vsyncpa [#allocation5 + $0x1], 0  ;;  %s5132_s27 = smov 0   ;;  %s5134_s28 = smov 0  }
   0x4   :  { %s5136_s29 = smov 0   ;;  %s5138_s30 = smov 0  }
   0x5   :  { %s5140_s9 = smov 0   ;;  %s5142_s10 = smov 0  }
   0x6   :  { %s5144_s11 = smov 0   ;;  %s5146_s12 = smov 0  }
   0x7 LB: > { %s4227_s13 = sadd.s32 4294967295, %s5079_s12   ;;  %s4228_s14 = sadd.s32 4294967294, %s5079_s12   ;;  %s5079_s12 = sphi %s5146_s12, %s21_s12   ;;  %s5075_s11 = sphi %s5144_s11, %s6696_s11   ;;  %s5071_s10 = sphi %s5142_s10, %s6695_s10   ;;  %s5067_s9 = sphi %s5140_s9, %s6694_s9   ;;  %s5063_s30 = sphi %s5138_s30, %s6693_s30   ;;  %s5059_s29 = sphi %s5136_s29, %s6692_s29   ;;  %s5055_s28 = sphi %s5134_s28, %s6691_s28   ;;  %s5051_s27 = sphi %s5132_s27, %s6690_s27  }
   0x8   : > { %s30_s15 = sadd.s32 1, %s5071_s10  ;;  %s33_s16 = sadd.s32 1, %s5075_s11 }
   0x9   : > { %p31_p0 = scmp.ge.s32.totalorder %s30_s15, 2  ;;  %p75_p1 = scmp.ne.s32.totalorder %s5059_s29, %s5055_s28 }
   0xa   : > { %p76_p2 = scmp.eq.s32.totalorder %s5079_s12, 0  ;;  %p233_p5 = scmp.eq.s32.totalorder %s4227_s13, 3 }
   0xb   : > { %s6698_s15 = smov (%p31_p0, %s30_s15), 0  ;;  %s6700_s16 = smov (!%p31_p0, %s33_s16), %s5075_s11 }
   0xc   : > { %6682 = sst [smem:[#allocation7_spill]] %s6698_s15  ;;  %s64_s17 = ssub.s32 %s5071_s10, %s6698_s15 }
   0xd   : > { %p5184_p3 = por %p76_p2, %p75_p1  ;;  %p35_p4 = scmp.ge.s32.totalorder %s6700_s16, 2 }
   0xe   : > { %p238_p6 = scmp.ne.s32.totalorder %s5055_s28, %s5051_s27  ;;  %p239_p7 = scmp.eq.s32.totalorder %s4228_s14, 3 }
   0xf   : > { %s6702_s16 = smov (%p35_p4, %s6700_s16), 0  ;;  %p5192_p8 = por %p233_p5, %p75_p1 }
  0x10   : > { %6684 = sst [smem:[#allocation8_spill]] %s6702_s16  ;;  %p5196_p9 = por %p239_p7, %p238_p6 }
  0x11   : > { %s63_s21 = ssub.s32 %s5075_s11, %s6702_s16  ;;  %s68_s23 = sadd.s32 1, %s5059_s29 }
  0x12   : > { %s65_s22 = sor.u32 %s64_s17, %s63_s21  ;;  %p4230_p11 = scmp.ge.s32.totalorder %s5079_s12, 4 }
  0x13   : > { %p66_p10 = scmp.eq.s32.totalorder %s65_s22, 0 }
  0x14   : > { %273 = sbr.rel (%p4230_p11) target bundleno = 39 (0x27), region = 40 }
  0x15   : > { %s5204_s24 = scalar_select %p66_p10, %s5059_s29, %s68_s23  }
  0x1b   : > { %284 = sbr.rel (!%p5184_p3) target bundleno = 39 (0x27), region = 48  ;;  %s286_s25 = sand.u32 (%p5184_p3), 1, %s5059_s29  }
  0x1c   : > { %s4232_s26 = sshll.u32 (%p5184_p3), %s5075_s11, 3  ;;  %s4231_s13 = sshll.u32 (%p5184_p3), %s286_s25, 4 }
  0x1d   : > { %s290_s14 = sadd.s32 (%p5184_p3), %s5071_s10, %s4232_s26  ;;  %s6687_s1 = sld [smem:[#allocation9_spill]] (%p5184_p3) }
  0x1e   : > { %s4233_s15 = sshll.u32 (%p5184_p3), %s290_s14, 2  ;;  %s288_s22 = scalar_lea.vmem (%p5184_p3), [#allocation3], %s4231_s13 }
  0x23   : > { %s292_s21 = scalar_lea.vmem %s6687_s1, %s4233_s15 }
  0x24   : > { %v308_v0 = vld [vmem:[%s292_s21] sm:$0xf]  ;;  %v310_v1 = vld [vmem:[%s292_s21 + $0x8] sm:$0xf]  ;;  %v312_v2 = vld [vmem:[%s292_s21 + $0x10] sm:$0xf] }
  0x25   : > { %309 = vst [vmem:[%s288_s22] sm:$0xf] %v308_v0  ;;  %311 = vst [vmem:[%s288_s22 + $0x4] sm:$0xf] %v310_v1  ;;  %v314_v3 = vld [vmem:[%s292_s21 + $0x18] sm:$0xf] }
  0x26   : > { %313 = vst [vmem:[%s288_s22 + $0x8] sm:$0xf] %v312_v2  ;;  %315 = vst [vmem:[%s288_s22 + $0xc] sm:$0xf] %v314_v3 }
  0x27 PF: > { %p4234_p12 = scmp.ge.s32.totalorder %s5079_s12, 1  ;;  %p345_p13 = scmp.lt.s32.totalorder %s5079_s12, 5 }
  0x29   : > { %p346_p0 = pnand %p4234_p12, %p345_p13 }
  0x2a   : > { %s5218_s15 = sand.u32 (!%p346_p0), 1, %s5055_s28   ;;  %vm501_vm0 = vcmask (!%p346_p0), 261120   ;;  %v4443_v4 = vld [vmem:[%s6672_s2] sm:$0xff] (!%p346_p0)   ;;  %v5081_v7 = vmov (!%p346_p0), 0   ;;  %p390_p1 = scmp.lt.s32.totalorder (!%p346_p0), %s5067_s9, 1  ;;  %v592_v9 = vld [vmem:[%s6673_s3 + $0x8] sm:$0xff] (!%p346_p0) }
  0x2b   : > { %349 = sbr.rel (%p346_p0) target bundleno = 4501 (0x1195), region = 89  ;;  %s4235_s16 = sshll.u32 (!%p346_p0), %s5218_s15, 4  ;;  %v591_v5 = vld [vmem:[%s6673_s3] sm:$0xff] (!%p346_p0)  ;;  %4351 = vmatprep.mubr.msk.bf16.mxu1 (!%p346_p0), %vm501_vm0, %v4443_v4  ;;  %4439 = vset.pattern.permute.xlu0 (!%p346_p0), %v5081_v7  ;;  %v4444_v11 = vld [vmem:[%s6672_s2 + $0x8] sm:$0xff] (!%p346_p0)   ;;  %vm747_vm1 = vcmask (!%p346_p0), 1041408   ;;  %v4453_v43 = vld [vmem:[%s6674_s4 + $0x10] sm:$0xff] (!%p346_p0)  }
  0x2c   : > { %s354_s13 = scalar_lea.vmem (!%p346_p0), [#allocation3], %s4235_s16  ;;  %597 = vperm.xlu0 (!%p346_p0), %4439, %v591_v5   ;;  %546 = vmatprep.mubr.bf16.mxu0 (!%p346_p0), %v5081_v7  ;;  %v413_v10 = vld [vmem:[%s6675_s5] sm:$0xff] (!%p346_p0)  ;;  %v414_v12 = vld [vmem:[%s6675_s5 + $0x8] sm:$0xff] (!%p346_p0)  ;;  %vm722_vm2 = vcmask (!%p346_p0), 31744   ;;  %s4334_s16 = sshll.u32 (!%p346_p0), %s5067_s9, 3 }
  0x2d   : > { %v4441_v6 = vld [vmem:[%s354_s13] sm:$0xff] (!%p346_p0)   ;;  %v4442_v8 = vld [vmem:[%s354_s13 + $0x8] sm:$0xff] (!%p346_p0)   ;;  %4440 = vset.pattern.permute.xlu1 (!%p346_p0), %v5081_v7  ;;  %s4236_s18 = sshll.u32 (!%p346_p0), %s5218_s15, 5  ;;  %s4129_s23 = sadd.s32 (!%p346_p0), %s5063_s30, %s4334_s16 }
  0x2e   : > { %4347 = vmatprep.subr.bf16.mxu1 (!%p346_p0), %v4441_v6  ;;  %423 = vperm.xlu1 (!%p346_p0), %4440, %v413_v10   ;;  %v4451_v17 = vld [vmem:[%s6674_s4] sm:$0xff] (!%p346_p0)   ;;  %v4452_v42 = vld [vmem:[%s6674_s4 + $0x8] sm:$0xff] (!%p346_p0)   ;;  %s4335_s13 = sshll.u32 (!%p346_p0), %s4129_s23, 7  ;;  %s4118_s17 = scalar_lea.sflag (!%p346_p0), [#allocation5], %s5218_s15 }
  0x2f   : > { %4348 = vmatpush3.bf16.msra.mxu1 (!%p346_p0), %v4441_v6  ;;  %s6616_s14 = scalar_lea.hbm (!%p346_p0), %s6678_s8, %s4335_s13  ;;  %s5083_s22 = smov (!%p346_p0), [#allocation4]  }
  0x30   : > { %4349 = vmatprep.subr.bf16.mxu1 (!%p346_p0), %v4442_v8  ;;  %602 = vperm.xlu0 (!%p346_p0), %4439, %v592_v9  }
  0x32   : > { %s391_s21 = scalar_select %p390_p1, %s5067_s9, 1  ;;  %428 = vperm.xlu1 %4440, %v414_v12  }
  0x33   : > { %4350 = vmatpush3.bf16.msra.mxu1 %v4442_v8 }
  0x34   : > { %s4338_s25 = sshll.u32 %s391_s21, 5 }
  0x35   : > { %s394_s1 = scalar_lea.vmem %s6670_s0, %s4338_s25  ;;  %s389_s25 = scalar_lea.vmem [#allocation4], %s4236_s18 }
  0x36   : > { %v4445_v13 = vld [vmem:[%s394_s1 + $0x4] ss:$8 sps:$4 sm:$0xff]   ;;  %v4447_v14 = vld [vmem:[%s394_s1] ss:$8 sps:$4 sm:$0xff]   ;;  %v4448_v15 = vld [vmem:[%s394_s1 + $0x14] ss:$8 sps:$4 sm:$0xff]   ;;  %4352 = vmatmul.mubr.msk.bf16.vlgmr.msra.gmra.mrb[0].mxu1 %vm501_vm0, %v4444_v11 }
  0x37   : > { %514 = vmatprep.subr.bf16.mxu0 %v4445_v13  ;;  %v4450_v16 = vld [vmem:[%s394_s1 + $0x10] ss:$8 sps:$4 sm:$0xff]   ;;  %786 = vmatprep.mubr.bf16.mxu1 %v5081_v7  ;;  %s4132_s26 = sshll.u32 %s389_s25, 4  ;;  %s4989_s1 = sshll.u32 %s5083_s22, 4  ;;  %s6611_s26 = int_to_ptr.vmem [resolvable:$true] %s4132_s26  ;;  %s4990_s1 = int_to_ptr.vmem [resolvable:$false] %s4989_s1 }
  0x38   : > { %515 = vmatpush1.bf16.msra.mxu0 %v4447_v14  ;;  %s4985_s21 = scalar_lea.vmem %s6611_s26, 512  ;;  %s4991_s16 = scalar_lea.vmem %s4990_s1, 1024 }
  0x39   : > { %516 = vmatprep.subr.bf16.mxu0 %v4448_v15  ;;  %p4986_p2 = scmp.ne.s32.totalorder %s6611_s26, %s4985_s21  ;;  %p4992_p5 = scmp.lt.s32.totalorder %s6611_s26, %s4990_s1 }
  0x3a   : > { %p4993_p6 = scmp.lt.s32.totalorder %s4991_s16, %s4985_s21 }
  0x3b   : > { %p4987_p3 = pnand %p4986_p2, %p5192_p8 }
  0x3c   : > { %517 = vmatpush1.bf16.msra.mxu0 %v4450_v16  ;;  %p4994_p7 = por %p4993_p6, %p4992_p5 }
  0x3d   : > { %p4988_p4 = pneg %p4987_p3 }
  0x3f   : > { %4247 = vmatmul.mubr.msk.bf16.vlgmr.msra.gmra.mrb[0].mxu0 %vm501_vm0, %v4451_v17  ;;  %p4995_p10 = pnand %p4994_p7, %p4988_p4 }
  0x40   : > { %556 = vmatprep.mubr.bf16.mxu0 %v5081_v7 }
  0x47   : > { %4248 = vmatmul.mubr.msk.bf16.gmra.mrb[4].mxu0 %vm501_vm0, %v4452_v42 }
  0x48   : > { %566 = vmatprep.mubr.bf16.mxu0 %v5081_v7 }
  0x4f   : > { %4249 = vmatmul.mubr.msk.bf16.gmra.mrb[8].mxu0 %vm501_vm0, %v4453_v43  ;;  %v417_v43 = vld [vmem:[%s6675_s5 + $0x20] sm:$0xff] }
  0x50   : > { %576 = vmatprep.mubr.bf16.mxu0 %v5081_v7 }
  0xab   : > { %v598_v18 = vpop.permute.xlu0 %597 }
  0xad   : > { %v424_v20 = vpop.permute.xlu1 %423 }
  0xaf   : > { %v603_v24 = vpop.permute.xlu0 %602 }
  0xb1   : > { %v429_v30 = vpop.permute.xlu1 %428 }
 0x109   : > { %v5255_v19 = vpop.f32.mrb[0].mxu1 }
 0x10a   : > { %v677_v21 = vpop.f32.mrb[1].mxu1 }
 0x10b   : > { %v678_v22 = vadd.f32 %v677_v21, %v598_v18  ;;  %v5257_v23 = vpop.f32.mrb[2].mxu1 }
 0x10c   : > { %v680_v25 = vpop.f32.mrb[3].mxu1 }
 0x10d   : > { %v681_v26 = vadd.f32 %v680_v25, %v603_v24  ;;  %v692_v27 = vmul.f32 0.5, %v678_v22 }
 0x10f   : > { %v693_v28 = vmul.f32 0.5, %v681_v26 }
 0x111   : > { %v5259_v33 = vpack.c.bf16 %v693_v28, %v692_v27 }
 0x112   : > { %v548_v29 = vpop.f32.mrb[0].mxu0 }
 0x113   : > { %v549_v31 = vadd.f32 %v548_v29, %v424_v20  ;;  %v550_v32 = vpop.f32.mrb[1].mxu0  ;;  %706 = vxpose.xlu0.c.b16.start.end [1/1] (short) %v5259_v33, 128 }
 0x114   : > { %v551_v34 = vadd.f32 %v550_v32, %v424_v20  ;;  %v552_v35 = vpop.f32.mrb[2].mxu0 }
 0x115   : > { %v553_v36 = vadd.f32 %v552_v35, %v429_v30  ;;  %v554_v37 = vpop.f32.mrb[3].mxu0 }
 0x116   : > { %v555_v38 = vadd.f32 %v554_v37, %v429_v30 }
 0x117   : > { %v5262_v39 = vpack.c.bf16 %v553_v36, %v549_v31 }
 0x118   : > { %v5264_v40 = vpack.c.bf16 %v555_v38, %v551_v34 }
 0x119   : > { %v749_v41 = vsel %vm747_vm1, %v5262_v39, 0 }
 0x11a   : > { %4257 = vmatprep.subr.msk.bf16.mxu1 %vm747_vm1, %v5264_v40  ;;  %v5391_v42 = vpop.f32.mrb[4].mxu0 }
 0x11b   : > { %755 = vmatpush1.bf16.msra.mxu1 %v749_v41 }
 0x179   : > { %v714_v44 = vpop.trf.xlu0 }
 0x17a   : > { %4258 = vmatmul.mubr.msk.bf16.vlgmr.msra.gmra.mrb[4].mxu1 %vm722_vm2, %v714_v44  ;;  %v5396_v44 = vpop.f32.mrb[5].mxu0 }
 0x17b   : > { %796 = vmatprep.mubr.bf16.mxu1 %v5081_v7 }
 0x17d   : > { %v715_v45 = vpop.trf.xlu0 }
 0x181   : > { %v716_v46 = vpop.trf.xlu0 }
 0x182   : > { %4259 = vmatmul.mubr.msk.bf16.gmra.mrb[8].mxu1 %vm722_vm2, %v715_v45  ;;  %v5398_v45 = vpop.f32.mrb[6].mxu0 }
 0x183   : > { %806 = vmatprep.mubr.bf16.mxu1 %v5081_v7 }
 0x185   : > { %v717_v47 = vpop.trf.xlu0 }
 0x189   : > { %v718_v48 = vpop.trf.xlu0 }
 0x18a   : > { %4260 = vmatmul.mubr.msk.bf16.gmra.mrb[12].mxu1 %vm722_vm2, %v716_v46  ;;  %v5400_v46 = vpop.f32.mrb[7].mxu0 }
 0x18b   : > { %816 = vmatprep.mubr.bf16.mxu1 %v5081_v7 }
 0x18d   : > { %v719_v49 = vpop.trf.xlu0 }
 0x191   : > { %v720_v50 = vpop.trf.xlu0 }
 0x192   : > { %4261 = vmatmul.mubr.msk.bf16.gmra.mrb[16].mxu1 %vm722_vm2, %v717_v47  ;;  %v5402_v47 = vpop.f32.mrb[8].mxu0 }
 0x193   : > { %826 = vmatprep.mubr.bf16.mxu1 %v5081_v7 }
 0x195   : > { %v721_v51 = vpop.trf.xlu0 }
 0x19a   : > { %4262 = vmatmul.mubr.msk.bf16.gmra.mrb[20].mxu1 %vm722_vm2, %v718_v48  ;;  %v5404_v48 = vpop.f32.mrb[9].mxu0 }
 0x19b   : > { %836 = vmatprep.mubr.bf16.mxu1 %v5081_v7 }
 0x1a2   : > { %4263 = vmatmul.mubr.msk.bf16.gmra.mrb[24].mxu1 %vm722_vm2, %v719_v49  ;;  %v418_v49 = vld [vmem:[%s6675_s5 + $0x28] sm:$0xff] }
 0x1a3   : > { %846 = vmatprep.mubr.bf16.mxu1 %v5081_v7 }
 0x1aa   : > { %4264 = vmatmul.mubr.msk.bf16.gmra.mrb[28].mxu1 %vm722_vm2, %v720_v50  ;;  %v5409_v50 = vpop.f32.mrb[10].mxu0 }
 0x1ab   : > { %856 = vmatprep.mubr.bf16.mxu1 %v5081_v7 }
 0x1b2   : > { %4265 = vmatmul.mubr.msk.bf16.gmra.mrb[32].mxu1 %vm722_vm2, %v721_v51  ;;  %v5411_v51 = vpop.f32.mrb[11].mxu0 }
 0x24d   : > { %v5295_v52 = vpop.f32.mrb[4].mxu1 }
 0x24e   : > { %v5297_v53 = vpop.f32.mrb[5].mxu1 }
 0x24f   : > { %v5299_v54 = vpop.f32.mrb[6].mxu1  ;;  %v867_v55 = vmax.f32 %v5295_v52, %v5297_v53 }
 0x250   : > { %v5303_v56 = vpop.f32.mrb[7].mxu1 }
 0x251   : > { %868 = vmax.xlane.f32.xlu1 %v867_v55  ;;  %v870_v57 = vmax.f32 %v5299_v54, %v5303_v56  ;;  %v4454_v55 = vld [vmem:[%s6674_s4 + $0x18] sm:$0xff]  }
 0x252   : > { %4250 = vmatmul.mubr.msk.bf16.gmra.mrb[12].mxu0 %vm501_vm0, %v4454_v55 }
 0x253   : > { %871 = vmax.xlane.f32.xlu0 %v870_v57  ;;  %v5082_v57 = vmov 1065369472  }
 0x254   : > { %1099 = vmatprep.mubr.bf16.mxu1 %v5082_v57 }
 0x255   : > { %v5307_v58 = vpop.f32.mrb[8].mxu1 }
 0x256   : > { %v5309_v59 = vpop.f32.mrb[9].mxu1 }
 0x257   : > { %v5311_v60 = vpop.f32.mrb[10].mxu1  ;;  %v873_v61 = vmax.f32 %v5307_v58, %v5309_v59 }
 0x258   : > { %v5315_v62 = vpop.f32.mrb[11].mxu1 }
 0x259   : > { %874 = vmax.xlane.f32.xlu1 %v873_v61  ;;  %v876_v63 = vmax.f32 %v5311_v60, %v5315_v62  ;;  %v1115_v61 = vrot.slane %v5259_v33, 2 }
 0x25d   : > { %877 = vmax.xlane.f32.xlu1 %v876_v63  ;;  %v5319_v0 = vpop.f32.mrb[12].mxu1 }
 0x25e   : > { %v5321_v1 = vpop.f32.mrb[13].mxu1 }
 0x25f   : > { %v5323_v2 = vpop.f32.mrb[14].mxu1  ;;  %v879_v3 = vmax.f32 %v5319_v0, %v5321_v1 }
 0x260   : > { %v5327_v4 = vpop.f32.mrb[15].mxu1 }
 0x261   : > { %880 = vmax.xlane.f32.xlu1 %v879_v3  ;;  %v882_v5 = vmax.f32 %v5323_v2, %v5327_v4 }
 0x265   : > { %883 = vmax.xlane.f32.xlu1 %v882_v5  ;;  %v5331_v6 = vpop.f32.mrb[16].mxu1 }
 0x266   : > { %v5333_v8 = vpop.f32.mrb[17].mxu1 }
 0x267   : > { %v5335_v9 = vpop.f32.mrb[18].mxu1  ;;  %v885_v10 = vmax.f32 %v5331_v6, %v5333_v8 }
 0x268   : > { %v5339_v11 = vpop.f32.mrb[19].mxu1 }
 0x269   : > { %886 = vmax.xlane.f32.xlu1 %v885_v10  ;;  %v888_v12 = vmax.f32 %v5335_v9, %v5339_v11 }
 0x26d   : > { %889 = vmax.xlane.f32.xlu1 %v888_v12  ;;  %v5343_v13 = vpop.f32.mrb[20].mxu1 }
 0x26e   : > { %v5345_v14 = vpop.f32.mrb[21].mxu1 }
 0x26f   : > { %v5347_v15 = vpop.f32.mrb[22].mxu1  ;;  %v891_v16 = vmax.f32 %v5343_v13, %v5345_v14 }
 0x270   : > { %v5351_v17 = vpop.f32.mrb[23].mxu1 }
 0x271   : > { %892 = vmax.xlane.f32.xlu1 %v891_v16  ;;  %v894_v18 = vmax.f32 %v5347_v15, %v5351_v17 }
 0x275   : > { %895 = vmax.xlane.f32.xlu1 %v894_v18  ;;  %v5355_v20 = vpop.f32.mrb[24].mxu1 }
 0x276   : > { %v5357_v21 = vpop.f32.mrb[25].mxu1 }
 0x277   : > { %v5359_v22 = vpop.f32.mrb[26].mxu1  ;;  %v897_v24 = vmax.f32 %v5355_v20, %v5357_v21 }
 0x278   : > { %v5363_v25 = vpop.f32.mrb[27].mxu1 }
 0x279   : > { %898 = vmax.xlane.f32.xlu1 %v897_v24  ;;  %v900_v26 = vmax.f32 %v5359_v22, %v5363_v25 }
 0x27b   : > { %901 = vmax.xlane.f32.xlu0 %v900_v26 }
 0x27d   : > { %v5367_v27 = vpop.f32.mrb[28].mxu1 }
 0x27e   : > { %v5369_v28 = vpop.f32.mrb[29].mxu1 }
 0x27f   : > { %v5371_v29 = vpop.f32.mrb[30].mxu1  ;;  %v903_v30 = vmax.f32 %v5367_v27, %v5369_v28 }
 0x280   : > { %v5375_v31 = vpop.f32.mrb[31].mxu1 }
 0x281   : > { %904 = vmax.xlane.f32.xlu1 %v903_v30  ;;  %v906_v32 = vmax.f32 %v5371_v29, %v5375_v31 }
 0x283   : > { %907 = vmax.xlane.f32.xlu0 %v906_v32 }
 0x285   : > { %v5379_v34 = vpop.f32.mrb[32].mxu1 }
 0x286   : > { %v5381_v35 = vpop.f32.mrb[33].mxu1 }
 0x287   : > { %v5383_v36 = vpop.f32.mrb[34].mxu1  ;;  %v909_v37 = vmax.f32 %v5379_v34, %v5381_v35 }
 0x288   : > { %v5387_v38 = vpop.f32.mrb[35].mxu1 }
 0x289   : > { %910 = vmax.xlane.f32.xlu1 %v909_v37  ;;  %v912_v41 = vmax.f32 %v5383_v36, %v5387_v38 }
 0x28b   : > { %913 = vmax.xlane.f32.xlu0 %v912_v41 }
 0x29a   : > { %443 = vperm.xlu1 %4440, %v417_v43  }
 0x2a1   : > { %448 = vperm.xlu0 %4439, %v418_v49  }
 0x2bd   : > { %1117 = vxpose.xlu1.c.b16.start.end [1/1] (short) %v1115_v61, 128 }
 0x2de   : > { %v869_v63 = vpop.xlane.xlu1 %868 }
 0x2df   : > { %v915_v3 = vsub.f32 %v5295_v52, %v869_v63  ;;  %v916_v5 = vsub.f32 %v5297_v53, %v869_v63 }
 0x2e0   : > { %v872_v10 = vpop.xlane.xlu0 %871 }
 0x2e1   : > { %v947_v12 = vmul.f32 1.442695, %v915_v3  ;;  %v949_v16 = vmul.f32 1.442695, %v916_v5  ;;  %v917_v18 = vsub.f32 %v5299_v54, %v872_v10  ;;  %v918_v24 = vsub.f32 %v5303_v56, %v872_v10 }
 0x2e3   : > { %4457 = vpow2.f32 %v947_v12  ;;  %v951_v26 = vmul.f32 1.442695, %v917_v18  ;;  %v953_v30 = vmul.f32 1.442695, %v918_v24 }
 0x2e4   : > { %4459 = vpow2.f32 %v949_v16 }
 0x2e5   : > { %4461 = vpow2.f32 %v951_v26 }
 0x2e6   : > { %4463 = vpow2.f32 %v953_v30  ;;  %v875_v32 = vpop.xlane.xlu1 %874 }
 0x2e7   : > { %v919_v37 = vsub.f32 %v5307_v58, %v875_v32  ;;  %v920_v52 = vsub.f32 %v5309_v59, %v875_v32 }
 0x2e9   : > { %v955_v41 = vmul.f32 1.442695, %v919_v37  ;;  %v957_v53 = vmul.f32 1.442695, %v920_v52 }
 0x2ea   : > { %v878_v43 = vpop.xlane.xlu1 %877 }
 0x2eb   : > { %v921_v49 = vsub.f32 %v5311_v60, %v878_v43  ;;  %v922_v54 = vsub.f32 %v5315_v62, %v878_v43  ;;  %4465 = vpow2.f32 %v955_v41 }
 0x2ec   : > { %4467 = vpow2.f32 %v957_v53 }
 0x2ed   : > { %v4458_v55 = vpop.eup %4457  ;;  %v959_v56 = vmul.f32 1.442695, %v921_v49  ;;  %v961_v61 = vmul.f32 1.442695, %v922_v54 }
 0x2ee   : > { %v4460_v63 = vpop.eup %4459  ;;  %v881_v3 = vpop.xlane.xlu1 %880 }
 0x2ef   : > { %v4462_v5 = vpop.eup %4461  ;;  %4469 = vpow2.f32 %v959_v56  ;;  %v923_v58 = vsub.f32 %v5319_v0, %v881_v3  ;;  %v924_v59 = vsub.f32 %v5321_v1, %v881_v3 }
 0x2f0   : > { %v4464_v10 = vpop.eup %4463  ;;  %4471 = vpow2.f32 %v961_v61  ;;  %v1011_v12 = vpack.c.bf16 %v4462_v5, %v4458_v55 }
 0x2f1   : > { %v963_v16 = vmul.f32 1.442695, %v923_v58  ;;  %v1012_v60 = vpack.c.bf16 %v4464_v10, %v4460_v63  ;;  %v965_v18 = vmul.f32 1.442695, %v924_v59 }
 0x2f2   : > { %v884_v62 = vpop.xlane.xlu1 %883 }
 0x2f3   : > { %v925_v24 = vsub.f32 %v5323_v2, %v884_v62  ;;  %v926_v26 = vsub.f32 %v5327_v4, %v884_v62  ;;  %1027 = vmatprep.subr.bf16.mxu0 %v1012_v60  ;;  %1067 = vmatprep.subr.bf16.mxu1 %v1012_v60  ;;  %4473 = vpow2.f32 %v963_v16 }
 0x2f4   : > { %1028 = vmatpush1.bf16.xpose.msra.mxu0 %v1011_v12  ;;  %1068 = vmatpush1.bf16.xpose.msra.mxu1 %v1011_v12  ;;  %4475 = vpow2.f32 %v965_v18 }
 0x2f5   : > { %v967_v30 = vmul.f32 1.442695, %v925_v24  ;;  %v969_v0 = vmul.f32 1.442695, %v926_v26  ;;  %v4466_v32 = vpop.eup %4465 }
 0x2f6   : > { %v887_v1 = vpop.xlane.xlu1 %886  ;;  %v4468_v41 = vpop.eup %4467 }
 0x2f7   : > { %4477 = vpow2.f32 %v967_v30  ;;  %v927_v37 = vsub.f32 %v5331_v6, %v887_v1  ;;  %v928_v52 = vsub.f32 %v5333_v8, %v887_v1 }
 0x2f8   : > { %4479 = vpow2.f32 %v969_v0 }
 0x2f9   : > { %v4470_v2 = vpop.eup %4469  ;;  %v971_v53 = vmul.f32 1.442695, %v927_v37  ;;  %v973_v43 = vmul.f32 1.442695, %v928_v52 }
 0x2fa   : > { %v4472_v4 = vpop.eup %4471  ;;  %v890_v49 = vpop.xlane.xlu1 %889  ;;  %v1013_v54 = vpack.c.bf16 %v4470_v2, %v4466_v32 }
 0x2fb   : > { %v929_v55 = vsub.f32 %v5335_v9, %v890_v49  ;;  %v930_v56 = vsub.f32 %v5339_v11, %v890_v49  ;;  %v1014_v61 = vpack.c.bf16 %v4472_v4, %v4468_v41  ;;  %4481 = vpow2.f32 %v971_v53 }
 0x2fc   : > { %4483 = vpow2.f32 %v973_v43 }
 0x2fd   : > { %v975_v63 = vmul.f32 1.442695, %v929_v55  ;;  %v977_v3 = vmul.f32 1.442695, %v930_v56  ;;  %1029 = vmatprep.subr.bf16.mxu0 %v1014_v61  ;;  %1069 = vmatprep.subr.bf16.mxu1 %v1014_v61  ;;  %v4474_v8 = vpop.eup %4473 }
 0x2fe   : > { %1030 = vmatpush1.bf16.xpose.msra.mxu0 %v1013_v54  ;;  %1070 = vmatpush1.bf16.xpose.msra.mxu1 %v1013_v54  ;;  %v893_v6 = vpop.xlane.xlu1 %892  ;;  %v4476_v59 = vpop.eup %4475 }
 0x2ff   : > { %4485 = vpow2.f32 %v975_v63  ;;  %v931_v5 = vsub.f32 %v5343_v13, %v893_v6  ;;  %v932_v58 = vsub.f32 %v5345_v14, %v893_v6 }
 0x300   : > { %4487 = vpow2.f32 %v977_v3 }
 0x301   : > { %v4478_v9 = vpop.eup %4477  ;;  %v979_v11 = vmul.f32 1.442695, %v931_v5  ;;  %v981_v12 = vmul.f32 1.442695, %v932_v58 }
 0x302   : > { %v4480_v10 = vpop.eup %4479  ;;  %v896_v16 = vpop.xlane.xlu1 %895  ;;  %v1015_v60 = vpack.c.bf16 %v4478_v9, %v4474_v8 }
 0x303   : > { %v933_v18 = vsub.f32 %v5347_v15, %v896_v16  ;;  %v934_v62 = vsub.f32 %v5351_v17, %v896_v16  ;;  %v1016_v24 = vpack.c.bf16 %v4480_v10, %v4476_v59  ;;  %4489 = vpow2.f32 %v979_v11 }
 0x304   : > { %4491 = vpow2.f32 %v981_v12 }
 0x305   : > { %v983_v26 = vmul.f32 1.442695, %v933_v18  ;;  %v985_v30 = vmul.f32 1.442695, %v934_v62  ;;  %1031 = vmatprep.subr.bf16.mxu0 %v1016_v24  ;;  %1071 = vmatprep.subr.bf16.mxu1 %v1016_v24  ;;  %v4482_v14 = vpop.eup %4481 }
 0x306   : > { %1032 = vmatpush1.bf16.xpose.msra.mxu0 %v1015_v60  ;;  %1072 = vmatpush1.bf16.xpose.msra.mxu1 %v1015_v60  ;;  %v899_v13 = vpop.xlane.xlu1 %898  ;;  %v4484_v32 = vpop.eup %4483 }
 0x307   : > { %4493 = vpow2.f32 %v983_v26  ;;  %v935_v0 = vsub.f32 %v5355_v20, %v899_v13  ;;  %v936_v1 = vsub.f32 %v5357_v21, %v899_v13 }
 0x308   : > { %4495 = vpow2.f32 %v985_v30  ;;  %v902_v15 = vpop.xlane.xlu0 %901 }
 0x309   : > { %v4486_v17 = vpop.eup %4485  ;;  %v987_v37 = vmul.f32 1.442695, %v935_v0  ;;  %v937_v52 = vsub.f32 %v5359_v22, %v902_v15  ;;  %v938_v41 = vsub.f32 %v5363_v25, %v902_v15  ;;  %v989_v4 = vmul.f32 1.442695, %v936_v1 }
 0x30a   : > { %v4488_v2 = vpop.eup %4487  ;;  %v1017_v53 = vpack.c.bf16 %v4486_v17, %v4482_v14 }
 0x30b   : > { %v991_v43 = vmul.f32 1.442695, %v937_v52  ;;  %v993_v49 = vmul.f32 1.442695, %v938_v41  ;;  %v1018_v54 = vpack.c.bf16 %v4488_v2, %v4484_v32  ;;  %4497 = vpow2.f32 %v987_v37 }
 0x30d   : > { %4499 = vpow2.f32 %v991_v43  ;;  %1033 = vmatprep.subr.bf16.mxu0 %v1018_v54  ;;  %1073 = vmatprep.subr.bf16.mxu1 %v1018_v54  ;;  %v4490_v21 = vpop.eup %4489 }
 0x30e   : > { %4501 = vpow2.f32 %v993_v49  ;;  %1034 = vmatpush1.bf16.xpose.msra.mxu0 %v1017_v53  ;;  %1074 = vmatpush1.bf16.xpose.msra.mxu1 %v1017_v53  ;;  %v905_v20 = vpop.xlane.xlu1 %904  ;;  %v4492_v55 = vpop.eup %4491 }
 0x30f   : > { %4503 = vpow2.f32 %v989_v4  ;;  %v939_v22 = vsub.f32 %v5367_v27, %v905_v20  ;;  %v940_v25 = vsub.f32 %v5369_v28, %v905_v20 }
 0x310   : > { %v908_v56 = vpop.xlane.xlu0 %907 }
 0x311   : > { %v4494_v61 = vpop.eup %4493  ;;  %v995_v63 = vmul.f32 1.442695, %v939_v22  ;;  %v997_v3 = vmul.f32 1.442695, %v940_v25  ;;  %v941_v6 = vsub.f32 %v5371_v29, %v908_v56  ;;  %v942_v8 = vsub.f32 %v5375_v31, %v908_v56 }
 0x312   : > { %v4496_v5 = vpop.eup %4495  ;;  %v1019_v58 = vpack.c.bf16 %v4494_v61, %v4490_v21 }
 0x313   : > { %4505 = vpow2.f32 %v995_v63  ;;  %v999_v59 = vmul.f32 1.442695, %v941_v6  ;;  %v1001_v9 = vmul.f32 1.442695, %v942_v8  ;;  %v1020_v11 = vpack.c.bf16 %v4496_v5, %v4492_v55 }
 0x314   : > { %4507 = vpow2.f32 %v997_v3 }
 0x315   : > { %4509 = vpow2.f32 %v999_v59  ;;  %1035 = vmatprep.subr.bf16.mxu0 %v1020_v11  ;;  %1075 = vmatprep.subr.bf16.mxu1 %v1020_v11  ;;  %v4498_v27 = vpop.eup %4497 }
 0x316   : > { %4511 = vpow2.f32 %v1001_v9  ;;  %1036 = vmatpush1.bf16.xpose.msra.mxu0 %v1019_v58  ;;  %1076 = vmatpush1.bf16.xpose.msra.mxu1 %v1019_v58  ;;  %v911_v28 = vpop.xlane.xlu1 %910 }
 0x317   : > { %v4500_v10 = vpop.eup %4499  ;;  %v943_v29 = vsub.f32 %v5379_v34, %v911_v28  ;;  %v944_v31 = vsub.f32 %v5381_v35, %v911_v28  ;;  %v1108_v28 = vlaneseq }
 0x318   : > { %v4502_v12 = vpop.eup %4501  ;;  %v914_v16 = vpop.xlane.xlu0 %913  ;;  %v1021_v60 = vpack.c.bf16 %v4500_v10, %v4498_v27 }
 0x319   : > { %v4504_v18 = vpop.eup %4503  ;;  %v1003_v62 = vmul.f32 1.442695, %v943_v29  ;;  %v1005_v24 = vmul.f32 1.442695, %v944_v31  ;;  %v945_v26 = vsub.f32 %v5383_v36, %v914_v16  ;;  %v946_v30 = vsub.f32 %v5387_v38, %v914_v16 }
 0x31a   : > { %v1022_v13 = vpack.c.bf16 %v4502_v12, %v4504_v18  ;;  %v444_v35 = vpop.permute.xlu1 %443  ;;  %v1109_v18 = vshrl.u32 %v1108_v28, 7 }
 0x31b   : > { %4513 = vpow2.f32 %v1003_v62  ;;  %v1007_v14 = vmul.f32 1.442695, %v945_v26  ;;  %v1009_v0 = vmul.f32 1.442695, %v946_v30  ;;  %v569_v36 = vadd.f32 %v5402_v47, %v444_v35 }
 0x31c   : > { %4515 = vpow2.f32 %v1005_v24  ;;  %1037 = vmatprep.subr.bf16.mxu0 %v1022_v13  ;;  %1077 = vmatprep.subr.bf16.mxu1 %v1022_v13  ;;  %v571_v37 = vadd.f32 %v5404_v48, %v444_v35  ;;  %v5492_v62 = vsub.s32 0, %v1109_v18 }
 0x31d   : > { %v4506_v34 = vpop.eup %4505  ;;  %4517 = vpow2.f32 %v1007_v14 }
 0x31e   : > { %v4508_v1 = vpop.eup %4507  ;;  %4519 = vpow2.f32 %v1009_v0  ;;  %1038 = vmatpush1.bf16.xpose.msra.mxu0 %v1021_v60  ;;  %1078 = vmatpush1.bf16.xpose.msra.mxu1 %v1021_v60 }
 0x31f   : > { %v4510_v32 = vpop.eup %4509 }
 0x320   : > { %v4512_v15 = vpop.eup %4511  ;;  %v449_v17 = vpop.permute.xlu0 %448  ;;  %v1023_v38 = vpack.c.bf16 %v4510_v32, %v4506_v34 }
 0x321   : > { %v573_v52 = vadd.f32 %v5409_v50, %v449_v17  ;;  %v575_v41 = vadd.f32 %v5411_v51, %v449_v17  ;;  %v1024_v2 = vpack.c.bf16 %v4512_v15, %v4508_v1  ;;  %v1136_v50 = vrot.slane %v5264_v40, 2 }
 0x322   : > { %v1135_v51 = vrot.slane %v5262_v39, 2 }
 0x323   : > { %v5455_v53 = vpack.c.bf16 %v573_v52, %v569_v36  ;;  %v5457_v4 = vpack.c.bf16 %v575_v41, %v571_v37  ;;  %1039 = vmatprep.subr.bf16.mxu0 %v1024_v2  ;;  %1079 = vmatprep.subr.bf16.mxu1 %v1024_v2  ;;  %v1125_v22 = vpop.trf.xlu1 }
 0x324   : > { %v1162_v21 = vsel %vm747_vm1, %v1135_v51, 0 }
 0x325   : > { %v4514_v43 = vpop.eup %4513  ;;  %1059 = vmatprep.mubr.bf16.mxu0 %v5457_v4  ;;  %v1443_v8 = vrot.slane %v5457_v4, 2  ;;  %v5484_v5 = vpop.f32.mrb[12].mxu0 }
 0x326   : > { %v4516_v49 = vpop.eup %4515  ;;  %1040 = vmatpush1.bf16.xpose.msra.mxu0 %v1023_v38  ;;  %1080 = vmatpush1.bf16.xpose.msra.mxu1 %v1023_v38  ;;  %v5486_v58 = vpop.f32.mrb[13].mxu0 }
 0x327   : > { %v4518_v47 = vpop.eup %4517  ;;  %v1126_v25 = vpop.trf.xlu1 }
 0x328   : > { %v4520_v54 = vpop.eup %4519  ;;  %v1025_v48 = vpack.c.bf16 %v4518_v47, %v4514_v43  ;;  %v5488_v59 = vpop.f32.mrb[14].mxu0 }
 0x329   : > { %v1026_v20 = vpack.c.bf16 %v4520_v54, %v4516_v49  ;;  %v5490_v9 = vpop.f32.mrb[15].mxu0 }
 0x32b   : > { %1041 = vmatprep.subr.bf16.mxu0 %v1026_v20  ;;  %1081 = vmatprep.subr.bf16.mxu1 %v1026_v20  ;;  %v1127_v55 = vpop.trf.xlu1 }
 0x32e   : > { %1042 = vmatpush1.bf16.xpose.msra.mxu0 %v1025_v48  ;;  %1082 = vmatpush1.bf16.xpose.msra.mxu1 %v1025_v48 }
 0x32f   : > { %4266 = vmatprep.subr.msk.bf16.mxu0 %vm747_vm1, %v1136_v50  ;;  %v1128_v56 = vpop.trf.xlu1 }
 0x333   : > { %v1129_v61 = vpop.trf.xlu1 }
 0x335   : > { %1060 = vmatmul.mubr.bf16.vlgmr.msra.gmra.mrb[16].mxu0 %v5455_v53  ;;  %1100 = vmatmul.mubr.bf16.vlgmr.msra.gmra.mrb[36].mxu1 %v5082_v57 }
 0x336   : > { %1168 = vmatpush1.bf16.msra.mxu0 %v1162_v21  ;;  %1199 = vmatprep.mubr.bf16.mxu0 %v5081_v7 }
 0x337   : > { %1518 = vmatprep.mubr.bf16.mxu1 %v5082_v57  ;;  %v1130_v63 = vpop.trf.xlu1 }
 0x33b   : > { %v1131_v3 = vpop.trf.xlu1 }
 0x33d   : > { %4267 = vmatmul.mubr.msk.bf16.vlgmr.msra.gmra.mrb[20].mxu0 %vm722_vm2, %v1125_v22 }
 0x33e   : > { %1209 = vmatprep.mubr.bf16.mxu0 %v5081_v7 }
 0x33f   : > { %v1132_v6 = vpop.trf.xlu1 }
 0x345   : > { %4268 = vmatmul.mubr.msk.bf16.gmra.mrb[24].mxu0 %vm722_vm2, %v1126_v25 }
 0x346   : > { %1219 = vmatprep.mubr.bf16.mxu0 %v5081_v7 }
 0x34d   : > { %4269 = vmatmul.mubr.msk.bf16.gmra.mrb[28].mxu0 %vm722_vm2, %v1127_v55 }
 0x34e   : > { %1229 = vmatprep.mubr.bf16.mxu0 %v5081_v7 }
 0x355   : > { %4270 = vmatmul.mubr.msk.bf16.gmra.mrb[32].mxu0 %vm722_vm2, %v1128_v56 }
 0x356   : > { %1239 = vmatprep.mubr.bf16.mxu0 %v5081_v7 }
 0x35d   : > { %4271 = vmatmul.mubr.msk.bf16.gmra.mrb[36].mxu0 %vm722_vm2, %v1129_v61 }
 0x35e   : > { %1249 = vmatprep.mubr.bf16.mxu0 %v5081_v7 }
 0x365   : > { %4272 = vmatmul.mubr.msk.bf16.gmra.mrb[40].mxu0 %vm722_vm2, %v1130_v63 }
 0x366   : > { %1259 = vmatprep.mubr.bf16.mxu0 %v5081_v7 }
 0x36d   : > { %4273 = vmatmul.mubr.msk.bf16.gmra.mrb[44].mxu0 %vm722_vm2, %v1131_v3 }
 0x36e   : > { %1269 = vmatprep.mubr.bf16.mxu0 %v5081_v7 }
 0x375   : > { %4274 = vmatmul.mubr.msk.bf16.gmra.mrb[48].mxu0 %vm722_vm2, %v1132_v6 }
 0x376   : > { %1478 = vmatprep.mubr.bf16.mxu0 %v1443_v8 }
 0x408   : > { %v1061_v11 = vpop.f32.mrb[16].mxu0  ;;  %v1101_v27 = vpop.f32.mrb[36].mxu1 }
 0x409   : > { %4521 = vrcp.f32 %v1101_v27  ;;  %v1063_v10 = vpop.f32.mrb[17].mxu0  ;;  %v1103_v29 = vpop.f32.mrb[37].mxu1 }
 0x40a   : > { %v1064_v31 = vpop.f32.mrb[18].mxu0  ;;  %v1104_v12 = vpop.f32.mrb[38].mxu1 }
 0x40b   : > { %v1065_v16 = vpop.f32.mrb[19].mxu0  ;;  %v1105_v60 = vpop.f32.mrb[39].mxu1 }
 0x410   : > { %v5494_v24 = vpop.f32.mrb[20].mxu0 }
 0x411   : > { %v5496_v26 = vpop.f32.mrb[21].mxu0 }
 0x412   : > { %v5498_v30 = vpop.f32.mrb[22].mxu0  ;;  %v1280_v13 = vmax.f32 %v5494_v24, %v5496_v26 }
 0x413   : > { %v4522_v14 = vpop.eup %4521  ;;  %v5502_v0 = vpop.f32.mrb[23].mxu0 }
 0x414   : > { %v1111_v34 = vrot.slane %v4522_v14, %v5492_v62  ;;  %1281 = vmax.xlane.f32.xlu0 %v1280_v13  ;;  %v1283_v35 = vmax.f32 %v5498_v30, %v5502_v0 }
 0x416   : > { %v1112_v1 = vmul.f32 %v1111_v34, %v1061_v11  ;;  %1284 = vmax.xlane.f32.xlu1 %v1283_v35 }
 0x418   : > { %1113 = vst [vmem:[#allocation2] sm:$0xf] %v1112_v1  ;;  %v5507_v32 = vpop.f32.mrb[24].mxu0 }
 0x419   : > { %v5509_v15 = vpop.f32.mrb[25].mxu0 }
 0x41a   : > { %v5511_v36 = vpop.f32.mrb[26].mxu0  ;;  %v1286_v17 = vmax.f32 %v5507_v32, %v5509_v15 }
 0x41b   : > { %v5515_v38 = vpop.f32.mrb[27].mxu0 }
 0x41c   : > { %1287 = vmax.xlane.f32.xlu0 %v1286_v17  ;;  %v1289_v37 = vmax.f32 %v5511_v36, %v5515_v38  ;;  %v1533_v17 = vrot.slane %v5259_v33, 4 }
 0x420   : > { %1290 = vmax.xlane.f32.xlu0 %v1289_v37  ;;  %v5519_v52 = vpop.f32.mrb[28].mxu0 }
 0x421   : > { %v5521_v41 = vpop.f32.mrb[29].mxu0 }
 0x422   : > { %v5523_v2 = vpop.f32.mrb[30].mxu0  ;;  %v1292_v43 = vmax.f32 %v5519_v52, %v5521_v41 }
 0x423   : > { %v5527_v49 = vpop.f32.mrb[31].mxu0 }
 0x424   : > { %1293 = vmax.xlane.f32.xlu0 %v1292_v43  ;;  %v1295_v47 = vmax.f32 %v5523_v2, %v5527_v49 }
 0x428   : > { %1296 = vmax.xlane.f32.xlu0 %v1295_v47  ;;  %v5531_v54 = vpop.f32.mrb[32].mxu0 }
 0x429   : > { %v5533_v48 = vpop.f32.mrb[33].mxu0 }
 0x42a   : > { %v5535_v20 = vpop.f32.mrb[34].mxu0  ;;  %v1298_v50 = vmax.f32 %v5531_v54, %v5533_v48 }
 0x42b   : > { %v5539_v51 = vpop.f32.mrb[35].mxu0 }
 0x42c   : > { %1299 = vmax.xlane.f32.xlu0 %v1298_v50  ;;  %v1301_v21 = vmax.f32 %v5535_v20, %v5539_v51 }
 0x430   : > { %1302 = vmax.xlane.f32.xlu0 %v1301_v21  ;;  %v5543_v22 = vpop.f32.mrb[36].mxu0 }
 0x431   : > { %v5545_v25 = vpop.f32.mrb[37].mxu0 }
 0x432   : > { %v5547_v55 = vpop.f32.mrb[38].mxu0  ;;  %v1304_v56 = vmax.f32 %v5543_v22, %v5545_v25 }
 0x433   : > { %v5551_v61 = vpop.f32.mrb[39].mxu0 }
 0x434   : > { %1305 = vmax.xlane.f32.xlu0 %v1304_v56  ;;  %v1307_v63 = vmax.f32 %v5547_v55, %v5551_v61 }
 0x438   : > { %1308 = vmax.xlane.f32.xlu0 %v1307_v63  ;;  %v5555_v3 = vpop.f32.mrb[40].mxu0 }
 0x439   : > { %v5557_v6 = vpop.f32.mrb[41].mxu0 }
 0x43a   : > { %v5559_v8 = vpop.f32.mrb[42].mxu0  ;;  %v1310_v11 = vmax.f32 %v5555_v3, %v5557_v6 }
 0x43b   : > { %v5563_v27 = vpop.f32.mrb[43].mxu0 }
 0x43c   : > { %1311 = vmax.xlane.f32.xlu0 %v1310_v11  ;;  %v1313_v28 = vmax.f32 %v5559_v8, %v5563_v27 }
 0x440   : > { %1314 = vmax.xlane.f32.xlu0 %v1313_v28  ;;  %v5567_v10 = vpop.f32.mrb[44].mxu0 }
 0x441   : > { %v5569_v29 = vpop.f32.mrb[45].mxu0 }
 0x442   : > { %v5571_v31 = vpop.f32.mrb[46].mxu0  ;;  %v1316_v12 = vmax.f32 %v5567_v10, %v5569_v29 }
 0x443   : > { %v5575_v16 = vpop.f32.mrb[47].mxu0 }
 0x444   : > { %1317 = vmax.xlane.f32.xlu1 %v1316_v12  ;;  %v1319_v60 = vmax.f32 %v5571_v31, %v5575_v16 }
 0x446   : > { %1320 = vmax.xlane.f32.xlu0 %v1319_v60 }
 0x448   : > { %v5579_v18 = vpop.f32.mrb[48].mxu0 }
 0x449   : > { %v5581_v13 = vpop.f32.mrb[49].mxu0 }
 0x44a   : > { %v5583_v14 = vpop.f32.mrb[50].mxu0  ;;  %v1322_v34 = vmax.f32 %v5579_v18, %v5581_v13 }
 0x44b   : > { %v5587_v35 = vpop.f32.mrb[51].mxu0 }
 0x44c   : > { %1323 = vmax.xlane.f32.xlu1 %v1322_v34  ;;  %v1325_v1 = vmax.f32 %v5583_v14, %v5587_v35 }
 0x44e   : > { %1326 = vmax.xlane.f32.xlu0 %v1325_v1 }
 0x479   : > { %1535 = vxpose.xlu1.c.b16.start.end [1/1] (short) %v1533_v17, 128 }
 0x4a1   : > { %v1282_v37 = vpop.xlane.xlu0 %1281 }
 0x4a2   : > { %v1328_v43 = vsub.f32 %v5494_v24, %v1282_v37  ;;  %v1329_v47 = vsub.f32 %v5496_v26, %v1282_v37 }
 0x4a3   : > { %v1285_v50 = vpop.xlane.xlu1 %1284 }
 0x4a4   : > { %v1360_v21 = vmul.f32 1.442695, %v1328_v43  ;;  %v1362_v56 = vmul.f32 1.442695, %v1329_v47  ;;  %v1330_v63 = vsub.f32 %v5498_v30, %v1285_v50  ;;  %v1331_v11 = vsub.f32 %v5502_v0, %v1285_v50 }
 0x4a6   : > { %4523 = vpow2.f32 %v1360_v21  ;;  %v1364_v28 = vmul.f32 1.442695, %v1330_v63  ;;  %v1366_v12 = vmul.f32 1.442695, %v1331_v11 }
 0x4a7   : > { %4525 = vpow2.f32 %v1362_v56 }
 0x4a8   : > { %4527 = vpow2.f32 %v1364_v28 }
 0x4a9   : > { %4529 = vpow2.f32 %v1366_v12  ;;  %v1288_v60 = vpop.xlane.xlu0 %1287 }
 0x4aa   : > { %v1332_v34 = vsub.f32 %v5507_v32, %v1288_v60  ;;  %v1333_v24 = vsub.f32 %v5509_v15, %v1288_v60 }
 0x4ac   : > { %v1368_v1 = vmul.f32 1.442695, %v1332_v34  ;;  %v1370_v26 = vmul.f32 1.442695, %v1333_v24 }
 0x4ad   : > { %v1291_v17 = vpop.xlane.xlu0 %1290 }
 0x4ae   : > { %v1334_v37 = vsub.f32 %v5511_v36, %v1291_v17  ;;  %v1335_v30 = vsub.f32 %v5515_v38, %v1291_v17  ;;  %4531 = vpow2.f32 %v1368_v1 }
 0x4af   : > { %4533 = vpow2.f32 %v1370_v26 }
 0x4b0   : > { %v4524_v43 = vpop.eup %4523  ;;  %v1372_v0 = vmul.f32 1.442695, %v1334_v37  ;;  %v1374_v47 = vmul.f32 1.442695, %v1335_v30 }
 0x4b1   : > { %v4526_v50 = vpop.eup %4525  ;;  %v1294_v21 = vpop.xlane.xlu0 %1293 }
 0x4b2   : > { %v4528_v56 = vpop.eup %4527  ;;  %4535 = vpow2.f32 %v1372_v0  ;;  %v1336_v32 = vsub.f32 %v5519_v52, %v1294_v21  ;;  %v1337_v15 = vsub.f32 %v5521_v41, %v1294_v21 }
 0x4b3   : > { %v4530_v63 = vpop.eup %4529  ;;  %4537 = vpow2.f32 %v1374_v47  ;;  %v1424_v11 = vpack.c.bf16 %v4528_v56, %v4524_v43 }
 0x4b4   : > { %v1376_v28 = vmul.f32 1.442695, %v1336_v32  ;;  %v1425_v36 = vpack.c.bf16 %v4530_v63, %v4526_v50  ;;  %v1378_v12 = vmul.f32 1.442695, %v1337_v15 }
 0x4b5   : > { %v1297_v38 = vpop.xlane.xlu0 %1296 }
 0x4b6   : > { %v1338_v60 = vsub.f32 %v5523_v2, %v1297_v38  ;;  %v1339_v34 = vsub.f32 %v5527_v49, %v1297_v38  ;;  %1446 = vmatprep.subr.bf16.mxu0 %v1425_v36  ;;  %1486 = vmatprep.subr.bf16.mxu1 %v1425_v36  ;;  %4539 = vpow2.f32 %v1376_v28 }
 0x4b7   : > { %1447 = vmatpush1.bf16.xpose.msra.mxu0 %v1424_v11  ;;  %1487 = vmatpush1.bf16.xpose.msra.mxu1 %v1424_v11  ;;  %4541 = vpow2.f32 %v1378_v12 }
 0x4b8   : > { %v1380_v24 = vmul.f32 1.442695, %v1338_v60  ;;  %v1382_v52 = vmul.f32 1.442695, %v1339_v34  ;;  %v4532_v1 = vpop.eup %4531 }
 0x4b9   : > { %v1300_v41 = vpop.xlane.xlu0 %1299  ;;  %v4534_v37 = vpop.eup %4533 }
 0x4ba   : > { %4543 = vpow2.f32 %v1380_v24  ;;  %v1340_v26 = vsub.f32 %v5531_v54, %v1300_v41  ;;  %v1341_v17 = vsub.f32 %v5533_v48, %v1300_v41 }
 0x4bb   : > { %4545 = vpow2.f32 %v1382_v52 }
 0x4bc   : > { %v4536_v2 = vpop.eup %4535  ;;  %v1384_v30 = vmul.f32 1.442695, %v1340_v26  ;;  %v1386_v43 = vmul.f32 1.442695, %v1341_v17 }
 0x4bd   : > { %v4538_v49 = vpop.eup %4537  ;;  %v1303_v0 = vpop.xlane.xlu0 %1302  ;;  %v1426_v47 = vpack.c.bf16 %v4536_v2, %v4532_v1 }
 0x4be   : > { %v1342_v50 = vsub.f32 %v5535_v20, %v1303_v0  ;;  %v1343_v21 = vsub.f32 %v5539_v51, %v1303_v0  ;;  %v1427_v56 = vpack.c.bf16 %v4538_v49, %v4534_v37  ;;  %4547 = vpow2.f32 %v1384_v30 }
 0x4bf   : > { %4549 = vpow2.f32 %v1386_v43 }
 0x4c0   : > { %v1388_v32 = vmul.f32 1.442695, %v1342_v50  ;;  %v1390_v15 = vmul.f32 1.442695, %v1343_v21  ;;  %1448 = vmatprep.subr.bf16.mxu0 %v1427_v56  ;;  %1488 = vmatprep.subr.bf16.mxu1 %v1427_v56  ;;  %v4540_v48 = vpop.eup %4539 }
 0x4c1   : > { %1449 = vmatpush1.bf16.xpose.msra.mxu0 %v1426_v47  ;;  %1489 = vmatpush1.bf16.xpose.msra.mxu1 %v1426_v47  ;;  %v1306_v54 = vpop.xlane.xlu0 %1305  ;;  %v4542_v28 = vpop.eup %4541 }
 0x4c2   : > { %4551 = vpow2.f32 %v1388_v32  ;;  %v1344_v63 = vsub.f32 %v5543_v22, %v1306_v54  ;;  %v1345_v11 = vsub.f32 %v5545_v25, %v1306_v54 }
 0x4c3   : > { %4553 = vpow2.f32 %v1390_v15 }
 0x4c4   : > { %v4544_v20 = vpop.eup %4543  ;;  %v1392_v51 = vmul.f32 1.442695, %v1344_v63  ;;  %v1394_v12 = vmul.f32 1.442695, %v1345_v11 }
 0x4c5   : > { %v4546_v36 = vpop.eup %4545  ;;  %v1309_v38 = vpop.xlane.xlu0 %1308  ;;  %v1428_v60 = vpack.c.bf16 %v4544_v20, %v4540_v48 }
 0x4c6   : > { %v1346_v34 = vsub.f32 %v5547_v55, %v1309_v38  ;;  %v1347_v24 = vsub.f32 %v5551_v61, %v1309_v38  ;;  %v1429_v52 = vpack.c.bf16 %v4546_v36, %v4542_v28  ;;  %4555 = vpow2.f32 %v1392_v51 }
 0x4c7   : > { %4557 = vpow2.f32 %v1394_v12 }
 0x4c8   : > { %v1396_v41 = vmul.f32 1.442695, %v1346_v34  ;;  %v1398_v1 = vmul.f32 1.442695, %v1347_v24  ;;  %1450 = vmatprep.subr.bf16.mxu0 %v1429_v52  ;;  %1490 = vmatprep.subr.bf16.mxu1 %v1429_v52  ;;  %v4548_v25 = vpop.eup %4547 }
 0x4c9   : > { %1451 = vmatpush1.bf16.xpose.msra.mxu0 %v1428_v60  ;;  %1491 = vmatpush1.bf16.xpose.msra.mxu1 %v1428_v60  ;;  %v1312_v22 = vpop.xlane.xlu0 %1311  ;;  %v4550_v37 = vpop.eup %4549 }
 0x4ca   : > { %4559 = vpow2.f32 %v1396_v41  ;;  %v1348_v26 = vsub.f32 %v5555_v3, %v1312_v22  ;;  %v1349_v17 = vsub.f32 %v5557_v6, %v1312_v22 }
 0x4cb   : > { %4561 = vpow2.f32 %v1398_v1 }
 0x4cc   : > { %v4552_v55 = vpop.eup %4551  ;;  %v1400_v61 = vmul.f32 1.442695, %v1348_v26  ;;  %v1402_v30 = vmul.f32 1.442695, %v1349_v17 }
 0x4cd   : > { %v4554_v2 = vpop.eup %4553  ;;  %v1315_v49 = vpop.xlane.xlu0 %1314  ;;  %v1430_v43 = vpack.c.bf16 %v4552_v55, %v4548_v25 }
 0x4ce   : > { %v1350_v0 = vsub.f32 %v5559_v8, %v1315_v49  ;;  %v1351_v47 = vsub.f32 %v5563_v27, %v1315_v49  ;;  %v1431_v50 = vpack.c.bf16 %v4554_v2, %v4550_v37  ;;  %4563 = vpow2.f32 %v1400_v61 }
 0x4cf   : > { %4565 = vpow2.f32 %v1402_v30 }
 0x4d0   : > { %v1404_v21 = vmul.f32 1.442695, %v1350_v0  ;;  %v1406_v56 = vmul.f32 1.442695, %v1351_v47  ;;  %1452 = vmatprep.subr.bf16.mxu0 %v1431_v50  ;;  %1492 = vmatprep.subr.bf16.mxu1 %v1431_v50  ;;  %v4556_v6 = vpop.eup %4555 }
 0x4d1   : > { %1453 = vmatpush1.bf16.xpose.msra.mxu0 %v1430_v43  ;;  %1493 = vmatpush1.bf16.xpose.msra.mxu1 %v1430_v43  ;;  %v1318_v3 = vpop.xlane.xlu1 %1317  ;;  %v4558_v54 = vpop.eup %4557 }
 0x4d2   : > { %4567 = vpow2.f32 %v1404_v21  ;;  %v1352_v32 = vsub.f32 %v5567_v10, %v1318_v3  ;;  %v1353_v15 = vsub.f32 %v5569_v29, %v1318_v3  ;;  %v1552_v21 = vrot.slane %v5264_v40, 4 }
 0x4d3   : > { %4569 = vpow2.f32 %v1406_v56  ;;  %v1321_v8 = vpop.xlane.xlu0 %1320  ;;  %v1551_v56 = vrot.slane %v5262_v39, 4  ;;  %v1442_v3 = vrot.slane %v5455_v53, 2 }
 0x4d4   : > { %v4560_v27 = vpop.eup %4559  ;;  %v1408_v48 = vmul.f32 1.442695, %v1352_v32  ;;  %v1410_v63 = vmul.f32 1.442695, %v1353_v15  ;;  %v1354_v11 = vsub.f32 %v5571_v31, %v1321_v8  ;;  %v1355_v28 = vsub.f32 %v5575_v16, %v1321_v8 }
 0x4d5   : > { %v4562_v20 = vpop.eup %4561  ;;  %v1432_v51 = vpack.c.bf16 %v4560_v27, %v4556_v6  ;;  %v1857_v6 = vrot.slane %v5457_v4, 4  ;;  %v1578_v32 = vsel %vm747_vm1, %v1551_v56, 0 }
 0x4d6   : > { %4571 = vpow2.f32 %v1408_v48  ;;  %v1412_v36 = vmul.f32 1.442695, %v1354_v11  ;;  %v1414_v12 = vmul.f32 1.442695, %v1355_v28  ;;  %v1433_v38 = vpack.c.bf16 %v4562_v20, %v4558_v54 }
 0x4d7   : > { %4573 = vpow2.f32 %v1410_v63 }
 0x4d8   : > { %4575 = vpow2.f32 %v1412_v36  ;;  %1454 = vmatprep.subr.bf16.mxu0 %v1433_v38  ;;  %1494 = vmatprep.subr.bf16.mxu1 %v1433_v38  ;;  %v4564_v29 = vpop.eup %4563 }
 0x4d9   : > { %4577 = vpow2.f32 %v1414_v12  ;;  %1455 = vmatpush1.bf16.xpose.msra.mxu0 %v1432_v51  ;;  %1495 = vmatpush1.bf16.xpose.msra.mxu1 %v1432_v51  ;;  %v1324_v10 = vpop.xlane.xlu1 %1323  ;;  %v4566_v16 = vpop.eup %4565 }
 0x4da   : > { %v1356_v60 = vsub.f32 %v5579_v18, %v1324_v10  ;;  %v1357_v31 = vsub.f32 %v5581_v13, %v1324_v10 }
 0x4db   : > { %v1327_v34 = vpop.xlane.xlu0 %1326 }
 0x4dc   : > { %v4568_v24 = vpop.eup %4567  ;;  %v1416_v52 = vmul.f32 1.442695, %v1356_v60  ;;  %v1418_v41 = vmul.f32 1.442695, %v1357_v31  ;;  %v1358_v1 = vsub.f32 %v5583_v14, %v1327_v34  ;;  %v1359_v22 = vsub.f32 %v5587_v35, %v1327_v34 }
 0x4dd   : > { %v4570_v25 = vpop.eup %4569  ;;  %v1434_v26 = vpack.c.bf16 %v4568_v24, %v4564_v29 }
 0x4de   : > { %4579 = vpow2.f32 %v1416_v52  ;;  %v1420_v17 = vmul.f32 1.442695, %v1358_v1  ;;  %v1422_v37 = vmul.f32 1.442695, %v1359_v22  ;;  %v1435_v55 = vpack.c.bf16 %v4570_v25, %v4566_v16 }
 0x4df   : > { %4581 = vpow2.f32 %v1418_v41  ;;  %v1543_v15 = vpop.trf.xlu1 }
 0x4e0   : > { %v4572_v61 = vpop.eup %4571  ;;  %4583 = vpow2.f32 %v1420_v17  ;;  %1456 = vmatprep.subr.bf16.mxu0 %v1435_v55  ;;  %1496 = vmatprep.subr.bf16.mxu1 %v1435_v55 }
 0x4e1   : > { %v4574_v18 = vpop.eup %4573  ;;  %4585 = vpow2.f32 %v1422_v37  ;;  %1457 = vmatpush1.bf16.xpose.msra.mxu0 %v1434_v26  ;;  %1497 = vmatpush1.bf16.xpose.msra.mxu1 %v1434_v26 }
 0x4e2   : > { %v4576_v13 = vpop.eup %4575 }
 0x4e3   : > { %v4578_v2 = vpop.eup %4577  ;;  %v1436_v14 = vpack.c.bf16 %v4576_v13, %v4572_v61  ;;  %v1544_v54 = vpop.trf.xlu1 }
 0x4e4   : > { %v1437_v30 = vpack.c.bf16 %v4578_v2, %v4574_v18 }
 0x4e6   : > { %1458 = vmatprep.subr.bf16.mxu0 %v1437_v30  ;;  %1498 = vmatprep.subr.bf16.mxu1 %v1437_v30 }
 0x4e7   : > { %v1545_v8 = vpop.trf.xlu1 }
 0x4e8   : > { %v4580_v35 = vpop.eup %4579 }
 0x4e9   : > { %v4582_v49 = vpop.eup %4581  ;;  %1459 = vmatpush1.bf16.xpose.msra.mxu0 %v1436_v14  ;;  %1499 = vmatpush1.bf16.xpose.msra.mxu1 %v1436_v14 }
 0x4ea   : > { %v4584_v43 = vpop.eup %4583 }
 0x4eb   : > { %v4586_v0 = vpop.eup %4585  ;;  %v1438_v47 = vpack.c.bf16 %v4584_v43, %v4580_v35  ;;  %v1546_v27 = vpop.trf.xlu1 }
 0x4ec   : > { %v1439_v50 = vpack.c.bf16 %v4586_v0, %v4582_v49 }
 0x4ee   : > { %1460 = vmatprep.subr.bf16.mxu0 %v1439_v50  ;;  %1500 = vmatprep.subr.bf16.mxu1 %v1439_v50 }
 0x4ef   : > { %v1547_v48 = vpop.trf.xlu1 }
 0x4f1   : > { %1461 = vmatpush1.bf16.xpose.msra.mxu0 %v1438_v47  ;;  %1501 = vmatpush1.bf16.xpose.msra.mxu1 %v1438_v47 }
 0x4f2   : > { %4275 = vmatprep.subr.msk.bf16.mxu0 %vm747_vm1, %v1552_v21 }
 0x4f3   : > { %v1548_v63 = vpop.trf.xlu1 }
 0x4f7   : > { %v1549_v11 = vpop.trf.xlu1 }
 0x4f8   : > { %1479 = vmatmul.mubr.bf16.vlgmr.msra.gmra.mrb[52].mxu0 %v1442_v3  ;;  %1519 = vmatmul.mubr.bf16.vlgmr.msra.gmra.mrb[40].mxu1 %v5082_v57 }
 0x4f9   : > { %1584 = vmatpush1.bf16.msra.mxu0 %v1578_v32  ;;  %1892 = vmatprep.mubr.bf16.mxu1 %v1857_v6 }
 0x4fa   : > { %1615 = vmatprep.mubr.bf16.mxu0 %v5081_v7 }
 0x4fb   : > { %v1550_v28 = vpop.trf.xlu1 }
 0x500   : > { %4276 = vmatmul.mubr.msk.bf16.vlgmr.msra.gmra.mrb[56].mxu0 %vm722_vm2, %v1543_v15 }
 0x501   : > { %1625 = vmatprep.mubr.bf16.mxu0 %v5081_v7 }
 0x508   : > { %4277 = vmatmul.mubr.msk.bf16.gmra.mrb[60].mxu0 %vm722_vm2, %v1544_v54 }
 0x509   : > { %1635 = vmatprep.mubr.bf16.mxu0 %v5081_v7 }
 0x510   : > { %4278 = vmatmul.mubr.msk.bf16.gmra.mrb[64].mxu0 %vm722_vm2, %v1545_v8 }
 0x511   : > { %1645 = vmatprep.mubr.bf16.mxu0 %v5081_v7 }
 0x518   : > { %4279 = vmatmul.mubr.msk.bf16.gmra.mrb[68].mxu0 %vm722_vm2, %v1546_v27 }
 0x519   : > { %1655 = vmatprep.mubr.bf16.mxu0 %v5081_v7 }
 0x520   : > { %4280 = vmatmul.mubr.msk.bf16.gmra.mrb[72].mxu0 %vm722_vm2, %v1547_v48 }
 0x521   : > { %1665 = vmatprep.mubr.bf16.mxu0 %v5081_v7 }
 0x528   : > { %4281 = vmatmul.mubr.msk.bf16.gmra.mrb[76].mxu0 %vm722_vm2, %v1548_v63 }
 0x529   : > { %1675 = vmatprep.mubr.bf16.mxu0 %v5081_v7 }
 0x530   : > { %4282 = vmatmul.mubr.msk.bf16.gmra.mrb[80].mxu0 %vm722_vm2, %v1549_v11 }
 0x531   : > { %1685 = vmatprep.mubr.bf16.mxu0 %v5081_v7 }
 0x538   : > { %4283 = vmatmul.mubr.msk.bf16.gmra.mrb[84].mxu0 %vm722_vm2, %v1550_v28 }
 0x539   : > { %1932 = vmatprep.mubr.bf16.mxu0 %v5082_v57 }
 0x5cb   : > { %v1480_v20 = vpop.f32.mrb[52].mxu0  ;;  %v1520_v51 = vpop.f32.mrb[40].mxu1 }
 0x5cc   : > { %4587 = vrcp.f32 %v1520_v51  ;;  %v1482_v36 = vpop.f32.mrb[53].mxu0  ;;  %v1522_v12 = vpop.f32.mrb[41].mxu1 }
 0x5cd   : > { %v1483_v38 = vpop.f32.mrb[54].mxu0  ;;  %v1523_v10 = vpop.f32.mrb[42].mxu1 }
 0x5ce   : > { %v1484_v29 = vpop.f32.mrb[55].mxu0  ;;  %v1524_v60 = vpop.f32.mrb[43].mxu1 }
 0x5d3   : > { %v5648_v31 = vpop.f32.mrb[56].mxu0 }
 0x5d4   : > { %v5650_v16 = vpop.f32.mrb[57].mxu0 }
 0x5d5   : > { %v5652_v34 = vpop.f32.mrb[58].mxu0  ;;  %v1696_v24 = vmax.f32 %v5648_v31, %v5650_v16 }
 0x5d6   : > { %v4588_v52 = vpop.eup %4587  ;;  %v5656_v41 = vpop.f32.mrb[59].mxu0 }
 0x5d7   : > { %v1530_v1 = vrot.slane %v4588_v52, %v5492_v62  ;;  %1697 = vmax.xlane.f32.xlu0 %v1696_v24  ;;  %v1699_v22 = vmax.f32 %v5652_v34, %v5656_v41 }
 0x5d9   : > { %v1531_v25 = vmul.f32 %v1530_v1, %v1480_v20 }
 0x5db   : > { %1532 = vst [vmem:[#allocation2 + $0x4] sm:$0xf] %v1531_v25  ;;  %1700 = vmax.xlane.f32.xlu0 %v1699_v22  ;;  %v5661_v26 = vpop.f32.mrb[60].mxu0 }
 0x5dc   : > { %v5663_v17 = vpop.f32.mrb[61].mxu0 }
 0x5dd   : > { %v5665_v37 = vpop.f32.mrb[62].mxu0  ;;  %v1702_v55 = vmax.f32 %v5661_v26, %v5663_v17 }
 0x5de   : > { %v5669_v61 = vpop.f32.mrb[63].mxu0 }
 0x5df   : > { %1703 = vmax.xlane.f32.xlu0 %v1702_v55  ;;  %v1705_v18 = vmax.f32 %v5665_v37, %v5669_v61  ;;  %v1947_v55 = vrot.slane %v5259_v33, 6 }
 0x5e3   : > { %1706 = vmax.xlane.f32.xlu0 %v1705_v18  ;;  %v5673_v13 = vpop.f32.mrb[64].mxu0 }
 0x5e4   : > { %v5675_v2 = vpop.f32.mrb[65].mxu0 }
 0x5e5   : > { %v5677_v14 = vpop.f32.mrb[66].mxu0  ;;  %v1708_v30 = vmax.f32 %v5673_v13, %v5675_v2 }
 0x5e6   : > { %v5681_v35 = vpop.f32.mrb[67].mxu0 }
 0x5e7   : > { %1709 = vmax.xlane.f32.xlu0 %v1708_v30  ;;  %v1711_v49 = vmax.f32 %v5677_v14, %v5681_v35 }
 0x5eb   : > { %1712 = vmax.xlane.f32.xlu0 %v1711_v49  ;;  %v5685_v43 = vpop.f32.mrb[68].mxu0 }
 0x5ec   : > { %v5687_v0 = vpop.f32.mrb[69].mxu0 }
 0x5ed   : > { %v5689_v47 = vpop.f32.mrb[70].mxu0  ;;  %v1714_v50 = vmax.f32 %v5685_v43, %v5687_v0 }
 0x5ee   : > { %v5693_v21 = vpop.f32.mrb[71].mxu0 }
 0x5ef   : > { %1715 = vmax.xlane.f32.xlu0 %v1714_v50  ;;  %v1717_v56 = vmax.f32 %v5689_v47, %v5693_v21 }
 0x5f3   : > { %1718 = vmax.xlane.f32.xlu0 %v1717_v56  ;;  %v5697_v3 = vpop.f32.mrb[72].mxu0 }
 0x5f4   : > { %v5699_v6 = vpop.f32.mrb[73].mxu0 }
 0x5f5   : > { %v5701_v32 = vpop.f32.mrb[74].mxu0  ;;  %v1720_v15 = vmax.f32 %v5697_v3, %v5699_v6 }
 0x5f6   : > { %v5705_v54 = vpop.f32.mrb[75].mxu0 }
 0x5f7   : > { %1721 = vmax.xlane.f32.xlu0 %v1720_v15  ;;  %v1723_v8 = vmax.f32 %v5701_v32, %v5705_v54 }
 0x5fb   : > { %1724 = vmax.xlane.f32.xlu0 %v1723_v8  ;;  %v5709_v27 = vpop.f32.mrb[76].mxu0 }
 0x5fc   : > { %v5711_v48 = vpop.f32.mrb[77].mxu0 }
 0x5fd   : > { %v5713_v63 = vpop.f32.mrb[78].mxu0  ;;  %v1726_v11 = vmax.f32 %v5709_v27, %v5711_v48 }
 0x5fe   : > { %v5717_v28 = vpop.f32.mrb[79].mxu0 }
 0x5ff   : > { %1727 = vmax.xlane.f32.xlu0 %v1726_v11  ;;  %v1729_v20 = vmax.f32 %v5713_v63, %v5717_v28 }
 0x601   : > { %1730 = vmax.xlane.f32.xlu1 %v1729_v20 }
 0x603   : > { %v5721_v51 = vpop.f32.mrb[80].mxu0 }
 0x604   : > { %v5723_v36 = vpop.f32.mrb[81].mxu0 }
 0x605   : > { %v5725_v12 = vpop.f32.mrb[82].mxu0  ;;  %v1732_v38 = vmax.f32 %v5721_v51, %v5723_v36 }
 0x606   : > { %v5729_v10 = vpop.f32.mrb[83].mxu0 }
 0x607   : > { %1733 = vmax.xlane.f32.xlu0 %v1732_v38  ;;  %v1735_v29 = vmax.f32 %v5725_v12, %v5729_v10 }
 0x60b   : > { %1736 = vmax.xlane.f32.xlu0 %v1735_v29  ;;  %v5733_v60 = vpop.f32.mrb[84].mxu0 }
 0x60c   : > { %v5735_v24 = vpop.f32.mrb[85].mxu0 }
 0x60d   : > { %v5737_v52 = vpop.f32.mrb[86].mxu0  ;;  %v1738_v1 = vmax.f32 %v5733_v60, %v5735_v24 }
 0x60e   : > { %v5741_v22 = vpop.f32.mrb[87].mxu0 }
 0x60f   : > { %1739 = vmax.xlane.f32.xlu0 %v1738_v1  ;;  %v1741_v25 = vmax.f32 %v5737_v52, %v5741_v22 }
 0x613   : > { %1742 = vmax.xlane.f32.xlu0 %v1741_v25 }
 0x640   : > { %1949 = vxpose.xlu0.c.b16.start.end [1/1] (short) %v1947_v55, 128 }
 0x664   : > { %v1698_v18 = vpop.xlane.xlu0 %1697 }
 0x665   : > { %v1744_v30 = vsub.f32 %v5648_v31, %v1698_v18  ;;  %v1745_v49 = vsub.f32 %v5650_v16, %v1698_v18 }
 0x667   : > { %v1776_v50 = vmul.f32 1.442695, %v1744_v30  ;;  %v1778_v56 = vmul.f32 1.442695, %v1745_v49 }
 0x668   : > { %v1701_v15 = vpop.xlane.xlu0 %1700 }
 0x669   : > { %v1746_v8 = vsub.f32 %v5652_v34, %v1701_v15  ;;  %v1747_v11 = vsub.f32 %v5656_v41, %v1701_v15  ;;  %4589 = vpow2.f32 %v1776_v50 }
 0x66a   : > { %4591 = vpow2.f32 %v1778_v56 }
 0x66b   : > { %v1780_v20 = vmul.f32 1.442695, %v1746_v8  ;;  %v1782_v38 = vmul.f32 1.442695, %v1747_v11 }
 0x66c   : > { %v1704_v29 = vpop.xlane.xlu0 %1703 }
 0x66d   : > { %4593 = vpow2.f32 %v1780_v20  ;;  %v1748_v33 = vsub.f32 %v5661_v26, %v1704_v29  ;;  %v1749_v1 = vsub.f32 %v5663_v17, %v1704_v29 }
 0x66e   : > { %4595 = vpow2.f32 %v1782_v38 }
 0x66f   : > { %v1784_v31 = vmul.f32 1.442695, %v1748_v33  ;;  %v1786_v16 = vmul.f32 1.442695, %v1749_v1 }
 0x670   : > { %v1707_v25 = vpop.xlane.xlu0 %1706 }
 0x671   : > { %v1750_v55 = vsub.f32 %v5665_v37, %v1707_v25  ;;  %v1751_v34 = vsub.f32 %v5669_v61, %v1707_v25  ;;  %4597 = vpow2.f32 %v1784_v31 }
 0x672   : > { %4599 = vpow2.f32 %v1786_v16 }
 0x673   : > { %v1788_v41 = vmul.f32 1.442695, %v1750_v55  ;;  %v1790_v18 = vmul.f32 1.442695, %v1751_v34  ;;  %v4590_v49 = vpop.eup %4589 }
 0x674   : > { %v1710_v30 = vpop.xlane.xlu0 %1709  ;;  %v4592_v17 = vpop.eup %4591 }
 0x675   : > { %4601 = vpow2.f32 %v1788_v41  ;;  %v1752_v50 = vsub.f32 %v5673_v13, %v1710_v30  ;;  %v1753_v26 = vsub.f32 %v5675_v2, %v1710_v30 }
 0x676   : > { %4603 = vpow2.f32 %v1790_v18 }
 0x677   : > { %v4594_v56 = vpop.eup %4593  ;;  %v1792_v15 = vmul.f32 1.442695, %v1752_v50  ;;  %v1794_v11 = vmul.f32 1.442695, %v1753_v26 }
 0x678   : > { %v4596_v8 = vpop.eup %4595  ;;  %v1713_v37 = vpop.xlane.xlu0 %1712  ;;  %v1840_v20 = vpack.c.bf16 %v4594_v56, %v4590_v49 }
 0x679   : > { %v1754_v61 = vsub.f32 %v5677_v14, %v1713_v37  ;;  %v1755_v38 = vsub.f32 %v5681_v35, %v1713_v37  ;;  %v1841_v29 = vpack.c.bf16 %v4596_v8, %v4592_v17  ;;  %4605 = vpow2.f32 %v1792_v15 }
 0x67a   : > { %4607 = vpow2.f32 %v1794_v11 }
 0x67b   : > { %v1796_v33 = vmul.f32 1.442695, %v1754_v61  ;;  %v1798_v1 = vmul.f32 1.442695, %v1755_v38  ;;  %1860 = vmatprep.subr.bf16.mxu1 %v1841_v29  ;;  %1900 = vmatprep.subr.bf16.mxu0 %v1841_v29  ;;  %v4598_v2 = vpop.eup %4597 }
 0x67c   : > { %1861 = vmatpush1.bf16.xpose.msra.mxu1 %v1840_v20  ;;  %1901 = vmatpush1.bf16.xpose.msra.mxu0 %v1840_v20  ;;  %v1716_v13 = vpop.xlane.xlu0 %1715  ;;  %v4600_v25 = vpop.eup %4599 }
 0x67d   : > { %4609 = vpow2.f32 %v1796_v33  ;;  %v1756_v31 = vsub.f32 %v5685_v43, %v1716_v13  ;;  %v1757_v16 = vsub.f32 %v5687_v0, %v1716_v13 }
 0x67e   : > { %4611 = vpow2.f32 %v1798_v1 }
 0x67f   : > { %v4602_v14 = vpop.eup %4601  ;;  %v1800_v35 = vmul.f32 1.442695, %v1756_v31  ;;  %v1802_v34 = vmul.f32 1.442695, %v1757_v16 }
 0x680   : > { %v4604_v55 = vpop.eup %4603  ;;  %v1719_v41 = vpop.xlane.xlu0 %1718  ;;  %v1842_v18 = vpack.c.bf16 %v4602_v14, %v4598_v2 }
 0x681   : > { %v1758_v30 = vsub.f32 %v5689_v47, %v1719_v41  ;;  %v1759_v49 = vsub.f32 %v5693_v21, %v1719_v41  ;;  %v1843_v50 = vpack.c.bf16 %v4604_v55, %v4600_v25  ;;  %4613 = vpow2.f32 %v1800_v35 }
 0x682   : > { %4615 = vpow2.f32 %v1802_v34 }
 0x683   : > { %v1804_v26 = vmul.f32 1.442695, %v1758_v30  ;;  %v1806_v17 = vmul.f32 1.442695, %v1759_v49  ;;  %1862 = vmatprep.subr.bf16.mxu1 %v1843_v50  ;;  %1902 = vmatprep.subr.bf16.mxu0 %v1843_v50  ;;  %v4606_v0 = vpop.eup %4605 }
 0x684   : > { %1863 = vmatpush1.bf16.xpose.msra.mxu1 %v1842_v18  ;;  %1903 = vmatpush1.bf16.xpose.msra.mxu0 %v1842_v18  ;;  %v1722_v43 = vpop.xlane.xlu0 %1721  ;;  %v4608_v8 = vpop.eup %4607 }
 0x685   : > { %4617 = vpow2.f32 %v1804_v26  ;;  %v1760_v56 = vsub.f32 %v5697_v3, %v1722_v43  ;;  %v1761_v15 = vsub.f32 %v5699_v6, %v1722_v43 }
 0x686   : > { %4619 = vpow2.f32 %v1806_v17 }
 0x687   : > { %v4610_v47 = vpop.eup %4609  ;;  %v1808_v21 = vmul.f32 1.442695, %v1760_v56  ;;  %v1810_v37 = vmul.f32 1.442695, %v1761_v15 }
 0x688   : > { %v4612_v11 = vpop.eup %4611  ;;  %v1725_v20 = vpop.xlane.xlu0 %1724  ;;  %v1844_v61 = vpack.c.bf16 %v4610_v47, %v4606_v0 }
 0x689   : > { %v1762_v38 = vsub.f32 %v5701_v32, %v1725_v20  ;;  %v1763_v29 = vsub.f32 %v5705_v54, %v1725_v20  ;;  %v1845_v33 = vpack.c.bf16 %v4612_v11, %v4608_v8  ;;  %4621 = vpow2.f32 %v1808_v21 }
 0x68a   : > { %4623 = vpow2.f32 %v1810_v37 }
 0x68b   : > { %v1812_v1 = vmul.f32 1.442695, %v1762_v38  ;;  %v1814_v13 = vmul.f32 1.442695, %v1763_v29  ;;  %1864 = vmatprep.subr.bf16.mxu1 %v1845_v33  ;;  %1904 = vmatprep.subr.bf16.mxu0 %v1845_v33  ;;  %v4614_v6 = vpop.eup %4613 }
 0x68c   : > { %1865 = vmatpush1.bf16.xpose.msra.mxu1 %v1844_v61  ;;  %1905 = vmatpush1.bf16.xpose.msra.mxu0 %v1844_v61  ;;  %v1728_v3 = vpop.xlane.xlu0 %1727  ;;  %v4616_v16 = vpop.eup %4615 }
 0x68d   : > { %4625 = vpow2.f32 %v1812_v1  ;;  %v1764_v2 = vsub.f32 %v5709_v27, %v1728_v3  ;;  %v1765_v31 = vsub.f32 %v5711_v48, %v1728_v3 }
 0x68e   : > { %4627 = vpow2.f32 %v1814_v13  ;;  %v1731_v32 = vpop.xlane.xlu1 %1730 }
 0x68f   : > { %v4618_v54 = vpop.eup %4617  ;;  %v1816_v25 = vmul.f32 1.442695, %v1764_v2  ;;  %v1818_v14 = vmul.f32 1.442695, %v1765_v31  ;;  %v1766_v35 = vsub.f32 %v5713_v63, %v1731_v32  ;;  %v1767_v55 = vsub.f32 %v5717_v28, %v1731_v32 }
 0x690   : > { %v4620_v34 = vpop.eup %4619  ;;  %v1846_v41 = vpack.c.bf16 %v4618_v54, %v4614_v6 }
 0x691   : > { %4629 = vpow2.f32 %v1816_v25  ;;  %v1820_v18 = vmul.f32 1.442695, %v1766_v35  ;;  %v1822_v30 = vmul.f32 1.442695, %v1767_v55  ;;  %v1847_v49 = vpack.c.bf16 %v4620_v34, %v4616_v16 }
 0x692   : > { %4631 = vpow2.f32 %v1818_v14 }
 0x693   : > { %4633 = vpow2.f32 %v1820_v18  ;;  %1866 = vmatprep.subr.bf16.mxu1 %v1847_v49  ;;  %1906 = vmatprep.subr.bf16.mxu0 %v1847_v49  ;;  %v4622_v48 = vpop.eup %4621  ;;  %v1966_v18 = vrot.slane %v5264_v40, 6  ;;  %v1856_v49 = vrot.slane %v5455_v53, 4 }
 0x694   : > { %4635 = vpow2.f32 %v1822_v30  ;;  %1867 = vmatpush1.bf16.xpose.msra.mxu1 %v1846_v41  ;;  %1907 = vmatpush1.bf16.xpose.msra.mxu0 %v1846_v41  ;;  %v1734_v27 = vpop.xlane.xlu0 %1733  ;;  %v4624_v28 = vpop.eup %4623  ;;  %v1965_v30 = vrot.slane %v5262_v39, 6 }
 0x695   : > { %v1768_v50 = vsub.f32 %v5721_v51, %v1734_v27  ;;  %v1769_v63 = vsub.f32 %v5723_v36, %v1734_v27  ;;  %v2271_v27 = vrot.slane %v5457_v4, 6 }
 0x697   : > { %v4626_v26 = vpop.eup %4625  ;;  %v1824_v17 = vmul.f32 1.442695, %v1768_v50  ;;  %v1826_v0 = vmul.f32 1.442695, %v1769_v63 }
 0x698   : > { %v4628_v43 = vpop.eup %4627  ;;  %v1737_v56 = vpop.xlane.xlu0 %1736  ;;  %v1848_v15 = vpack.c.bf16 %v4626_v26, %v4622_v48  ;;  %v1992_v48 = vsel %vm747_vm1, %v1965_v30, 0 }
 0x699   : > { %v1770_v8 = vsub.f32 %v5725_v12, %v1737_v56  ;;  %v1771_v47 = vsub.f32 %v5729_v10, %v1737_v56  ;;  %v1849_v21 = vpack.c.bf16 %v4628_v43, %v4624_v28  ;;  %4637 = vpow2.f32 %v1824_v17 }
 0x69a   : > { %4639 = vpow2.f32 %v1826_v0 }
 0x69b   : > { %v4630_v11 = vpop.eup %4629  ;;  %v1828_v37 = vmul.f32 1.442695, %v1770_v8  ;;  %v1830_v20 = vmul.f32 1.442695, %v1771_v47  ;;  %1868 = vmatprep.subr.bf16.mxu1 %v1849_v21  ;;  %1908 = vmatprep.subr.bf16.mxu0 %v1849_v21 }
 0x69c   : > { %v4632_v51 = vpop.eup %4631  ;;  %1869 = vmatpush1.bf16.xpose.msra.mxu1 %v1848_v15  ;;  %1909 = vmatpush1.bf16.xpose.msra.mxu0 %v1848_v15  ;;  %v1740_v36 = vpop.xlane.xlu0 %1739 }
 0x69d   : > { %v4634_v61 = vpop.eup %4633  ;;  %4641 = vpow2.f32 %v1828_v37  ;;  %v1772_v38 = vsub.f32 %v5733_v60, %v1740_v36  ;;  %v1773_v12 = vsub.f32 %v5735_v24, %v1740_v36 }
 0x69e   : > { %v4636_v29 = vpop.eup %4635  ;;  %4643 = vpow2.f32 %v1830_v20  ;;  %v1850_v10 = vpack.c.bf16 %v4634_v61, %v4630_v11 }
 0x69f   : > { %v1832_v33 = vmul.f32 1.442695, %v1772_v38  ;;  %v1851_v1 = vpack.c.bf16 %v4636_v29, %v4632_v51  ;;  %v1834_v13 = vmul.f32 1.442695, %v1773_v12 }
 0x6a0   : > { %v1743_v3 = vpop.xlane.xlu0 %1742 }
 0x6a1   : > { %v1774_v6 = vsub.f32 %v5737_v52, %v1743_v3  ;;  %v1775_v2 = vsub.f32 %v5741_v22, %v1743_v3  ;;  %1870 = vmatprep.subr.bf16.mxu1 %v1851_v1  ;;  %1910 = vmatprep.subr.bf16.mxu0 %v1851_v1  ;;  %4645 = vpow2.f32 %v1832_v33 }
 0x6a2   : > { %4647 = vpow2.f32 %v1834_v13 }
 0x6a3   : > { %v1836_v31 = vmul.f32 1.442695, %v1774_v6  ;;  %v1838_v16 = vmul.f32 1.442695, %v1775_v2  ;;  %v4638_v60 = vpop.eup %4637 }
 0x6a4   : > { %1871 = vmatpush1.bf16.xpose.msra.mxu1 %v1850_v10  ;;  %1911 = vmatpush1.bf16.xpose.msra.mxu0 %v1850_v10  ;;  %v4640_v24 = vpop.eup %4639 }
 0x6a5   : > { %4649 = vpow2.f32 %v1836_v31 }
 0x6a6   : > { %4651 = vpow2.f32 %v1838_v16  ;;  %v1957_v40 = vpop.trf.xlu0 }
 0x6a7   : > { %v4642_v32 = vpop.eup %4641 }
 0x6a8   : > { %v4644_v54 = vpop.eup %4643  ;;  %v1852_v25 = vpack.c.bf16 %v4642_v32, %v4638_v60 }
 0x6a9   : > { %v1853_v14 = vpack.c.bf16 %v4644_v54, %v4640_v24 }
 0x6aa   : > { %v1958_v50 = vpop.trf.xlu0 }
 0x6ab   : > { %1872 = vmatprep.subr.bf16.mxu1 %v1853_v14  ;;  %1912 = vmatprep.subr.bf16.mxu0 %v1853_v14  ;;  %v4646_v52 = vpop.eup %4645 }
 0x6ac   : > { %1873 = vmatpush1.bf16.xpose.msra.mxu1 %v1852_v25  ;;  %1913 = vmatpush1.bf16.xpose.msra.mxu0 %v1852_v25  ;;  %v4648_v22 = vpop.eup %4647 }
 0x6ae   : > { %v1959_v39 = vpop.trf.xlu0 }
 0x6af   : > { %v4650_v35 = vpop.eup %4649 }
 0x6b0   : > { %v4652_v55 = vpop.eup %4651  ;;  %v1854_v34 = vpack.c.bf16 %v4650_v35, %v4646_v52 }
 0x6b1   : > { %v1855_v41 = vpack.c.bf16 %v4652_v55, %v4648_v22 }
 0x6b2   : > { %v1960_v4 = vpop.trf.xlu0 }
 0x6b3   : > { %1874 = vmatprep.subr.bf16.mxu1 %v1855_v41  ;;  %1914 = vmatprep.subr.bf16.mxu0 %v1855_v41 }
 0x6b4   : > { %1875 = vmatpush1.bf16.xpose.msra.mxu1 %v1854_v34  ;;  %1915 = vmatpush1.bf16.xpose.msra.mxu0 %v1854_v34 }
 0x6b5   : > { %4284 = vmatprep.subr.msk.bf16.mxu1 %vm747_vm1, %v1966_v18 }
 0x6b6   : > { %v1961_v63 = vpop.trf.xlu0 }
 0x6ba   : > { %v1962_v28 = vpop.trf.xlu0 }
 0x6bb   : > { %1893 = vmatmul.mubr.bf16.vlgmr.msra.gmra.mrb[44].mxu1 %v1856_v49  ;;  %1933 = vmatmul.mubr.bf16.vlgmr.msra.gmra.mrb[88].mxu0 %v5082_v57 }
 0x6bc   : > { %1998 = vmatpush1.bf16.msra.mxu1 %v1992_v48  ;;  %2306 = vmatprep.mubr.bf16.mxu0 %v2271_v27  ;;  %v593_v48 = vld [vmem:[%s6673_s3 + $0x10] sm:$0xff] }
 0x6bd   : > { %2029 = vmatprep.mubr.bf16.mxu1 %v5081_v7 }
 0x6be   : > { %v1963_v26 = vpop.trf.xlu0 }
 0x6c2   : > { %v1964_v17 = vpop.trf.xlu0 }
 0x6c3   : > { %4285 = vmatmul.mubr.msk.bf16.vlgmr.msra.gmra.mrb[48].mxu1 %vm722_vm2, %v1957_v40 }
 0x6c4   : > { %2039 = vmatprep.mubr.bf16.mxu1 %v5081_v7 }
 0x6cb   : > { %4286 = vmatmul.mubr.msk.bf16.gmra.mrb[52].mxu1 %vm722_vm2, %v1958_v50 }
 0x6cc   : > { %2049 = vmatprep.mubr.bf16.mxu1 %v5081_v7 }
 0x6d3   : > { %4287 = vmatmul.mubr.msk.bf16.gmra.mrb[56].mxu1 %vm722_vm2, %v1959_v39 }
 0x6d4   : > { %2059 = vmatprep.mubr.bf16.mxu1 %v5081_v7 }
 0x6db   : > { %4288 = vmatmul.mubr.msk.bf16.gmra.mrb[60].mxu1 %vm722_vm2, %v1960_v4 }
 0x6dc   : > { %2069 = vmatprep.mubr.bf16.mxu1 %v5081_v7 }
 0x6e3   : > { %4289 = vmatmul.mubr.msk.bf16.gmra.mrb[64].mxu1 %vm722_vm2, %v1961_v63 }
 0x6e4   : > { %2079 = vmatprep.mubr.bf16.mxu1 %v5081_v7 }
 0x6eb   : > { %4290 = vmatmul.mubr.msk.bf16.gmra.mrb[68].mxu1 %vm722_vm2, %v1962_v28 }
 0x6ec   : > { %2089 = vmatprep.mubr.bf16.mxu1 %v5081_v7 }
 0x6f3   : > { %4291 = vmatmul.mubr.msk.bf16.gmra.mrb[72].mxu1 %vm722_vm2, %v1963_v26  ;;  %v594_v26 = vld [vmem:[%s6673_s3 + $0x18] sm:$0xff] }
 0x6f4   : > { %2099 = vmatprep.mubr.bf16.mxu1 %v5081_v7 }
 0x6fb   : > { %4292 = vmatmul.mubr.msk.bf16.gmra.mrb[76].mxu1 %vm722_vm2, %v1964_v17 }
 0x6fc   : > { %2346 = vmatprep.mubr.bf16.mxu1 %v5082_v57 }
 0x78e   : > { %v1894_v43 = vpop.f32.mrb[44].mxu1  ;;  %v1934_v0 = vpop.f32.mrb[88].mxu0 }
 0x78f   : > { %4653 = vrcp.f32 %v1934_v0  ;;  %v1896_v56 = vpop.f32.mrb[45].mxu1  ;;  %v1936_v15 = vpop.f32.mrb[89].mxu0 }
 0x790   : > { %v1897_v8 = vpop.f32.mrb[46].mxu1  ;;  %v1937_v47 = vpop.f32.mrb[90].mxu0 }
 0x791   : > { %v1898_v21 = vpop.f32.mrb[47].mxu1  ;;  %v1938_v11 = vpop.f32.mrb[91].mxu0 }
 0x796   : > { %v5802_v37 = vpop.f32.mrb[48].mxu1 }
 0x797   : > { %v5804_v20 = vpop.f32.mrb[49].mxu1 }
 0x798   : > { %v5806_v51 = vpop.f32.mrb[50].mxu1  ;;  %v2110_v36 = vmax.f32 %v5802_v37, %v5804_v20 }
 0x799   : > { %v4654_v61 = vpop.eup %4653  ;;  %v5810_v38 = vpop.f32.mrb[51].mxu1 }
 0x79a   : > { %v1944_v12 = vrot.slane %v4654_v61, %v5492_v62  ;;  %2111 = vmax.xlane.f32.xlu1 %v2110_v36  ;;  %v2113_v29 = vmax.f32 %v5806_v51, %v5810_v38 }
 0x79c   : > { %v1945_v10 = vmul.f32 %v1944_v12, %v1894_v43 }
 0x79e   : > { %1946 = vst [vmem:[#allocation2 + $0x8] sm:$0xf] %v1945_v10  ;;  %2114 = vmax.xlane.f32.xlu1 %v2113_v29  ;;  %v5815_v33 = vpop.f32.mrb[52].mxu1  ;;  %v416_v29 = vld [vmem:[%s6675_s5 + $0x18] sm:$0xff]  ;;  %v415_v10 = vld [vmem:[%s6675_s5 + $0x10] sm:$0xff] }
 0x79f   : > { %v5817_v1 = vpop.f32.mrb[53].mxu1 }
 0x7a0   : > { %v5819_v13 = vpop.f32.mrb[54].mxu1  ;;  %v2116_v3 = vmax.f32 %v5815_v33, %v5817_v1 }
 0x7a1   : > { %v5823_v6 = vpop.f32.mrb[55].mxu1 }
 0x7a2   : > { %2117 = vmax.xlane.f32.xlu1 %v2116_v3  ;;  %v2119_v2 = vmax.f32 %v5819_v13, %v5823_v6 }
 0x7a6   : > { %2120 = vmax.xlane.f32.xlu1 %v2119_v2  ;;  %v5827_v31 = vpop.f32.mrb[56].mxu1 }
 0x7a7   : > { %v5829_v16 = vpop.f32.mrb[57].mxu1 }
 0x7a8   : > { %v5831_v60 = vpop.f32.mrb[58].mxu1  ;;  %v2122_v24 = vmax.f32 %v5827_v31, %v5829_v16 }
 0x7a9   : > { %v5835_v32 = vpop.f32.mrb[59].mxu1 }
 0x7aa   : > { %2123 = vmax.xlane.f32.xlu1 %v2122_v24  ;;  %v2125_v54 = vmax.f32 %v5831_v60, %v5835_v32 }
 0x7ae   : > { %2126 = vmax.xlane.f32.xlu1 %v2125_v54  ;;  %v5839_v25 = vpop.f32.mrb[60].mxu1 }
 0x7af   : > { %v5841_v14 = vpop.f32.mrb[61].mxu1 }
 0x7b0   : > { %v2128_v52 = vmax.f32 %v5839_v25, %v5841_v14  ;;  %v5845_v22 = vpop.f32.mrb[62].mxu1 }
 0x7b1   : > { %v5847_v35 = vpop.f32.mrb[63].mxu1 }
 0x7b2   : > { %2129 = vmax.xlane.f32.xlu0 %v2128_v52  ;;  %v2131_v55 = vmax.f32 %v5845_v22, %v5847_v35 }
 0x7b6   : > { %v5851_v34 = vpop.f32.mrb[64].mxu1 }
 0x7b7   : > { %v5853_v41 = vpop.f32.mrb[65].mxu1 }
 0x7b8   : > { %v5855_v18 = vpop.f32.mrb[66].mxu1  ;;  %v2134_v30 = vmax.f32 %v5851_v34, %v5853_v41 }
 0x7b9   : > { %v5859_v49 = vpop.f32.mrb[67].mxu1 }
 0x7ba   : > { %v2137_v27 = vmax.f32 %v5855_v18, %v5859_v49 }
 0x7be   : > { %v5866_v40 = vpop.f32.mrb[68].mxu1 }
 0x7bf   : > { %607 = vperm.xlu1 %4440, %v593_v48   ;;  %v5868_v50 = vpop.f32.mrb[69].mxu1 }
 0x7c0   : > { %v5870_v39 = vpop.f32.mrb[70].mxu1  ;;  %v2140_v4 = vmax.f32 %v5866_v40, %v5868_v50 }
 0x7c1   : > { %v5874_v63 = vpop.f32.mrb[71].mxu1 }
 0x7c2   : > { %v2143_v28 = vmax.f32 %v5870_v39, %v5874_v63 }
 0x7c6   : > { %v5881_v17 = vpop.f32.mrb[72].mxu1 }
 0x7c7   : > { %v5883_v43 = vpop.f32.mrb[73].mxu1 }
 0x7c8   : > { %612 = vperm.xlu0 %4439, %v594_v26   ;;  %v5885_v0 = vpop.f32.mrb[74].mxu1  ;;  %v2146_v56 = vmax.f32 %v5881_v17, %v5883_v43 }
 0x7c9   : > { %v5889_v15 = vpop.f32.mrb[75].mxu1 }
 0x7ca   : > { %v2149_v8 = vmax.f32 %v5885_v0, %v5889_v15 }
 0x7ce   : > { %v5893_v47 = vpop.f32.mrb[76].mxu1 }
 0x7cf   : > { %v5895_v21 = vpop.f32.mrb[77].mxu1 }
 0x7d0   : > { %v2152_v11 = vmax.f32 %v5893_v47, %v5895_v21  ;;  %v5899_v36 = vpop.f32.mrb[78].mxu1 }
 0x7d1   : > { %v5901_v61 = vpop.f32.mrb[79].mxu1 }
 0x7d2   : > { %v2155_v12 = vmax.f32 %v5899_v36, %v5901_v61 }
 0x7e3   : > { %2132 = vmax.xlane.f32.xlu1 %v2131_v55 }
 0x7e7   : > { %2135 = vmax.xlane.f32.xlu1 %v2134_v30  ;;  %2156 = vmax.xlane.f32.xlu0 %v2155_v12 }
 0x7eb   : > { %2138 = vmax.xlane.f32.xlu1 %v2137_v27 }
 0x7ef   : > { %2141 = vmax.xlane.f32.xlu1 %v2140_v4 }
 0x7f3   : > { %2144 = vmax.xlane.f32.xlu1 %v2143_v28 }
 0x7f7   : > { %2147 = vmax.xlane.f32.xlu1 %v2146_v56 }
 0x7fb   : > { %2150 = vmax.xlane.f32.xlu1 %v2149_v8 }
 0x7fd   : > { %438 = vperm.xlu0 %4439, %v416_v29  }
 0x7ff   : > { %2153 = vmax.xlane.f32.xlu1 %v2152_v11 }
 0x810   : > { %433 = vperm.xlu1 %4440, %v415_v10  }
 0x827   : > { %v2112_v3 = vpop.xlane.xlu1 %2111 }
 0x828   : > { %v2158_v2 = vsub.f32 %v5802_v37, %v2112_v3  ;;  %v2159_v24 = vsub.f32 %v5804_v20, %v2112_v3 }
 0x82a   : > { %v2190_v54 = vmul.f32 1.442695, %v2158_v2  ;;  %v2192_v52 = vmul.f32 1.442695, %v2159_v24 }
 0x82b   : > { %v2115_v55 = vpop.xlane.xlu1 %2114 }
 0x82c   : > { %v2160_v30 = vsub.f32 %v5806_v51, %v2115_v55  ;;  %v2161_v27 = vsub.f32 %v5810_v38, %v2115_v55  ;;  %4655 = vpow2.f32 %v2190_v54 }
 0x82d   : > { %4657 = vpow2.f32 %v2192_v52 }
 0x82e   : > { %v2194_v48 = vmul.f32 1.442695, %v2160_v30  ;;  %v2196_v4 = vmul.f32 1.442695, %v2161_v27 }
 0x82f   : > { %v2118_v28 = vpop.xlane.xlu1 %2117 }
 0x830   : > { %4659 = vpow2.f32 %v2194_v48  ;;  %v2162_v26 = vsub.f32 %v5815_v33, %v2118_v28  ;;  %v2163_v56 = vsub.f32 %v5817_v1, %v2118_v28 }
 0x831   : > { %4661 = vpow2.f32 %v2196_v4 }
 0x832   : > { %v2198_v37 = vmul.f32 1.442695, %v2162_v26  ;;  %v2200_v20 = vmul.f32 1.442695, %v2163_v56 }
 0x833   : > { %v2121_v8 = vpop.xlane.xlu1 %2120 }
 0x834   : > { %v2164_v11 = vsub.f32 %v5819_v13, %v2121_v8  ;;  %v2165_v51 = vsub.f32 %v5823_v6, %v2121_v8  ;;  %4663 = vpow2.f32 %v2198_v37 }
 0x835   : > { %4665 = vpow2.f32 %v2200_v20 }
 0x836   : > { %v2202_v38 = vmul.f32 1.442695, %v2164_v11  ;;  %v2204_v12 = vmul.f32 1.442695, %v2165_v51  ;;  %v4656_v10 = vpop.eup %4655 }
 0x837   : > { %v2124_v29 = vpop.xlane.xlu1 %2123  ;;  %v4658_v1 = vpop.eup %4657 }
 0x838   : > { %4667 = vpow2.f32 %v2202_v38  ;;  %v2166_v3 = vsub.f32 %v5827_v31, %v2124_v29  ;;  %v2167_v33 = vsub.f32 %v5829_v16, %v2124_v29 }
 0x839   : > { %4669 = vpow2.f32 %v2204_v12 }
 0x83a   : > { %v4660_v2 = vpop.eup %4659  ;;  %v2206_v24 = vmul.f32 1.442695, %v2166_v3  ;;  %v2208_v52 = vmul.f32 1.442695, %v2167_v33 }
 0x83b   : > { %v4662_v54 = vpop.eup %4661  ;;  %v2127_v13 = vpop.xlane.xlu1 %2126  ;;  %v2254_v55 = vpack.c.bf16 %v4660_v2, %v4656_v10 }
 0x83c   : > { %v2168_v6 = vsub.f32 %v5831_v60, %v2127_v13  ;;  %v2169_v30 = vsub.f32 %v5835_v32, %v2127_v13  ;;  %v2255_v27 = vpack.c.bf16 %v4662_v54, %v4658_v1  ;;  %4671 = vpow2.f32 %v2206_v24 }
 0x83d   : > { %4673 = vpow2.f32 %v2208_v52 }
 0x83e   : > { %v2210_v48 = vmul.f32 1.442695, %v2168_v6  ;;  %v2212_v4 = vmul.f32 1.442695, %v2169_v30  ;;  %2274 = vmatprep.subr.bf16.mxu0 %v2255_v27  ;;  %2314 = vmatprep.subr.bf16.mxu1 %v2255_v27  ;;  %v4664_v31 = vpop.eup %4663 }
 0x83f   : > { %2275 = vmatpush1.bf16.xpose.msra.mxu0 %v2254_v55  ;;  %2315 = vmatpush1.bf16.xpose.msra.mxu1 %v2254_v55  ;;  %v4666_v16 = vpop.eup %4665  ;;  %v608_v56 = vpop.permute.xlu1 %607 }
 0x840   : > { %4675 = vpow2.f32 %v2210_v48  ;;  %v2130_v37 = vpop.xlane.xlu0 %2129  ;;  %v686_v32 = vadd.f32 %v5255_v19, %v608_v56 }
 0x841   : > { %4677 = vpow2.f32 %v2212_v4  ;;  %v2170_v19 = vsub.f32 %v5839_v25, %v2130_v37  ;;  %v2171_v24 = vsub.f32 %v5841_v14, %v2130_v37 }
 0x842   : > { %v4668_v28 = vpop.eup %4667  ;;  %v694_v29 = vmul.f32 0.5, %v686_v32 }
 0x843   : > { %v4670_v26 = vpop.eup %4669  ;;  %v2256_v60 = vpack.c.bf16 %v4668_v28, %v4664_v31  ;;  %v2216_v54 = vmul.f32 1.442695, %v2171_v24 }
 0x844   : > { %v2257_v20 = vpack.c.bf16 %v4670_v26, %v4666_v16 }
 0x846   : > { %2276 = vmatprep.subr.bf16.mxu0 %v2257_v20  ;;  %2316 = vmatprep.subr.bf16.mxu1 %v2257_v20  ;;  %v4672_v11 = vpop.eup %4671 }
 0x847   : > { %2277 = vmatpush1.bf16.xpose.msra.mxu0 %v2256_v60  ;;  %2317 = vmatpush1.bf16.xpose.msra.mxu1 %v2256_v60  ;;  %v613_v8 = vpop.permute.xlu0 %612  ;;  %v4674_v38 = vpop.eup %4673 }
 0x848   : > { %v689_v51 = vadd.f32 %v5257_v23, %v613_v8  ;;  %v2214_v23 = vmul.f32 1.442695, %v2170_v19 }
 0x84a   : > { %v4676_v12 = vpop.eup %4675  ;;  %v695_v10 = vmul.f32 0.5, %v689_v51  ;;  %4679 = vpow2.f32 %v2214_v23 }
 0x84b   : > { %v4678_v3 = vpop.eup %4677  ;;  %v2258_v33 = vpack.c.bf16 %v4676_v12, %v4672_v11  ;;  %4681 = vpow2.f32 %v2216_v54 }
 0x84c   : > { %v5925_v1 = vpack.c.bf16 %v695_v10, %v694_v29  ;;  %v2259_v2 = vpack.c.bf16 %v4678_v3, %v4674_v38 }
 0x84e   : > { %2278 = vmatprep.subr.bf16.mxu0 %v2259_v2  ;;  %2318 = vmatprep.subr.bf16.mxu1 %v2259_v2 }
 0x84f   : > { %2279 = vmatpush1.bf16.xpose.msra.mxu0 %v2258_v33  ;;  %2319 = vmatpush1.bf16.xpose.msra.mxu1 %v2258_v33 }
 0x850   : > { %2361 = vxpose.xlu1.c.b16.start.end [1/1] (short) %v5925_v1, 128 }
 0x854   : > { %v4680_v56 = vpop.eup %4679 }
 0x870   : > { %v2133_v52 = vpop.xlane.xlu1 %2132 }
 0x871   : > { %v2172_v13 = vsub.f32 %v5845_v22, %v2133_v52  ;;  %v2173_v55 = vsub.f32 %v5847_v35, %v2133_v52 }
 0x873   : > { %v2218_v6 = vmul.f32 1.442695, %v2172_v13  ;;  %v2220_v30 = vmul.f32 1.442695, %v2173_v55 }
 0x874   : > { %v2136_v27 = vpop.xlane.xlu1 %2135 }
 0x875   : > { %4683 = vpow2.f32 %v2218_v6  ;;  %v2174_v48 = vsub.f32 %v5851_v34, %v2136_v27  ;;  %v2175_v4 = vsub.f32 %v5853_v41, %v2136_v27  ;;  %v4682_v41 = vpop.eup %4681 }
 0x876   : > { %4685 = vpow2.f32 %v2220_v30 }
 0x877   : > { %v2222_v25 = vmul.f32 1.442695, %v2174_v48  ;;  %v2224_v14 = vmul.f32 1.442695, %v2175_v4 }
 0x878   : > { %v2139_v31 = vpop.xlane.xlu1 %2138 }
 0x879   : > { %v2176_v16 = vsub.f32 %v5855_v18, %v2139_v31  ;;  %v2177_v22 = vsub.f32 %v5859_v49, %v2139_v31  ;;  %4687 = vpow2.f32 %v2222_v25 }
 0x87a   : > { %4689 = vpow2.f32 %v2224_v14 }
 0x87b   : > { %v2226_v35 = vmul.f32 1.442695, %v2176_v16  ;;  %v2228_v28 = vmul.f32 1.442695, %v2177_v22 }
 0x87c   : > { %v2142_v26 = vpop.xlane.xlu1 %2141 }
 0x87d   : > { %4691 = vpow2.f32 %v2226_v35  ;;  %v2178_v37 = vsub.f32 %v5866_v40, %v2142_v26  ;;  %v2179_v34 = vsub.f32 %v5868_v50, %v2142_v26  ;;  %v2157_v40 = vpop.xlane.xlu0 %2156 }
 0x87e   : > { %4693 = vpow2.f32 %v2228_v28  ;;  %v2188_v2 = vsub.f32 %v5899_v36, %v2157_v40  ;;  %v2189_v23 = vsub.f32 %v5901_v61, %v2157_v40 }
 0x87f   : > { %v4684_v60 = vpop.eup %4683  ;;  %v2230_v20 = vmul.f32 1.442695, %v2178_v37  ;;  %v2232_v8 = vmul.f32 1.442695, %v2179_v34 }
 0x880   : > { %v4686_v32 = vpop.eup %4685  ;;  %v2145_v18 = vpop.xlane.xlu1 %2144  ;;  %v2260_v11 = vpack.c.bf16 %v4684_v60, %v4680_v56  ;;  %v2252_v48 = vmul.f32 1.442695, %v2189_v23 }
 0x881   : > { %v2180_v49 = vsub.f32 %v5870_v39, %v2145_v18  ;;  %v2181_v51 = vsub.f32 %v5874_v63, %v2145_v18  ;;  %v2261_v38 = vpack.c.bf16 %v4686_v32, %v4682_v41  ;;  %4695 = vpow2.f32 %v2230_v20  ;;  %v439_v4 = vpop.permute.xlu0 %438 }
 0x882   : > { %4697 = vpow2.f32 %v2232_v8  ;;  %v563_v35 = vadd.f32 %v5398_v45, %v439_v4  ;;  %v565_v28 = vadd.f32 %v5400_v46, %v439_v4 }
 0x883   : > { %v2234_v12 = vmul.f32 1.442695, %v2180_v49  ;;  %v2236_v29 = vmul.f32 1.442695, %v2181_v51  ;;  %2280 = vmatprep.subr.bf16.mxu0 %v2261_v38  ;;  %2320 = vmatprep.subr.bf16.mxu1 %v2261_v38  ;;  %v4688_v10 = vpop.eup %4687  ;;  %v2270_v38 = vrot.slane %v5455_v53, 6 }
 0x884   : > { %2281 = vmatpush1.bf16.xpose.msra.mxu0 %v2260_v11  ;;  %2321 = vmatpush1.bf16.xpose.msra.mxu1 %v2260_v11  ;;  %v2148_v50 = vpop.xlane.xlu1 %2147  ;;  %v4690_v39 = vpop.eup %4689 }
 0x885   : > { %4699 = vpow2.f32 %v2234_v12  ;;  %v2182_v3 = vsub.f32 %v5881_v17, %v2148_v50  ;;  %v2183_v33 = vsub.f32 %v5883_v43, %v2148_v50  ;;  %v2250_v17 = vmul.f32 1.442695, %v2188_v2 }
 0x886   : > { %4701 = vpow2.f32 %v2236_v29 }
 0x887   : > { %v4692_v63 = vpop.eup %4691  ;;  %v2238_v19 = vmul.f32 1.442695, %v2182_v3  ;;  %v2240_v54 = vmul.f32 1.442695, %v2183_v33 }
 0x888   : > { %v4694_v24 = vpop.eup %4693  ;;  %v2151_v52 = vpop.xlane.xlu1 %2150  ;;  %v2262_v13 = vpack.c.bf16 %v4692_v63, %v4688_v10 }
 0x889   : > { %v2184_v55 = vsub.f32 %v5885_v0, %v2151_v52  ;;  %v2185_v6 = vsub.f32 %v5889_v15, %v2151_v52  ;;  %v2263_v30 = vpack.c.bf16 %v4694_v24, %v4690_v39  ;;  %4703 = vpow2.f32 %v2238_v19 }
 0x88a   : > { %4705 = vpow2.f32 %v2240_v54 }
 0x88b   : > { %v2242_v43 = vmul.f32 1.442695, %v2184_v55  ;;  %v2244_v27 = vmul.f32 1.442695, %v2185_v6  ;;  %2282 = vmatprep.subr.bf16.mxu0 %v2263_v30  ;;  %2322 = vmatprep.subr.bf16.mxu1 %v2263_v30  ;;  %v4696_v61 = vpop.eup %4695 }
 0x88c   : > { %2283 = vmatpush1.bf16.xpose.msra.mxu0 %v2262_v13  ;;  %2323 = vmatpush1.bf16.xpose.msra.mxu1 %v2262_v13  ;;  %v2154_v36 = vpop.xlane.xlu1 %2153  ;;  %v4698_v15 = vpop.eup %4697 }
 0x88d   : > { %4707 = vpow2.f32 %v2242_v43  ;;  %v2186_v25 = vsub.f32 %v5893_v47, %v2154_v36  ;;  %v2187_v0 = vsub.f32 %v5895_v21, %v2154_v36 }
 0x88e   : > { %4709 = vpow2.f32 %v2244_v27 }
 0x88f   : > { %v4700_v14 = vpop.eup %4699  ;;  %4711 = vpow2.f32 %v2250_v17  ;;  %v2246_v31 = vmul.f32 1.442695, %v2186_v25  ;;  %v2248_v16 = vmul.f32 1.442695, %v2187_v0 }
 0x890   : > { %v4702_v22 = vpop.eup %4701  ;;  %4713 = vpow2.f32 %v2252_v48  ;;  %v434_v26 = vpop.permute.xlu1 %433  ;;  %v2264_v56 = vpack.c.bf16 %v4700_v14, %v4696_v61 }
 0x891   : > { %4715 = vpow2.f32 %v2246_v31  ;;  %v559_v37 = vadd.f32 %v5391_v42, %v434_v26  ;;  %v561_v47 = vadd.f32 %v5396_v44, %v434_v26  ;;  %v2265_v21 = vpack.c.bf16 %v4702_v22, %v4698_v15 }
 0x892   : > { %4717 = vpow2.f32 %v2248_v16 }
 0x893   : > { %v5952_v34 = vpack.c.bf16 %v563_v35, %v559_v37  ;;  %v5954_v41 = vpack.c.bf16 %v565_v28, %v561_v47  ;;  %2284 = vmatprep.subr.bf16.mxu0 %v2265_v21  ;;  %2324 = vmatprep.subr.bf16.mxu1 %v2265_v21  ;;  %v4704_v45 = vpop.eup %4703 }
 0x894   : > { %2285 = vmatpush1.bf16.xpose.msra.mxu0 %v2264_v56  ;;  %2325 = vmatpush1.bf16.xpose.msra.mxu1 %v2264_v56  ;;  %v4706_v60 = vpop.eup %4705 }
 0x895   : > { %v2402_v12 = vsel %vm747_vm1, %v5952_v34, 0 }
 0x897   : > { %v4708_v46 = vpop.eup %4707 }
 0x898   : > { %v4710_v20 = vpop.eup %4709  ;;  %v2266_v32 = vpack.c.bf16 %v4708_v46, %v4704_v45 }
 0x899   : > { %v4712_v8 = vpop.eup %4711  ;;  %v2267_v18 = vpack.c.bf16 %v4710_v20, %v4706_v60 }
 0x89a   : > { %v4714_v42 = vpop.eup %4713 }
 0x89b   : > { %v4716_v11 = vpop.eup %4715  ;;  %2286 = vmatprep.subr.bf16.mxu0 %v2267_v18  ;;  %2326 = vmatprep.subr.bf16.mxu1 %v2267_v18 }
 0x89c   : > { %v4718_v44 = vpop.eup %4717  ;;  %2287 = vmatpush1.bf16.xpose.msra.mxu0 %v2266_v32  ;;  %2327 = vmatpush1.bf16.xpose.msra.mxu1 %v2266_v32  ;;  %v2268_v49 = vpack.c.bf16 %v4712_v8, %v4716_v11 }
 0x89d   : > { %v2269_v51 = vpack.c.bf16 %v4714_v42, %v4718_v44 }
 0x89f   : > { %2288 = vmatprep.subr.bf16.mxu0 %v2269_v51  ;;  %2328 = vmatprep.subr.bf16.mxu1 %v2269_v51 }
 0x8a4   : > { %2289 = vmatpush1.bf16.xpose.msra.mxu0 %v2268_v49  ;;  %2329 = vmatpush1.bf16.xpose.msra.mxu1 %v2268_v49 }
 0x8a5   : > { %4293 = vmatprep.subr.msk.bf16.mxu0 %vm747_vm1, %v5954_v41 }
 0x8ab   : > { %2307 = vmatmul.mubr.bf16.vlgmr.msra.gmra.mrb[92].mxu0 %v2270_v38  ;;  %2347 = vmatmul.mubr.bf16.vlgmr.msra.gmra.mrb[80].mxu1 %v5082_v57 }
 0x8ac   : > { %2408 = vmatpush1.bf16.msra.mxu0 %v2402_v12  ;;  %2439 = vmatprep.mubr.bf16.mxu0 %v5081_v7 }
 0x8b6   : > { %v2369_v29 = vpop.trf.xlu1 }
 0x8b7   : > { %4294 = vmatmul.mubr.msk.bf16.vlgmr.msra.gmra.mrb[96].mxu0 %vm722_vm2, %v2369_v29 }
 0x8b8   : > { %2449 = vmatprep.mubr.bf16.mxu0 %v5081_v7 }
 0x8ba   : > { %v2370_v40 = vpop.trf.xlu1 }
 0x8be   : > { %v2371_v53 = vpop.trf.xlu1 }
 0x8bf   : > { %4295 = vmatmul.mubr.msk.bf16.gmra.mrb[100].mxu0 %vm722_vm2, %v2370_v40 }
 0x8c0   : > { %2459 = vmatprep.mubr.bf16.mxu0 %v5081_v7 }
 0x8c2   : > { %v2372_v50 = vpop.trf.xlu1 }
 0x8c6   : > { %v2373_v10 = vpop.trf.xlu1 }
 0x8c7   : > { %4296 = vmatmul.mubr.msk.bf16.gmra.mrb[104].mxu0 %vm722_vm2, %v2371_v53 }
 0x8c8   : > { %2469 = vmatprep.mubr.bf16.mxu0 %v5081_v7 }
 0x8ca   : > { %v2374_v3 = vpop.trf.xlu1 }
 0x8ce   : > { %v2375_v33 = vpop.trf.xlu1 }
 0x8cf   : > { %4297 = vmatmul.mubr.msk.bf16.gmra.mrb[108].mxu0 %vm722_vm2, %v2372_v50 }
 0x8d0   : > { %2479 = vmatprep.mubr.bf16.mxu0 %v5081_v7 }
 0x8d2   : > { %v2376_v39 = vpop.trf.xlu1 }
 0x8d7   : > { %4298 = vmatmul.mubr.msk.bf16.gmra.mrb[112].mxu0 %vm722_vm2, %v2373_v10 }
 0x8d8   : > { %2489 = vmatprep.mubr.bf16.mxu0 %v5081_v7 }
 0x8df   : > { %4299 = vmatmul.mubr.msk.bf16.gmra.mrb[116].mxu0 %vm722_vm2, %v2374_v3 }
 0x8e0   : > { %2499 = vmatprep.mubr.bf16.mxu0 %v5081_v7 }
 0x8e7   : > { %4300 = vmatmul.mubr.msk.bf16.gmra.mrb[120].mxu0 %vm722_vm2, %v2375_v33 }
 0x8e8   : > { %2509 = vmatprep.mubr.bf16.mxu0 %v5081_v7 }
 0x8ef   : > { %4301 = vmatmul.mubr.msk.bf16.gmra.mrb[124].mxu0 %vm722_vm2, %v2376_v39 }
 0x8f0   : > { %2752 = vmatprep.mubr.bf16.mxu0 %v5082_v57 }
 0x97e   : > { %v2308_v63 = vpop.f32.mrb[92].mxu0  ;;  %v2348_v2 = vpop.f32.mrb[80].mxu1 }
 0x97f   : > { %4719 = vrcp.f32 %v2348_v2  ;;  %v2310_v19 = vpop.f32.mrb[93].mxu0  ;;  %v2350_v24 = vpop.f32.mrb[81].mxu1 }
 0x980   : > { %v2311_v23 = vpop.f32.mrb[94].mxu0  ;;  %v2351_v54 = vpop.f32.mrb[82].mxu1 }
 0x981   : > { %v2312_v52 = vpop.f32.mrb[95].mxu0  ;;  %v2352_v13 = vpop.f32.mrb[83].mxu1  ;;  %v419_v54 = vld [vmem:[%s6675_s5 + $0x30] sm:$0xff] }
 0x982   : > { %v420_v52 = vld [vmem:[%s6675_s5 + $0x38] sm:$0xff]  ;;  %v2768_v13 = vrot.slane %v5925_v1, 2 }
 0x989   : > { %v4720_v55 = vpop.eup %4719 }
 0x98a   : > { %v2358_v6 = vrot.slane %v4720_v55, %v5492_v62  ;;  %v5980_v30 = vpop.f32.mrb[96].mxu0 }
 0x98b   : > { %v5982_v17 = vpop.f32.mrb[97].mxu0 }
 0x98c   : > { %v2359_v43 = vmul.f32 %v2358_v6, %v2308_v63  ;;  %v2520_v27 = vmax.f32 %v5980_v30, %v5982_v17  ;;  %v5986_v48 = vpop.f32.mrb[98].mxu0 }
 0x98d   : > { %v5988_v36 = vpop.f32.mrb[99].mxu0 }
 0x98e   : > { %2360 = vst [vmem:[#allocation2 + $0xc] sm:$0xf] %v2359_v43  ;;  %v2523_v61 = vmax.f32 %v5986_v48, %v5988_v36  ;;  %2521 = vmax.xlane.f32.xlu0 %v2520_v27 }
 0x990   : > { %2524 = vmax.xlane.f32.xlu1 %v2523_v61 }
 0x992   : > { %v5992_v4 = vpop.f32.mrb[100].mxu0 }
 0x993   : > { %v5994_v25 = vpop.f32.mrb[101].mxu0 }
 0x994   : > { %v2526_v0 = vmax.f32 %v5992_v4, %v5994_v25  ;;  %v5998_v15 = vpop.f32.mrb[102].mxu0 }
 0x995   : > { %v6000_v14 = vpop.f32.mrb[103].mxu0 }
 0x996   : > { %v2529_v31 = vmax.f32 %v5998_v15, %v6000_v14  ;;  %2527 = vmax.xlane.f32.xlu0 %v2526_v0 }
 0x99a   : > { %2530 = vmax.xlane.f32.xlu0 %v2529_v31  ;;  %v6004_v16 = vpop.f32.mrb[104].mxu0 }
 0x99b   : > { %v6006_v22 = vpop.f32.mrb[105].mxu0 }
 0x99c   : > { %v2532_v35 = vmax.f32 %v6004_v16, %v6006_v22  ;;  %v6010_v28 = vpop.f32.mrb[106].mxu0 }
 0x99d   : > { %v6012_v26 = vpop.f32.mrb[107].mxu0 }
 0x99e   : > { %v2535_v56 = vmax.f32 %v6010_v28, %v6012_v26  ;;  %2533 = vmax.xlane.f32.xlu0 %v2532_v35 }
 0x9a2   : > { %2536 = vmax.xlane.f32.xlu0 %v2535_v56  ;;  %v6016_v37 = vpop.f32.mrb[108].mxu0 }
 0x9a3   : > { %v6018_v47 = vpop.f32.mrb[109].mxu0 }
 0x9a4   : > { %v2538_v21 = vmax.f32 %v6016_v37, %v6018_v47  ;;  %v6022_v45 = vpop.f32.mrb[110].mxu0 }
 0x9a5   : > { %v6024_v60 = vpop.f32.mrb[111].mxu0 }
 0x9a6   : > { %v2541_v46 = vmax.f32 %v6022_v45, %v6024_v60  ;;  %2539 = vmax.xlane.f32.xlu0 %v2538_v21 }
 0x9aa   : > { %2542 = vmax.xlane.f32.xlu0 %v2541_v46  ;;  %v6028_v20 = vpop.f32.mrb[112].mxu0 }
 0x9ab   : > { %v6030_v32 = vpop.f32.mrb[113].mxu0 }
 0x9ac   : > { %v2544_v8 = vmax.f32 %v6028_v20, %v6030_v32  ;;  %v6034_v18 = vpop.f32.mrb[114].mxu0 }
 0x9ad   : > { %v6036_v42 = vpop.f32.mrb[115].mxu0 }
 0x9ae   : > { %v2547_v11 = vmax.f32 %v6034_v18, %v6036_v42  ;;  %2545 = vmax.xlane.f32.xlu0 %v2544_v8 }
 0x9b2   : > { %2548 = vmax.xlane.f32.xlu0 %v2547_v11  ;;  %v6040_v44 = vpop.f32.mrb[116].mxu0 }
 0x9b3   : > { %v6042_v49 = vpop.f32.mrb[117].mxu0 }
 0x9b4   : > { %v2550_v51 = vmax.f32 %v6040_v44, %v6042_v49  ;;  %v6046_v38 = vpop.f32.mrb[118].mxu0 }
 0x9b5   : > { %v6048_v12 = vpop.f32.mrb[119].mxu0 }
 0x9b6   : > { %v2553_v29 = vmax.f32 %v6046_v38, %v6048_v12  ;;  %2551 = vmax.xlane.f32.xlu1 %v2550_v51 }
 0x9b8   : > { %2554 = vmax.xlane.f32.xlu0 %v2553_v29 }
 0x9ba   : > { %v6052_v40 = vpop.f32.mrb[120].mxu0 }
 0x9bb   : > { %v6054_v53 = vpop.f32.mrb[121].mxu0 }
 0x9bc   : > { %v2556_v50 = vmax.f32 %v6052_v40, %v6054_v53  ;;  %v6058_v10 = vpop.f32.mrb[122].mxu0 }
 0x9bd   : > { %v6060_v3 = vpop.f32.mrb[123].mxu0 }
 0x9be   : > { %v2559_v33 = vmax.f32 %v6058_v10, %v6060_v3  ;;  %2557 = vmax.xlane.f32.xlu1 %v2556_v50 }
 0x9c0   : > { %2560 = vmax.xlane.f32.xlu0 %v2559_v33 }
 0x9c2   : > { %v6064_v39 = vpop.f32.mrb[124].mxu0 }
 0x9c3   : > { %v6066_v63 = vpop.f32.mrb[125].mxu0 }
 0x9c4   : > { %v2562_v2 = vmax.f32 %v6064_v39, %v6066_v63  ;;  %v6070_v19 = vpop.f32.mrb[126].mxu0 }
 0x9c5   : > { %v6072_v24 = vpop.f32.mrb[127].mxu0 }
 0x9c6   : > { %v2565_v23 = vmax.f32 %v6070_v19, %v6072_v24  ;;  %2563 = vmax.xlane.f32.xlu1 %v2562_v2 }
 0x9c8   : > { %2566 = vmax.xlane.f32.xlu0 %v2565_v23 }
 0x9d7   : > { %453 = vperm.xlu1 %4440, %v419_v54  }
 0x9de   : > { %458 = vperm.xlu0 %4439, %v420_v52  }
 0x9fa   : > { %2770 = vxpose.xlu1.c.b16.start.end [1/1] (short) %v2768_v13, 128 }
 0xa1b   : > { %v2522_v55 = vpop.xlane.xlu0 %2521 }
 0xa1c   : > { %v2568_v6 = vsub.f32 %v5980_v30, %v2522_v55  ;;  %v2569_v43 = vsub.f32 %v5982_v17, %v2522_v55 }
 0xa1d   : > { %v2525_v27 = vpop.xlane.xlu1 %2524 }
 0xa1e   : > { %v2600_v61 = vmul.f32 1.442695, %v2568_v6  ;;  %v2602_v0 = vmul.f32 1.442695, %v2569_v43  ;;  %v2570_v31 = vsub.f32 %v5986_v48, %v2525_v27  ;;  %v2571_v35 = vsub.f32 %v5988_v36, %v2525_v27 }
 0xa20   : > { %4721 = vpow2.f32 %v2600_v61  ;;  %v2604_v56 = vmul.f32 1.442695, %v2570_v31  ;;  %v2606_v21 = vmul.f32 1.442695, %v2571_v35 }
 0xa21   : > { %4723 = vpow2.f32 %v2602_v0 }
 0xa22   : > { %4725 = vpow2.f32 %v2604_v56 }
 0xa23   : > { %4727 = vpow2.f32 %v2606_v21  ;;  %v2528_v46 = vpop.xlane.xlu0 %2527 }
 0xa24   : > { %v2572_v8 = vsub.f32 %v5992_v4, %v2528_v46  ;;  %v2573_v30 = vsub.f32 %v5994_v25, %v2528_v46 }
 0xa26   : > { %v2608_v11 = vmul.f32 1.442695, %v2572_v8  ;;  %v2610_v17 = vmul.f32 1.442695, %v2573_v30 }
 0xa27   : > { %v2531_v51 = vpop.xlane.xlu0 %2530 }
 0xa28   : > { %v2574_v29 = vsub.f32 %v5998_v15, %v2531_v51  ;;  %v2575_v48 = vsub.f32 %v6000_v14, %v2531_v51  ;;  %4729 = vpow2.f32 %v2608_v11 }
 0xa29   : > { %4731 = vpow2.f32 %v2610_v17 }
 0xa2a   : > { %v4722_v50 = vpop.eup %4721  ;;  %v2612_v36 = vmul.f32 1.442695, %v2574_v29  ;;  %v2614_v33 = vmul.f32 1.442695, %v2575_v48 }
 0xa2b   : > { %v4724_v2 = vpop.eup %4723  ;;  %v2534_v23 = vpop.xlane.xlu0 %2533 }
 0xa2c   : > { %v4726_v54 = vpop.eup %4725  ;;  %4733 = vpow2.f32 %v2612_v36  ;;  %v2576_v4 = vsub.f32 %v6004_v16, %v2534_v23  ;;  %v2577_v25 = vsub.f32 %v6006_v22, %v2534_v23 }
 0xa2d   : > { %v4728_v52 = vpop.eup %4727  ;;  %4735 = vpow2.f32 %v2614_v33  ;;  %v2664_v13 = vpack.c.bf16 %v4726_v54, %v4722_v50 }
 0xa2e   : > { %v2616_v55 = vmul.f32 1.442695, %v2576_v4  ;;  %v2665_v15 = vpack.c.bf16 %v4728_v52, %v4724_v2  ;;  %v2618_v6 = vmul.f32 1.442695, %v2577_v25 }
 0xa2f   : > { %v2537_v14 = vpop.xlane.xlu0 %2536 }
 0xa30   : > { %2680 = vmatprep.subr.bf16.mxu1 %v2665_v15  ;;  %2720 = vmatprep.subr.bf16.mxu0 %v2665_v15  ;;  %v2578_v43 = vsub.f32 %v6010_v28, %v2537_v14  ;;  %v2579_v27 = vsub.f32 %v6012_v26, %v2537_v14  ;;  %4737 = vpow2.f32 %v2616_v55 }
 0xa31   : > { %2681 = vmatpush1.bf16.xpose.msra.mxu1 %v2664_v13  ;;  %2721 = vmatpush1.bf16.xpose.msra.mxu0 %v2664_v13  ;;  %4739 = vpow2.f32 %v2618_v6 }
 0xa32   : > { %v2620_v61 = vmul.f32 1.442695, %v2578_v43  ;;  %v2622_v16 = vmul.f32 1.442695, %v2579_v27  ;;  %v4730_v0 = vpop.eup %4729 }
 0xa33   : > { %v2540_v22 = vpop.xlane.xlu0 %2539  ;;  %v4732_v56 = vpop.eup %4731 }
 0xa34   : > { %4741 = vpow2.f32 %v2620_v61  ;;  %v2580_v31 = vsub.f32 %v6016_v37, %v2540_v22  ;;  %v2581_v35 = vsub.f32 %v6018_v47, %v2540_v22 }
 0xa35   : > { %4743 = vpow2.f32 %v2622_v16 }
 0xa36   : > { %v4734_v21 = vpop.eup %4733  ;;  %v2624_v46 = vmul.f32 1.442695, %v2580_v31  ;;  %v2626_v8 = vmul.f32 1.442695, %v2581_v35 }
 0xa37   : > { %v4736_v28 = vpop.eup %4735  ;;  %v2543_v26 = vpop.xlane.xlu0 %2542  ;;  %v2666_v30 = vpack.c.bf16 %v4734_v21, %v4730_v0 }
 0xa38   : > { %v2582_v11 = vsub.f32 %v6022_v45, %v2543_v26  ;;  %v2583_v17 = vsub.f32 %v6024_v60, %v2543_v26  ;;  %v2667_v51 = vpack.c.bf16 %v4736_v28, %v4732_v56  ;;  %4745 = vpow2.f32 %v2624_v46 }
 0xa39   : > { %4747 = vpow2.f32 %v2626_v8 }
 0xa3a   : > { %v2628_v29 = vmul.f32 1.442695, %v2582_v11  ;;  %v2630_v48 = vmul.f32 1.442695, %v2583_v17  ;;  %2682 = vmatprep.subr.bf16.mxu1 %v2667_v51  ;;  %2722 = vmatprep.subr.bf16.mxu0 %v2667_v51  ;;  %v4738_v47 = vpop.eup %4737 }
 0xa3b   : > { %2683 = vmatpush1.bf16.xpose.msra.mxu1 %v2666_v30  ;;  %2723 = vmatpush1.bf16.xpose.msra.mxu0 %v2666_v30  ;;  %v2546_v37 = vpop.xlane.xlu0 %2545  ;;  %v4740_v33 = vpop.eup %4739 }
 0xa3c   : > { %4749 = vpow2.f32 %v2628_v29  ;;  %v2584_v50 = vsub.f32 %v6028_v20, %v2546_v37  ;;  %v2585_v36 = vsub.f32 %v6030_v32, %v2546_v37 }
 0xa3d   : > { %4751 = vpow2.f32 %v2630_v48 }
 0xa3e   : > { %v4742_v45 = vpop.eup %4741  ;;  %v2632_v60 = vmul.f32 1.442695, %v2584_v50  ;;  %v2634_v23 = vmul.f32 1.442695, %v2585_v36 }
 0xa3f   : > { %v4744_v2 = vpop.eup %4743  ;;  %v2549_v54 = vpop.xlane.xlu0 %2548  ;;  %v2668_v4 = vpack.c.bf16 %v4742_v45, %v4738_v47 }
 0xa40   : > { %v2586_v25 = vsub.f32 %v6034_v18, %v2549_v54  ;;  %v2587_v52 = vsub.f32 %v6036_v42, %v2549_v54  ;;  %v2669_v13 = vpack.c.bf16 %v4744_v2, %v4740_v33  ;;  %4753 = vpow2.f32 %v2632_v60 }
 0xa41   : > { %4755 = vpow2.f32 %v2634_v23 }
 0xa42   : > { %v2636_v55 = vmul.f32 1.442695, %v2586_v25  ;;  %v2638_v15 = vmul.f32 1.442695, %v2587_v52  ;;  %2684 = vmatprep.subr.bf16.mxu1 %v2669_v13  ;;  %2724 = vmatprep.subr.bf16.mxu0 %v2669_v13  ;;  %v4746_v32 = vpop.eup %4745 }
 0xa43   : > { %2685 = vmatpush1.bf16.xpose.msra.mxu1 %v2668_v4  ;;  %2725 = vmatpush1.bf16.xpose.msra.mxu0 %v2668_v4  ;;  %v2552_v20 = vpop.xlane.xlu1 %2551  ;;  %v4748_v43 = vpop.eup %4747 }
 0xa44   : > { %4757 = vpow2.f32 %v2636_v55  ;;  %v2588_v6 = vsub.f32 %v6040_v44, %v2552_v20  ;;  %v2589_v14 = vsub.f32 %v6042_v49, %v2552_v20 }
 0xa45   : > { %4759 = vpow2.f32 %v2638_v15  ;;  %v2555_v18 = vpop.xlane.xlu0 %2554 }
 0xa46   : > { %v4750_v42 = vpop.eup %4749  ;;  %v2640_v27 = vmul.f32 1.442695, %v2588_v6  ;;  %v2590_v61 = vsub.f32 %v6046_v38, %v2555_v18  ;;  %v2591_v16 = vsub.f32 %v6048_v12, %v2555_v18  ;;  %v2642_v31 = vmul.f32 1.442695, %v2589_v14 }
 0xa47   : > { %v4752_v22 = vpop.eup %4751  ;;  %v2670_v0 = vpack.c.bf16 %v4750_v42, %v4746_v32 }
 0xa48   : > { %v2644_v35 = vmul.f32 1.442695, %v2590_v61  ;;  %v2646_v56 = vmul.f32 1.442695, %v2591_v16  ;;  %v2671_v21 = vpack.c.bf16 %v4752_v22, %v4748_v43  ;;  %4761 = vpow2.f32 %v2640_v27 }
 0xa4a   : > { %4763 = vpow2.f32 %v2644_v35  ;;  %2686 = vmatprep.subr.bf16.mxu1 %v2671_v21  ;;  %2726 = vmatprep.subr.bf16.mxu0 %v2671_v21  ;;  %v4754_v49 = vpop.eup %4753 }
 0xa4b   : > { %4765 = vpow2.f32 %v2646_v56  ;;  %2687 = vmatpush1.bf16.xpose.msra.mxu1 %v2670_v0  ;;  %2727 = vmatpush1.bf16.xpose.msra.mxu0 %v2670_v0  ;;  %v2558_v44 = vpop.xlane.xlu1 %2557  ;;  %v4756_v46 = vpop.eup %4755 }
 0xa4c   : > { %4767 = vpow2.f32 %v2642_v31  ;;  %v2592_v38 = vsub.f32 %v6052_v40, %v2558_v44  ;;  %v2593_v12 = vsub.f32 %v6054_v53, %v2558_v44 }
 0xa4d   : > { %v2561_v28 = vpop.xlane.xlu0 %2560 }
 0xa4e   : > { %v4758_v8 = vpop.eup %4757  ;;  %v2648_v26 = vmul.f32 1.442695, %v2592_v38  ;;  %v2650_v30 = vmul.f32 1.442695, %v2593_v12  ;;  %v2594_v11 = vsub.f32 %v6058_v10, %v2561_v28  ;;  %v2595_v17 = vsub.f32 %v6060_v3, %v2561_v28 }
 0xa4f   : > { %v4760_v51 = vpop.eup %4759  ;;  %v2672_v29 = vpack.c.bf16 %v4758_v8, %v4754_v49 }
 0xa50   : > { %4769 = vpow2.f32 %v2648_v26  ;;  %v2652_v48 = vmul.f32 1.442695, %v2594_v11  ;;  %v2654_v37 = vmul.f32 1.442695, %v2595_v17  ;;  %v2673_v47 = vpack.c.bf16 %v4760_v51, %v4756_v46 }
 0xa51   : > { %4771 = vpow2.f32 %v2650_v30 }
 0xa52   : > { %4773 = vpow2.f32 %v2652_v48  ;;  %2688 = vmatprep.subr.bf16.mxu1 %v2673_v47  ;;  %2728 = vmatprep.subr.bf16.mxu0 %v2673_v47  ;;  %v4762_v40 = vpop.eup %4761 }
 0xa53   : > { %4775 = vpow2.f32 %v2654_v37  ;;  %2689 = vmatpush1.bf16.xpose.msra.mxu1 %v2672_v29  ;;  %2729 = vmatpush1.bf16.xpose.msra.mxu0 %v2672_v29  ;;  %v2564_v53 = vpop.xlane.xlu1 %2563 }
 0xa54   : > { %v4764_v50 = vpop.eup %4763  ;;  %v2596_v10 = vsub.f32 %v6064_v39, %v2564_v53  ;;  %v2597_v3 = vsub.f32 %v6066_v63, %v2564_v53 }
 0xa55   : > { %v4766_v36 = vpop.eup %4765  ;;  %v2567_v33 = vpop.xlane.xlu0 %2566  ;;  %v2674_v45 = vpack.c.bf16 %v4764_v50, %v4762_v40 }
 0xa56   : > { %v4768_v60 = vpop.eup %4767  ;;  %v2656_v2 = vmul.f32 1.442695, %v2596_v10  ;;  %v2658_v23 = vmul.f32 1.442695, %v2597_v3  ;;  %v2598_v54 = vsub.f32 %v6070_v19, %v2567_v33  ;;  %v2599_v4 = vsub.f32 %v6072_v24, %v2567_v33 }
 0xa57   : > { %v2675_v25 = vpack.c.bf16 %v4766_v36, %v4768_v60  ;;  %v454_v63 = vpop.permute.xlu1 %453 }
 0xa58   : > { %4777 = vpow2.f32 %v2656_v2  ;;  %v2660_v52 = vmul.f32 1.442695, %v2598_v54  ;;  %v2662_v13 = vmul.f32 1.442695, %v2599_v4  ;;  %v579_v19 = vadd.f32 %v5484_v5, %v454_v63 }
 0xa59   : > { %4779 = vpow2.f32 %v2658_v23  ;;  %2690 = vmatprep.subr.bf16.mxu1 %v2675_v25  ;;  %2730 = vmatprep.subr.bf16.mxu0 %v2675_v25  ;;  %v581_v6 = vadd.f32 %v5486_v58, %v454_v63 }
 0xa5a   : > { %v4770_v39 = vpop.eup %4769  ;;  %4781 = vpow2.f32 %v2660_v52 }
 0xa5b   : > { %v4772_v55 = vpop.eup %4771  ;;  %4783 = vpow2.f32 %v2662_v13  ;;  %2691 = vmatpush1.bf16.xpose.msra.mxu1 %v2674_v45  ;;  %2731 = vmatpush1.bf16.xpose.msra.mxu0 %v2674_v45 }
 0xa5c   : > { %v4774_v15 = vpop.eup %4773 }
 0xa5d   : > { %v4776_v20 = vpop.eup %4775  ;;  %v459_v32 = vpop.permute.xlu0 %458  ;;  %v2676_v24 = vpack.c.bf16 %v4774_v15, %v4770_v39 }
 0xa5e   : > { %v583_v14 = vadd.f32 %v5488_v59, %v459_v32  ;;  %v585_v43 = vadd.f32 %v5490_v9, %v459_v32  ;;  %v2677_v18 = vpack.c.bf16 %v4776_v20, %v4772_v55  ;;  %v2789_v59 = vrot.slane %v5954_v41, 2 }
 0xa5f   : > { %v2788_v9 = vrot.slane %v5952_v34, 2 }
 0xa60   : > { %v6119_v42 = vpack.c.bf16 %v583_v14, %v579_v19  ;;  %v6121_v27 = vpack.c.bf16 %v585_v43, %v581_v6  ;;  %2692 = vmatprep.subr.bf16.mxu1 %v2677_v18  ;;  %2732 = vmatprep.subr.bf16.mxu0 %v2677_v18  ;;  %v2778_v56 = vpop.trf.xlu1 }
 0xa61   : > { %v2815_v35 = vsel %vm747_vm1, %v2788_v9, 0 }
 0xa62   : > { %v4778_v61 = vpop.eup %4777  ;;  %2712 = vmatprep.mubr.bf16.mxu1 %v6121_v27  ;;  %v3096_v31 = vrot.slane %v6121_v27, 2 }
 0xa63   : > { %v4780_v16 = vpop.eup %4779  ;;  %2693 = vmatpush1.bf16.xpose.msra.mxu1 %v2676_v24  ;;  %2733 = vmatpush1.bf16.xpose.msra.mxu0 %v2676_v24 }
 0xa64   : > { %v4782_v5 = vpop.eup %4781  ;;  %v2779_v21 = vpop.trf.xlu1 }
 0xa65   : > { %v4784_v22 = vpop.eup %4783  ;;  %v2678_v58 = vpack.c.bf16 %v4782_v5, %v4778_v61 }
 0xa66   : > { %v2679_v0 = vpack.c.bf16 %v4784_v22, %v4780_v16 }
 0xa68   : > { %2694 = vmatprep.subr.bf16.mxu1 %v2679_v0  ;;  %2734 = vmatprep.subr.bf16.mxu0 %v2679_v0  ;;  %v2780_v44 = vpop.trf.xlu1 }
 0xa6b   : > { %2695 = vmatpush1.bf16.xpose.msra.mxu1 %v2678_v58  ;;  %2735 = vmatpush1.bf16.xpose.msra.mxu0 %v2678_v58 }
 0xa6c   : > { %4302 = vmatprep.subr.msk.bf16.mxu1 %vm747_vm1, %v2789_v59  ;;  %v2781_v49 = vpop.trf.xlu1 }
 0xa70   : > { %v2782_v38 = vpop.trf.xlu1 }
 0xa72   : > { %2713 = vmatmul.mubr.bf16.vlgmr.msra.gmra.mrb[84].mxu1 %v6119_v42  ;;  %2753 = vmatmul.mubr.bf16.vlgmr.msra.gmra.mrb[128].mxu0 %v5082_v57 }
 0xa73   : > { %2821 = vmatpush1.bf16.msra.mxu1 %v2815_v35  ;;  %3131 = vmatprep.mubr.bf16.mxu0 %v3096_v31 }
 0xa74   : > { %2852 = vmatprep.mubr.bf16.mxu1 %v5081_v7  ;;  %v2783_v12 = vpop.trf.xlu1 }
 0xa78   : > { %v2784_v46 = vpop.trf.xlu1 }
 0xa7a   : > { %4303 = vmatmul.mubr.msk.bf16.vlgmr.msra.gmra.mrb[88].mxu1 %vm722_vm2, %v2778_v56 }
 0xa7b   : > { %2862 = vmatprep.mubr.bf16.mxu1 %v5081_v7 }
 0xa7c   : > { %v2785_v28 = vpop.trf.xlu1 }
 0xa82   : > { %4304 = vmatmul.mubr.msk.bf16.gmra.mrb[92].mxu1 %vm722_vm2, %v2779_v21 }
 0xa83   : > { %2872 = vmatprep.mubr.bf16.mxu1 %v5081_v7 }
 0xa8a   : > { %4305 = vmatmul.mubr.msk.bf16.gmra.mrb[96].mxu1 %vm722_vm2, %v2780_v44 }
 0xa8b   : > { %2882 = vmatprep.mubr.bf16.mxu1 %v5081_v7 }
 0xa92   : > { %4306 = vmatmul.mubr.msk.bf16.gmra.mrb[100].mxu1 %vm722_vm2, %v2781_v49 }
 0xa93   : > { %2892 = vmatprep.mubr.bf16.mxu1 %v5081_v7 }
 0xa9a   : > { %4307 = vmatmul.mubr.msk.bf16.gmra.mrb[104].mxu1 %vm722_vm2, %v2782_v38 }
 0xa9b   : > { %2902 = vmatprep.mubr.bf16.mxu1 %v5081_v7 }
 0xaa2   : > { %4308 = vmatmul.mubr.msk.bf16.gmra.mrb[108].mxu1 %vm722_vm2, %v2783_v12 }
 0xaa3   : > { %2912 = vmatprep.mubr.bf16.mxu1 %v5081_v7 }
 0xaaa   : > { %4309 = vmatmul.mubr.msk.bf16.gmra.mrb[112].mxu1 %vm722_vm2, %v2784_v46 }
 0xaab   : > { %2922 = vmatprep.mubr.bf16.mxu1 %v5081_v7 }
 0xab2   : > { %4310 = vmatmul.mubr.msk.bf16.gmra.mrb[116].mxu1 %vm722_vm2, %v2785_v28 }
 0xab3   : > { %3171 = vmatprep.mubr.bf16.mxu1 %v5082_v57 }
 0xb45   : > { %v2714_v8 = vpop.f32.mrb[84].mxu1  ;;  %v2754_v26 = vpop.f32.mrb[128].mxu0 }
 0xb46   : > { %4785 = vrcp.f32 %v2754_v26  ;;  %v2716_v30 = vpop.f32.mrb[85].mxu1  ;;  %v2756_v11 = vpop.f32.mrb[129].mxu0 }
 0xb47   : > { %v2717_v17 = vpop.f32.mrb[86].mxu1  ;;  %v2757_v51 = vpop.f32.mrb[130].mxu0  ;;  %v3186_v11 = vrot.slane %v5925_v1, 4 }
 0xb48   : > { %v2718_v29 = vpop.f32.mrb[87].mxu1  ;;  %v2758_v48 = vpop.f32.mrb[131].mxu0 }
 0xb4d   : > { %v6148_v37 = vpop.f32.mrb[88].mxu1 }
 0xb4e   : > { %v6150_v47 = vpop.f32.mrb[89].mxu1 }
 0xb4f   : > { %v2933_v40 = vmax.f32 %v6148_v37, %v6150_v47  ;;  %v6154_v53 = vpop.f32.mrb[90].mxu1 }
 0xb50   : > { %v4786_v50 = vpop.eup %4785  ;;  %v6156_v10 = vpop.f32.mrb[91].mxu1 }
 0xb51   : > { %v2764_v3 = vrot.slane %v4786_v50, %v5492_v62  ;;  %v2936_v36 = vmax.f32 %v6154_v53, %v6156_v10  ;;  %2934 = vmax.xlane.f32.xlu0 %v2933_v40 }
 0xb53   : > { %v2765_v33 = vmul.f32 %v2764_v3, %v2714_v8  ;;  %2937 = vmax.xlane.f32.xlu1 %v2936_v36 }
 0xb55   : > { %2766 = vst [vmem:[#allocation2 + $0x10] sm:$0xf] %v2765_v33  ;;  %v6161_v45 = vpop.f32.mrb[92].mxu1 }
 0xb56   : > { %v6163_v60 = vpop.f32.mrb[93].mxu1 }
 0xb57   : > { %v2939_v2 = vmax.f32 %v6161_v45, %v6163_v60  ;;  %v6167_v23 = vpop.f32.mrb[94].mxu1 }
 0xb58   : > { %v6169_v54 = vpop.f32.mrb[95].mxu1 }
 0xb59   : > { %v2942_v4 = vmax.f32 %v6167_v23, %v6169_v54  ;;  %2940 = vmax.xlane.f32.xlu0 %v2939_v2 }
 0xb5d   : > { %2943 = vmax.xlane.f32.xlu0 %v2942_v4  ;;  %v6173_v25 = vpop.f32.mrb[96].mxu1 }
 0xb5e   : > { %v6175_v52 = vpop.f32.mrb[97].mxu1 }
 0xb5f   : > { %v2945_v13 = vmax.f32 %v6173_v25, %v6175_v52  ;;  %v6179_v39 = vpop.f32.mrb[98].mxu1 }
 0xb60   : > { %v6181_v63 = vpop.f32.mrb[99].mxu1 }
 0xb61   : > { %v2948_v55 = vmax.f32 %v6179_v39, %v6181_v63  ;;  %2946 = vmax.xlane.f32.xlu0 %v2945_v13 }
 0xb65   : > { %2949 = vmax.xlane.f32.xlu0 %v2948_v55  ;;  %v6185_v15 = vpop.f32.mrb[100].mxu1 }
 0xb66   : > { %v6187_v20 = vpop.f32.mrb[101].mxu1 }
 0xb67   : > { %v2951_v19 = vmax.f32 %v6185_v15, %v6187_v20  ;;  %v6191_v32 = vpop.f32.mrb[102].mxu1 }
 0xb68   : > { %v6193_v24 = vpop.f32.mrb[103].mxu1 }
 0xb69   : > { %v2954_v6 = vmax.f32 %v6191_v32, %v6193_v24  ;;  %2952 = vmax.xlane.f32.xlu0 %v2951_v19 }
 0xb6d   : > { %2955 = vmax.xlane.f32.xlu0 %v2954_v6  ;;  %v6197_v14 = vpop.f32.mrb[104].mxu1 }
 0xb6e   : > { %v6199_v43 = vpop.f32.mrb[105].mxu1 }
 0xb6f   : > { %v2957_v18 = vmax.f32 %v6197_v14, %v6199_v43  ;;  %v6203_v61 = vpop.f32.mrb[106].mxu1 }
 0xb70   : > { %v6205_v16 = vpop.f32.mrb[107].mxu1 }
 0xb71   : > { %v2960_v5 = vmax.f32 %v6203_v61, %v6205_v16  ;;  %2958 = vmax.xlane.f32.xlu0 %v2957_v18 }
 0xb75   : > { %2961 = vmax.xlane.f32.xlu0 %v2960_v5  ;;  %v6209_v22 = vpop.f32.mrb[108].mxu1 }
 0xb76   : > { %v6211_v58 = vpop.f32.mrb[109].mxu1 }
 0xb77   : > { %v2963_v0 = vmax.f32 %v6209_v22, %v6211_v58  ;;  %v6215_v59 = vpop.f32.mrb[110].mxu1 }
 0xb78   : > { %v6217_v9 = vpop.f32.mrb[111].mxu1 }
 0xb79   : > { %v2966_v31 = vmax.f32 %v6215_v59, %v6217_v9  ;;  %2964 = vmax.xlane.f32.xlu0 %v2963_v0 }
 0xb7d   : > { %2967 = vmax.xlane.f32.xlu0 %v2966_v31  ;;  %v6221_v35 = vpop.f32.mrb[112].mxu1 }
 0xb7e   : > { %v6223_v56 = vpop.f32.mrb[113].mxu1 }
 0xb7f   : > { %v2969_v21 = vmax.f32 %v6221_v35, %v6223_v56  ;;  %v6227_v44 = vpop.f32.mrb[114].mxu1 }
 0xb80   : > { %v6229_v49 = vpop.f32.mrb[115].mxu1 }
 0xb81   : > { %v2972_v38 = vmax.f32 %v6227_v44, %v6229_v49  ;;  %2970 = vmax.xlane.f32.xlu1 %v2969_v21 }
 0xb83   : > { %2973 = vmax.xlane.f32.xlu0 %v2972_v38 }
 0xb85   : > { %v6233_v12 = vpop.f32.mrb[116].mxu1 }
 0xb86   : > { %v6235_v46 = vpop.f32.mrb[117].mxu1 }
 0xb87   : > { %v2975_v28 = vmax.f32 %v6233_v12, %v6235_v46  ;;  %v6239_v8 = vpop.f32.mrb[118].mxu1 }
 0xb88   : > { %v6241_v26 = vpop.f32.mrb[119].mxu1 }
 0xb89   : > { %v2978_v30 = vmax.f32 %v6239_v8, %v6241_v26  ;;  %2976 = vmax.xlane.f32.xlu1 %v2975_v28 }
 0xb8b   : > { %2979 = vmax.xlane.f32.xlu0 %v2978_v30 }
 0xbb6   : > { %3188 = vxpose.xlu1.c.b16.start.end [1/1] (short) %v3186_v11, 128 }
 0xbde   : > { %v2935_v17 = vpop.xlane.xlu0 %2934 }
 0xbdf   : > { %v2981_v51 = vsub.f32 %v6148_v37, %v2935_v17  ;;  %v2982_v29 = vsub.f32 %v6150_v47, %v2935_v17 }
 0xbe0   : > { %v2938_v48 = vpop.xlane.xlu1 %2937 }
 0xbe1   : > { %v3013_v40 = vmul.f32 1.442695, %v2981_v51  ;;  %v3015_v50 = vmul.f32 1.442695, %v2982_v29  ;;  %v2983_v3 = vsub.f32 %v6154_v53, %v2938_v48  ;;  %v2984_v36 = vsub.f32 %v6156_v10, %v2938_v48 }
 0xbe3   : > { %4787 = vpow2.f32 %v3013_v40  ;;  %v3017_v33 = vmul.f32 1.442695, %v2983_v3  ;;  %v3019_v2 = vmul.f32 1.442695, %v2984_v36 }
 0xbe4   : > { %4789 = vpow2.f32 %v3015_v50 }
 0xbe5   : > { %4791 = vpow2.f32 %v3017_v33 }
 0xbe6   : > { %4793 = vpow2.f32 %v3019_v2  ;;  %v2941_v4 = vpop.xlane.xlu0 %2940 }
 0xbe7   : > { %v2985_v13 = vsub.f32 %v6161_v45, %v2941_v4  ;;  %v2986_v37 = vsub.f32 %v6163_v60, %v2941_v4 }
 0xbe9   : > { %v3021_v55 = vmul.f32 1.442695, %v2985_v13  ;;  %v3023_v47 = vmul.f32 1.442695, %v2986_v37 }
 0xbea   : > { %v2944_v19 = vpop.xlane.xlu0 %2943 }
 0xbeb   : > { %v2987_v6 = vsub.f32 %v6167_v23, %v2944_v19  ;;  %v2988_v53 = vsub.f32 %v6169_v54, %v2944_v19  ;;  %4795 = vpow2.f32 %v3021_v55 }
 0xbec   : > { %4797 = vpow2.f32 %v3023_v47 }
 0xbed   : > { %v4788_v18 = vpop.eup %4787  ;;  %v3025_v10 = vmul.f32 1.442695, %v2987_v6  ;;  %v3027_v5 = vmul.f32 1.442695, %v2988_v53 }
 0xbee   : > { %v4790_v0 = vpop.eup %4789  ;;  %v2947_v31 = vpop.xlane.xlu0 %2946 }
 0xbef   : > { %v4792_v21 = vpop.eup %4791  ;;  %4799 = vpow2.f32 %v3025_v10  ;;  %v2989_v45 = vsub.f32 %v6173_v25, %v2947_v31  ;;  %v2990_v60 = vsub.f32 %v6175_v52, %v2947_v31 }
 0xbf0   : > { %v4794_v38 = vpop.eup %4793  ;;  %4801 = vpow2.f32 %v3027_v5  ;;  %v3077_v28 = vpack.c.bf16 %v4792_v21, %v4788_v18 }
 0xbf1   : > { %v3029_v30 = vmul.f32 1.442695, %v2989_v45  ;;  %v3078_v23 = vpack.c.bf16 %v4794_v38, %v4790_v0  ;;  %v3031_v11 = vmul.f32 1.442695, %v2990_v60 }
 0xbf2   : > { %v2950_v54 = vpop.xlane.xlu0 %2949 }
 0xbf3   : > { %3099 = vmatprep.subr.bf16.mxu0 %v3078_v23  ;;  %3139 = vmatprep.subr.bf16.mxu1 %v3078_v23  ;;  %v2991_v17 = vsub.f32 %v6179_v39, %v2950_v54  ;;  %v2992_v51 = vsub.f32 %v6181_v63, %v2950_v54  ;;  %4803 = vpow2.f32 %v3029_v30 }
 0xbf4   : > { %3100 = vmatpush1.bf16.xpose.msra.mxu0 %v3077_v28  ;;  %3140 = vmatpush1.bf16.xpose.msra.mxu1 %v3077_v28  ;;  %4805 = vpow2.f32 %v3031_v11 }
 0xbf5   : > { %v3033_v29 = vmul.f32 1.442695, %v2991_v17  ;;  %v3035_v25 = vmul.f32 1.442695, %v2992_v51  ;;  %v4796_v48 = vpop.eup %4795 }
 0xbf6   : > { %v2953_v52 = vpop.xlane.xlu0 %2952  ;;  %v4798_v3 = vpop.eup %4797 }
 0xbf7   : > { %4807 = vpow2.f32 %v3033_v29  ;;  %v2993_v40 = vsub.f32 %v6185_v15, %v2953_v52  ;;  %v2994_v50 = vsub.f32 %v6187_v20, %v2953_v52 }
 0xbf8   : > { %4809 = vpow2.f32 %v3035_v25 }
 0xbf9   : > { %v4800_v36 = vpop.eup %4799  ;;  %v3037_v33 = vmul.f32 1.442695, %v2993_v40  ;;  %v3039_v2 = vmul.f32 1.442695, %v2994_v50 }
 0xbfa   : > { %v4802_v39 = vpop.eup %4801  ;;  %v2956_v63 = vpop.xlane.xlu0 %2955  ;;  %v3079_v4 = vpack.c.bf16 %v4800_v36, %v4796_v48 }
 0xbfb   : > { %v2995_v13 = vsub.f32 %v6191_v32, %v2956_v63  ;;  %v2996_v37 = vsub.f32 %v6193_v24, %v2956_v63  ;;  %v3080_v55 = vpack.c.bf16 %v4802_v39, %v4798_v3  ;;  %4811 = vpow2.f32 %v3037_v33 }
 0xbfc   : > { %4813 = vpow2.f32 %v3039_v2 }
 0xbfd   : > { %v3041_v47 = vmul.f32 1.442695, %v2995_v13  ;;  %v3043_v19 = vmul.f32 1.442695, %v2996_v37  ;;  %3101 = vmatprep.subr.bf16.mxu0 %v3080_v55  ;;  %3141 = vmatprep.subr.bf16.mxu1 %v3080_v55  ;;  %v4804_v20 = vpop.eup %4803 }
 0xbfe   : > { %3102 = vmatpush1.bf16.xpose.msra.mxu0 %v3079_v4  ;;  %3142 = vmatpush1.bf16.xpose.msra.mxu1 %v3079_v4  ;;  %v2959_v15 = vpop.xlane.xlu0 %2958  ;;  %v4806_v18 = vpop.eup %4805 }
 0xbff   : > { %4815 = vpow2.f32 %v3041_v47  ;;  %v2997_v6 = vsub.f32 %v6197_v14, %v2959_v15  ;;  %v2998_v53 = vsub.f32 %v6199_v43, %v2959_v15 }
 0xc00   : > { %4817 = vpow2.f32 %v3043_v19 }
 0xc01   : > { %v4808_v32 = vpop.eup %4807  ;;  %v3045_v24 = vmul.f32 1.442695, %v2997_v6  ;;  %v3047_v5 = vmul.f32 1.442695, %v2998_v53 }
 0xc02   : > { %v4810_v10 = vpop.eup %4809  ;;  %v2962_v0 = vpop.xlane.xlu0 %2961  ;;  %v3081_v31 = vpack.c.bf16 %v4808_v32, %v4804_v20 }
 0xc03   : > { %v2999_v21 = vsub.f32 %v6203_v61, %v2962_v0  ;;  %v3000_v45 = vsub.f32 %v6205_v16, %v2962_v0  ;;  %v3082_v60 = vpack.c.bf16 %v4810_v10, %v4806_v18  ;;  %4819 = vpow2.f32 %v3045_v24 }
 0xc04   : > { %4821 = vpow2.f32 %v3047_v5 }
 0xc05   : > { %v3049_v38 = vmul.f32 1.442695, %v2999_v21  ;;  %v3051_v28 = vmul.f32 1.442695, %v3000_v45  ;;  %3103 = vmatprep.subr.bf16.mxu0 %v3082_v60  ;;  %3143 = vmatprep.subr.bf16.mxu1 %v3082_v60  ;;  %v4812_v43 = vpop.eup %4811 }
 0xc06   : > { %3104 = vmatpush1.bf16.xpose.msra.mxu0 %v3081_v31  ;;  %3144 = vmatpush1.bf16.xpose.msra.mxu1 %v3081_v31  ;;  %v2965_v14 = vpop.xlane.xlu0 %2964  ;;  %v4814_v11 = vpop.eup %4813 }
 0xc07   : > { %4823 = vpow2.f32 %v3049_v38  ;;  %v3001_v30 = vsub.f32 %v6209_v22, %v2965_v14  ;;  %v3002_v23 = vsub.f32 %v6211_v58, %v2965_v14 }
 0xc08   : > { %4825 = vpow2.f32 %v3051_v28 }
 0xc09   : > { %v4816_v61 = vpop.eup %4815  ;;  %v3053_v16 = vmul.f32 1.442695, %v3001_v30  ;;  %v3055_v17 = vmul.f32 1.442695, %v3002_v23 }
 0xc0a   : > { %v4818_v54 = vpop.eup %4817  ;;  %v2968_v51 = vpop.xlane.xlu0 %2967  ;;  %v3083_v29 = vpack.c.bf16 %v4816_v61, %v4812_v43  ;;  %v3204_v61 = vrot.slane %v5952_v34, 4 }
 0xc0b   : > { %v3003_v25 = vsub.f32 %v6215_v59, %v2968_v51  ;;  %v3004_v52 = vsub.f32 %v6217_v9, %v2968_v51  ;;  %v3084_v48 = vpack.c.bf16 %v4818_v54, %v4814_v11  ;;  %4827 = vpow2.f32 %v3053_v16 }
 0xc0c   : > { %4829 = vpow2.f32 %v3055_v17  ;;  %v3205_v11 = vrot.slane %v5954_v41, 4  ;;  %v3095_v16 = vrot.slane %v6119_v42, 2  ;;  %v3510_v54 = vrot.slane %v6121_v27, 4 }
 0xc0d   : > { %v3057_v40 = vmul.f32 1.442695, %v3003_v25  ;;  %v3059_v50 = vmul.f32 1.442695, %v3004_v52  ;;  %3105 = vmatprep.subr.bf16.mxu0 %v3084_v48  ;;  %3145 = vmatprep.subr.bf16.mxu1 %v3084_v48  ;;  %v4820_v58 = vpop.eup %4819  ;;  %v3231_v17 = vsel %vm747_vm1, %v3204_v61, 0 }
 0xc0e   : > { %3106 = vmatpush1.bf16.xpose.msra.mxu0 %v3083_v29  ;;  %3146 = vmatpush1.bf16.xpose.msra.mxu1 %v3083_v29  ;;  %v2971_v22 = vpop.xlane.xlu1 %2970  ;;  %v4822_v33 = vpop.eup %4821 }
 0xc0f   : > { %4831 = vpow2.f32 %v3057_v40  ;;  %v3005_v3 = vsub.f32 %v6221_v35, %v2971_v22  ;;  %v3006_v36 = vsub.f32 %v6223_v56, %v2971_v22 }
 0xc10   : > { %4833 = vpow2.f32 %v3059_v50  ;;  %v2974_v59 = vpop.xlane.xlu0 %2973 }
 0xc11   : > { %v4824_v9 = vpop.eup %4823  ;;  %v3061_v39 = vmul.f32 1.442695, %v3005_v3  ;;  %v3063_v2 = vmul.f32 1.442695, %v3006_v36  ;;  %v3007_v63 = vsub.f32 %v6227_v44, %v2974_v59  ;;  %v3008_v4 = vsub.f32 %v6229_v49, %v2974_v59 }
 0xc12   : > { %v4826_v13 = vpop.eup %4825  ;;  %v3085_v37 = vpack.c.bf16 %v4824_v9, %v4820_v58 }
 0xc13   : > { %4835 = vpow2.f32 %v3061_v39  ;;  %v3065_v55 = vmul.f32 1.442695, %v3007_v63  ;;  %v3067_v47 = vmul.f32 1.442695, %v3008_v4  ;;  %v3086_v19 = vpack.c.bf16 %v4826_v13, %v4822_v33 }
 0xc14   : > { %4837 = vpow2.f32 %v3063_v2 }
 0xc15   : > { %4839 = vpow2.f32 %v3065_v55  ;;  %3107 = vmatprep.subr.bf16.mxu0 %v3086_v19  ;;  %3147 = vmatprep.subr.bf16.mxu1 %v3086_v19  ;;  %v4828_v56 = vpop.eup %4827 }
 0xc16   : > { %4841 = vpow2.f32 %v3067_v47  ;;  %3108 = vmatpush1.bf16.xpose.msra.mxu0 %v3085_v37  ;;  %3148 = vmatpush1.bf16.xpose.msra.mxu1 %v3085_v37  ;;  %v2977_v35 = vpop.xlane.xlu1 %2976  ;;  %v4830_v49 = vpop.eup %4829 }
 0xc17   : > { %v3009_v15 = vsub.f32 %v6233_v12, %v2977_v35  ;;  %v3010_v44 = vsub.f32 %v6235_v46, %v2977_v35 }
 0xc18   : > { %v2980_v20 = vpop.xlane.xlu0 %2979 }
 0xc19   : > { %v4832_v6 = vpop.eup %4831  ;;  %v3069_v53 = vmul.f32 1.442695, %v3009_v15  ;;  %v3071_v18 = vmul.f32 1.442695, %v3010_v44  ;;  %v3011_v32 = vsub.f32 %v6239_v8, %v2980_v20  ;;  %v3012_v24 = vsub.f32 %v6241_v26, %v2980_v20 }
 0xc1a   : > { %v4834_v10 = vpop.eup %4833  ;;  %v3087_v5 = vpack.c.bf16 %v4832_v6, %v4828_v56 }
 0xc1b   : > { %4843 = vpow2.f32 %v3069_v53  ;;  %v3073_v0 = vmul.f32 1.442695, %v3011_v32  ;;  %v3075_v31 = vmul.f32 1.442695, %v3012_v24  ;;  %v3088_v21 = vpack.c.bf16 %v4834_v10, %v4830_v49 }
 0xc1c   : > { %4845 = vpow2.f32 %v3071_v18  ;;  %v3196_v51 = vpop.trf.xlu1 }
 0xc1d   : > { %v4836_v45 = vpop.eup %4835  ;;  %4847 = vpow2.f32 %v3073_v0  ;;  %3109 = vmatprep.subr.bf16.mxu0 %v3088_v21  ;;  %3149 = vmatprep.subr.bf16.mxu1 %v3088_v21 }
 0xc1e   : > { %v4838_v12 = vpop.eup %4837  ;;  %4849 = vpow2.f32 %v3075_v31  ;;  %3110 = vmatpush1.bf16.xpose.msra.mxu0 %v3087_v5  ;;  %3150 = vmatpush1.bf16.xpose.msra.mxu1 %v3087_v5 }
 0xc1f   : > { %v4840_v46 = vpop.eup %4839 }
 0xc20   : > { %v4842_v60 = vpop.eup %4841  ;;  %v3089_v8 = vpack.c.bf16 %v4840_v46, %v4836_v45  ;;  %v3197_v29 = vpop.trf.xlu1 }
 0xc21   : > { %v3090_v38 = vpack.c.bf16 %v4842_v60, %v4838_v12 }
 0xc23   : > { %3111 = vmatprep.subr.bf16.mxu0 %v3090_v38  ;;  %3151 = vmatprep.subr.bf16.mxu1 %v3090_v38 }
 0xc24   : > { %v3198_v25 = vpop.trf.xlu1 }
 0xc25   : > { %v4844_v26 = vpop.eup %4843 }
 0xc26   : > { %v4846_v28 = vpop.eup %4845  ;;  %3112 = vmatpush1.bf16.xpose.msra.mxu0 %v3089_v8  ;;  %3152 = vmatpush1.bf16.xpose.msra.mxu1 %v3089_v8 }
 0xc27   : > { %v4848_v14 = vpop.eup %4847 }
 0xc28   : > { %v4850_v43 = vpop.eup %4849  ;;  %v3091_v30 = vpack.c.bf16 %v4848_v14, %v4844_v26  ;;  %v3199_v52 = vpop.trf.xlu1 }
 0xc29   : > { %v3092_v23 = vpack.c.bf16 %v4850_v43, %v4846_v28 }
 0xc2b   : > { %3113 = vmatprep.subr.bf16.mxu0 %v3092_v23  ;;  %3153 = vmatprep.subr.bf16.mxu1 %v3092_v23 }
 0xc2c   : > { %v3200_v48 = vpop.trf.xlu1 }
 0xc2e   : > { %3114 = vmatpush1.bf16.xpose.msra.mxu0 %v3091_v30  ;;  %3154 = vmatpush1.bf16.xpose.msra.mxu1 %v3091_v30 }
 0xc2f   : > { %4311 = vmatprep.subr.msk.bf16.mxu0 %vm747_vm1, %v3205_v11 }
 0xc30   : > { %v3201_v40 = vpop.trf.xlu1 }
 0xc34   : > { %v3202_v50 = vpop.trf.xlu1 }
 0xc35   : > { %3132 = vmatmul.mubr.bf16.vlgmr.msra.gmra.mrb[132].mxu0 %v3095_v16  ;;  %3172 = vmatmul.mubr.bf16.vlgmr.msra.gmra.mrb[120].mxu1 %v5082_v57 }
 0xc36   : > { %3237 = vmatpush1.bf16.msra.mxu0 %v3231_v17  ;;  %3545 = vmatprep.mubr.bf16.mxu1 %v3510_v54 }
 0xc37   : > { %3268 = vmatprep.mubr.bf16.mxu0 %v5081_v7 }
 0xc38   : > { %v3203_v22 = vpop.trf.xlu1 }
 0xc3d   : > { %4312 = vmatmul.mubr.msk.bf16.vlgmr.msra.gmra.mrb[136].mxu0 %vm722_vm2, %v3196_v51 }
 0xc3e   : > { %3278 = vmatprep.mubr.bf16.mxu0 %v5081_v7 }
 0xc45   : > { %4313 = vmatmul.mubr.msk.bf16.gmra.mrb[140].mxu0 %vm722_vm2, %v3197_v29 }
 0xc46   : > { %3288 = vmatprep.mubr.bf16.mxu0 %v5081_v7 }
 0xc4d   : > { %4314 = vmatmul.mubr.msk.bf16.gmra.mrb[144].mxu0 %vm722_vm2, %v3198_v25 }
 0xc4e   : > { %3298 = vmatprep.mubr.bf16.mxu0 %v5081_v7 }
 0xc55   : > { %4315 = vmatmul.mubr.msk.bf16.gmra.mrb[148].mxu0 %vm722_vm2, %v3199_v52 }
 0xc56   : > { %3308 = vmatprep.mubr.bf16.mxu0 %v5081_v7 }
 0xc5d   : > { %4316 = vmatmul.mubr.msk.bf16.gmra.mrb[152].mxu0 %vm722_vm2, %v3200_v48 }
 0xc5e   : > { %3318 = vmatprep.mubr.bf16.mxu0 %v5081_v7 }
 0xc65   : > { %4317 = vmatmul.mubr.msk.bf16.gmra.mrb[156].mxu0 %vm722_vm2, %v3201_v40 }
 0xc66   : > { %3328 = vmatprep.mubr.bf16.mxu0 %v5081_v7 }
 0xc6d   : > { %4318 = vmatmul.mubr.msk.bf16.gmra.mrb[160].mxu0 %vm722_vm2, %v3202_v50 }
 0xc6e   : > { %3338 = vmatprep.mubr.bf16.mxu0 %v5081_v7 }
 0xc75   : > { %4319 = vmatmul.mubr.msk.bf16.gmra.mrb[164].mxu0 %vm722_vm2, %v3203_v22 }
 0xc76   : > { %3585 = vmatprep.mubr.bf16.mxu0 %v5082_v57 }
 0xd08   : > { %v3133_v58 = vpop.f32.mrb[132].mxu0  ;;  %v3173_v3 = vpop.f32.mrb[120].mxu1 }
 0xd09   : > { %4851 = vrcp.f32 %v3173_v3  ;;  %v3135_v36 = vpop.f32.mrb[133].mxu0  ;;  %v3175_v33 = vpop.f32.mrb[121].mxu1 }
 0xd0a   : > { %v3136_v59 = vpop.f32.mrb[134].mxu0  ;;  %v3176_v9 = vpop.f32.mrb[122].mxu1  ;;  %v3600_v33 = vrot.slane %v5925_v1, 6 }
 0xd0b   : > { %v3137_v39 = vpop.f32.mrb[135].mxu0  ;;  %v3177_v2 = vpop.f32.mrb[123].mxu1 }
 0xd10   : > { %v6302_v63 = vpop.f32.mrb[136].mxu0 }
 0xd11   : > { %v6304_v4 = vpop.f32.mrb[137].mxu0 }
 0xd12   : > { %v3349_v13 = vmax.f32 %v6302_v63, %v6304_v4  ;;  %v6308_v37 = vpop.f32.mrb[138].mxu0 }
 0xd13   : > { %v4852_v55 = vpop.eup %4851  ;;  %v6310_v47 = vpop.f32.mrb[139].mxu0 }
 0xd14   : > { %v3183_v19 = vrot.slane %v4852_v55, %v5492_v62  ;;  %v3352_v35 = vmax.f32 %v6308_v37, %v6310_v47  ;;  %3350 = vmax.xlane.f32.xlu0 %v3349_v13 }
 0xd16   : > { %v3184_v56 = vmul.f32 %v3183_v19, %v3133_v58 }
 0xd18   : > { %3185 = vst [vmem:[#allocation2 + $0x14] sm:$0xf] %v3184_v56  ;;  %3353 = vmax.xlane.f32.xlu0 %v3352_v35  ;;  %v6315_v15 = vpop.f32.mrb[140].mxu0 }
 0xd19   : > { %v6317_v44 = vpop.f32.mrb[141].mxu0 }
 0xd1a   : > { %v3355_v49 = vmax.f32 %v6315_v15, %v6317_v44  ;;  %v6321_v20 = vpop.f32.mrb[142].mxu0 }
 0xd1b   : > { %v6323_v6 = vpop.f32.mrb[143].mxu0 }
 0xd1c   : > { %v3358_v53 = vmax.f32 %v6321_v20, %v6323_v6  ;;  %3356 = vmax.xlane.f32.xlu0 %v3355_v49 }
 0xd20   : > { %3359 = vmax.xlane.f32.xlu0 %v3358_v53  ;;  %v6327_v18 = vpop.f32.mrb[144].mxu0 }
 0xd21   : > { %v6329_v32 = vpop.f32.mrb[145].mxu0 }
 0xd22   : > { %v3361_v24 = vmax.f32 %v6327_v18, %v6329_v32  ;;  %v6333_v10 = vpop.f32.mrb[146].mxu0 }
 0xd23   : > { %v6335_v5 = vpop.f32.mrb[147].mxu0 }
 0xd24   : > { %v3364_v0 = vmax.f32 %v6333_v10, %v6335_v5  ;;  %3362 = vmax.xlane.f32.xlu0 %v3361_v24 }
 0xd28   : > { %3365 = vmax.xlane.f32.xlu0 %v3364_v0  ;;  %v6339_v31 = vpop.f32.mrb[148].mxu0 }
 0xd29   : > { %v6341_v21 = vpop.f32.mrb[149].mxu0 }
 0xd2a   : > { %v3367_v45 = vmax.f32 %v6339_v31, %v6341_v21  ;;  %v6345_v12 = vpop.f32.mrb[150].mxu0 }
 0xd2b   : > { %v6347_v46 = vpop.f32.mrb[151].mxu0 }
 0xd2c   : > { %v3370_v60 = vmax.f32 %v6345_v12, %v6347_v46  ;;  %3368 = vmax.xlane.f32.xlu0 %v3367_v45 }
 0xd30   : > { %3371 = vmax.xlane.f32.xlu0 %v3370_v60  ;;  %v6351_v8 = vpop.f32.mrb[152].mxu0 }
 0xd31   : > { %v6353_v38 = vpop.f32.mrb[153].mxu0 }
 0xd32   : > { %v3373_v26 = vmax.f32 %v6351_v8, %v6353_v38  ;;  %v6357_v28 = vpop.f32.mrb[154].mxu0 }
 0xd33   : > { %v6359_v14 = vpop.f32.mrb[155].mxu0 }
 0xd34   : > { %v3376_v43 = vmax.f32 %v6357_v28, %v6359_v14  ;;  %3374 = vmax.xlane.f32.xlu0 %v3373_v26 }
 0xd38   : > { %3377 = vmax.xlane.f32.xlu0 %v3376_v43  ;;  %v6363_v30 = vpop.f32.mrb[156].mxu0 }
 0xd39   : > { %v6365_v23 = vpop.f32.mrb[157].mxu0 }
 0xd3a   : > { %v3379_v11 = vmax.f32 %v6363_v30, %v6365_v23  ;;  %v6369_v61 = vpop.f32.mrb[158].mxu0 }
 0xd3b   : > { %v6371_v16 = vpop.f32.mrb[159].mxu0 }
 0xd3c   : > { %v3382_v54 = vmax.f32 %v6369_v61, %v6371_v16  ;;  %3380 = vmax.xlane.f32.xlu0 %v3379_v11 }
 0xd3e   : > { %3383 = vmax.xlane.f32.xlu1 %v3382_v54 }
 0xd40   : > { %v6375_v17 = vpop.f32.mrb[160].mxu0 }
 0xd41   : > { %v6377_v51 = vpop.f32.mrb[161].mxu0 }
 0xd42   : > { %v3385_v29 = vmax.f32 %v6375_v17, %v6377_v51  ;;  %v6381_v25 = vpop.f32.mrb[162].mxu0 }
 0xd43   : > { %v6383_v52 = vpop.f32.mrb[163].mxu0 }
 0xd44   : > { %v3388_v48 = vmax.f32 %v6381_v25, %v6383_v52  ;;  %3386 = vmax.xlane.f32.xlu0 %v3385_v29 }
 0xd48   : > { %3389 = vmax.xlane.f32.xlu0 %v3388_v48  ;;  %v6387_v40 = vpop.f32.mrb[164].mxu0 }
 0xd49   : > { %v6389_v50 = vpop.f32.mrb[165].mxu0 }
 0xd4a   : > { %v3391_v22 = vmax.f32 %v6387_v40, %v6389_v50  ;;  %v6393_v58 = vpop.f32.mrb[166].mxu0 }
 0xd4b   : > { %v6395_v3 = vpop.f32.mrb[167].mxu0 }
 0xd4c   : > { %v3394_v36 = vmax.f32 %v6393_v58, %v6395_v3  ;;  %3392 = vmax.xlane.f32.xlu0 %v3391_v22 }
 0xd50   : > { %3395 = vmax.xlane.f32.xlu0 %v3394_v36 }
 0xd7d   : > { %3602 = vxpose.xlu0.c.b16.start.end [1/1] (short) %v3600_v33, 128 }
 0xda1   : > { %v3351_v59 = vpop.xlane.xlu0 %3350 }
 0xda2   : > { %v3397_v9 = vsub.f32 %v6302_v63, %v3351_v59  ;;  %v3398_v39 = vsub.f32 %v6304_v4, %v3351_v59 }
 0xda4   : > { %v3429_v2 = vmul.f32 1.442695, %v3397_v9  ;;  %v3431_v13 = vmul.f32 1.442695, %v3398_v39 }
 0xda5   : > { %v3354_v55 = vpop.xlane.xlu0 %3353 }
 0xda6   : > { %v3399_v19 = vsub.f32 %v6308_v37, %v3354_v55  ;;  %v3400_v35 = vsub.f32 %v6310_v47, %v3354_v55  ;;  %4853 = vpow2.f32 %v3429_v2 }
 0xda7   : > { %4855 = vpow2.f32 %v3431_v13 }
 0xda8   : > { %v3433_v56 = vmul.f32 1.442695, %v3399_v19  ;;  %v3435_v49 = vmul.f32 1.442695, %v3400_v35 }
 0xda9   : > { %v3357_v53 = vpop.xlane.xlu0 %3356 }
 0xdaa   : > { %4857 = vpow2.f32 %v3433_v56  ;;  %v3401_v1 = vsub.f32 %v6315_v15, %v3357_v53  ;;  %v3402_v24 = vsub.f32 %v6317_v44, %v3357_v53 }
 0xdab   : > { %4859 = vpow2.f32 %v3435_v49 }
 0xdac   : > { %v3437_v63 = vmul.f32 1.442695, %v3401_v1  ;;  %v3439_v4 = vmul.f32 1.442695, %v3402_v24 }
 0xdad   : > { %v3360_v0 = vpop.xlane.xlu0 %3359 }
 0xdae   : > { %v3403_v45 = vsub.f32 %v6321_v20, %v3360_v0  ;;  %v3404_v37 = vsub.f32 %v6323_v6, %v3360_v0  ;;  %4861 = vpow2.f32 %v3437_v63 }
 0xdaf   : > { %4863 = vpow2.f32 %v3439_v4 }
 0xdb0   : > { %v3441_v47 = vmul.f32 1.442695, %v3403_v45  ;;  %v3443_v60 = vmul.f32 1.442695, %v3404_v37  ;;  %v4854_v43 = vpop.eup %4853 }
 0xdb1   : > { %v3363_v26 = vpop.xlane.xlu0 %3362  ;;  %v4856_v44 = vpop.eup %4855 }
 0xdb2   : > { %4865 = vpow2.f32 %v3441_v47  ;;  %v3405_v11 = vsub.f32 %v6327_v18, %v3363_v26  ;;  %v3406_v15 = vsub.f32 %v6329_v32, %v3363_v26 }
 0xdb3   : > { %4867 = vpow2.f32 %v3443_v60 }
 0xdb4   : > { %v4858_v54 = vpop.eup %4857  ;;  %v3445_v29 = vmul.f32 1.442695, %v3405_v11  ;;  %v3447_v22 = vmul.f32 1.442695, %v3406_v15 }
 0xdb5   : > { %v4860_v48 = vpop.eup %4859  ;;  %v3366_v20 = vpop.xlane.xlu0 %3365  ;;  %v3493_v36 = vpack.c.bf16 %v4858_v54, %v4854_v43 }
 0xdb6   : > { %v3407_v6 = vsub.f32 %v6333_v10, %v3366_v20  ;;  %v3408_v33 = vsub.f32 %v6335_v5, %v3366_v20  ;;  %v3494_v59 = vpack.c.bf16 %v4860_v48, %v4856_v44  ;;  %4869 = vpow2.f32 %v3445_v29 }
 0xdb7   : > { %4871 = vpow2.f32 %v3447_v22 }
 0xdb8   : > { %v3449_v9 = vmul.f32 1.442695, %v3407_v6  ;;  %v3451_v39 = vmul.f32 1.442695, %v3408_v33  ;;  %3513 = vmatprep.subr.bf16.mxu1 %v3494_v59  ;;  %3553 = vmatprep.subr.bf16.mxu0 %v3494_v59  ;;  %v4862_v32 = vpop.eup %4861 }
 0xdb9   : > { %3514 = vmatpush1.bf16.xpose.msra.mxu1 %v3493_v36  ;;  %3554 = vmatpush1.bf16.xpose.msra.mxu0 %v3493_v36  ;;  %v3369_v18 = vpop.xlane.xlu0 %3368  ;;  %v4864_v55 = vpop.eup %4863 }
 0xdba   : > { %4873 = vpow2.f32 %v3449_v9  ;;  %v3409_v2 = vsub.f32 %v6339_v31, %v3369_v18  ;;  %v3410_v13 = vsub.f32 %v6341_v21, %v3369_v18 }
 0xdbb   : > { %4875 = vpow2.f32 %v3451_v39 }
 0xdbc   : > { %v4866_v10 = vpop.eup %4865  ;;  %v3453_v5 = vmul.f32 1.442695, %v3409_v2  ;;  %v3455_v35 = vmul.f32 1.442695, %v3410_v13 }
 0xdbd   : > { %v4868_v19 = vpop.eup %4867  ;;  %v3372_v56 = vpop.xlane.xlu0 %3371  ;;  %v3495_v49 = vpack.c.bf16 %v4866_v10, %v4862_v32 }
 0xdbe   : > { %v3411_v53 = vsub.f32 %v6345_v12, %v3372_v56  ;;  %v3412_v1 = vsub.f32 %v6347_v46, %v3372_v56  ;;  %v3496_v24 = vpack.c.bf16 %v4868_v19, %v4864_v55  ;;  %4877 = vpow2.f32 %v3453_v5 }
 0xdbf   : > { %4879 = vpow2.f32 %v3455_v35 }
 0xdc0   : > { %v3457_v63 = vmul.f32 1.442695, %v3411_v53  ;;  %v3459_v4 = vmul.f32 1.442695, %v3412_v1  ;;  %3515 = vmatprep.subr.bf16.mxu1 %v3496_v24  ;;  %3555 = vmatprep.subr.bf16.mxu0 %v3496_v24  ;;  %v4870_v21 = vpop.eup %4869 }
 0xdc1   : > { %3516 = vmatpush1.bf16.xpose.msra.mxu1 %v3495_v49  ;;  %3556 = vmatpush1.bf16.xpose.msra.mxu0 %v3495_v49  ;;  %v3375_v31 = vpop.xlane.xlu0 %3374  ;;  %v4872_v37 = vpop.eup %4871 }
 0xdc2   : > { %4881 = vpow2.f32 %v3457_v63  ;;  %v3413_v0 = vsub.f32 %v6351_v8, %v3375_v31  ;;  %v3414_v45 = vsub.f32 %v6353_v38, %v3375_v31 }
 0xdc3   : > { %4883 = vpow2.f32 %v3459_v4 }
 0xdc4   : > { %v4874_v12 = vpop.eup %4873  ;;  %v3461_v46 = vmul.f32 1.442695, %v3413_v0  ;;  %v3463_v60 = vmul.f32 1.442695, %v3414_v45 }
 0xdc5   : > { %v4876_v47 = vpop.eup %4875  ;;  %v3378_v26 = vpop.xlane.xlu0 %3377  ;;  %v3497_v43 = vpack.c.bf16 %v4874_v12, %v4870_v21 }
 0xdc6   : > { %v3415_v11 = vsub.f32 %v6357_v28, %v3378_v26  ;;  %v3416_v15 = vsub.f32 %v6359_v14, %v3378_v26  ;;  %v3498_v44 = vpack.c.bf16 %v4876_v47, %v4872_v37  ;;  %4885 = vpow2.f32 %v3461_v46 }
 0xdc7   : > { %4887 = vpow2.f32 %v3463_v60 }
 0xdc8   : > { %v3465_v54 = vmul.f32 1.442695, %v3415_v11  ;;  %v3467_v29 = vmul.f32 1.442695, %v3416_v15  ;;  %3517 = vmatprep.subr.bf16.mxu1 %v3498_v44  ;;  %3557 = vmatprep.subr.bf16.mxu0 %v3498_v44  ;;  %v4878_v38 = vpop.eup %4877 }
 0xdc9   : > { %3518 = vmatpush1.bf16.xpose.msra.mxu1 %v3497_v43  ;;  %3558 = vmatpush1.bf16.xpose.msra.mxu0 %v3497_v43  ;;  %v3381_v8 = vpop.xlane.xlu0 %3380  ;;  %v4880_v20 = vpop.eup %4879 }
 0xdca   : > { %4889 = vpow2.f32 %v3465_v54  ;;  %v3417_v48 = vsub.f32 %v6363_v30, %v3381_v8  ;;  %v3418_v22 = vsub.f32 %v6365_v23, %v3381_v8 }
 0xdcb   : > { %4891 = vpow2.f32 %v3467_v29  ;;  %v3384_v28 = vpop.xlane.xlu1 %3383 }
 0xdcc   : > { %v4882_v14 = vpop.eup %4881  ;;  %v3469_v36 = vmul.f32 1.442695, %v3417_v48  ;;  %v3471_v6 = vmul.f32 1.442695, %v3418_v22  ;;  %v3419_v33 = vsub.f32 %v6369_v61, %v3384_v28  ;;  %v3420_v59 = vsub.f32 %v6371_v16, %v3384_v28 }
 0xdcd   : > { %v4884_v9 = vpop.eup %4883  ;;  %v3499_v39 = vpack.c.bf16 %v4882_v14, %v4878_v38  ;;  %v3619_v22 = vrot.slane %v5954_v41, 6  ;;  %v3509_v28 = vrot.slane %v6119_v42, 4  ;;  %v3924_v14 = vrot.slane %v6121_v27, 6 }
 0xdce   : > { %4893 = vpow2.f32 %v3469_v36  ;;  %v3473_v18 = vmul.f32 1.442695, %v3419_v33  ;;  %v3475_v32 = vmul.f32 1.442695, %v3420_v59  ;;  %v3500_v2 = vpack.c.bf16 %v4884_v9, %v4880_v20 }
 0xdcf   : > { %4895 = vpow2.f32 %v3471_v6  ;;  %v3618_v20 = vrot.slane %v5952_v34, 6 }
 0xdd0   : > { %4897 = vpow2.f32 %v3473_v18  ;;  %3519 = vmatprep.subr.bf16.mxu1 %v3500_v2  ;;  %3559 = vmatprep.subr.bf16.mxu0 %v3500_v2  ;;  %v4886_v23 = vpop.eup %4885 }
 0xdd1   : > { %4899 = vpow2.f32 %v3475_v32  ;;  %3520 = vmatpush1.bf16.xpose.msra.mxu1 %v3499_v39  ;;  %3560 = vmatpush1.bf16.xpose.msra.mxu0 %v3499_v39  ;;  %v3387_v30 = vpop.xlane.xlu0 %3386  ;;  %v4888_v16 = vpop.eup %4887  ;;  %v3645_v36 = vsel %vm747_vm1, %v3618_v20, 0 }
 0xdd2   : > { %v3421_v13 = vsub.f32 %v6375_v17, %v3387_v30  ;;  %v3422_v61 = vsub.f32 %v6377_v51, %v3387_v30 }
 0xdd4   : > { %v4890_v55 = vpop.eup %4889  ;;  %v3477_v10 = vmul.f32 1.442695, %v3421_v13  ;;  %v3479_v19 = vmul.f32 1.442695, %v3422_v61 }
 0xdd5   : > { %v4892_v5 = vpop.eup %4891  ;;  %v3390_v35 = vpop.xlane.xlu0 %3389  ;;  %v3501_v56 = vpack.c.bf16 %v4890_v55, %v4886_v23 }
 0xdd6   : > { %v3423_v49 = vsub.f32 %v6381_v25, %v3390_v35  ;;  %v3424_v53 = vsub.f32 %v6383_v52, %v3390_v35  ;;  %v3502_v1 = vpack.c.bf16 %v4892_v5, %v4888_v16  ;;  %4901 = vpow2.f32 %v3477_v10 }
 0xdd7   : > { %4903 = vpow2.f32 %v3479_v19 }
 0xdd8   : > { %v4894_v24 = vpop.eup %4893  ;;  %v3481_v63 = vmul.f32 1.442695, %v3423_v49  ;;  %v3483_v4 = vmul.f32 1.442695, %v3424_v53  ;;  %3521 = vmatprep.subr.bf16.mxu1 %v3502_v1  ;;  %3561 = vmatprep.subr.bf16.mxu0 %v3502_v1 }
 0xdd9   : > { %v4896_v17 = vpop.eup %4895  ;;  %3522 = vmatpush1.bf16.xpose.msra.mxu1 %v3501_v56  ;;  %3562 = vmatpush1.bf16.xpose.msra.mxu0 %v3501_v56  ;;  %v3393_v51 = vpop.xlane.xlu0 %3392 }
 0xdda   : > { %v4898_v31 = vpop.eup %4897  ;;  %4905 = vpow2.f32 %v3481_v63  ;;  %v3425_v21 = vsub.f32 %v6387_v40, %v3393_v51  ;;  %v3426_v25 = vsub.f32 %v6389_v50, %v3393_v51 }
 0xddb   : > { %v4900_v0 = vpop.eup %4899  ;;  %4907 = vpow2.f32 %v3483_v4  ;;  %v3503_v52 = vpack.c.bf16 %v4898_v31, %v4894_v24 }
 0xddc   : > { %v3485_v45 = vmul.f32 1.442695, %v3425_v21  ;;  %v3504_v37 = vpack.c.bf16 %v4900_v0, %v4896_v17  ;;  %v3487_v12 = vmul.f32 1.442695, %v3426_v25 }
 0xddd   : > { %v3396_v46 = vpop.xlane.xlu0 %3395 }
 0xdde   : > { %3523 = vmatprep.subr.bf16.mxu1 %v3504_v37  ;;  %3563 = vmatprep.subr.bf16.mxu0 %v3504_v37  ;;  %v3427_v47 = vsub.f32 %v6393_v58, %v3396_v46  ;;  %v3428_v60 = vsub.f32 %v6395_v3, %v3396_v46  ;;  %4909 = vpow2.f32 %v3485_v45 }
 0xddf   : > { %4911 = vpow2.f32 %v3487_v12 }
 0xde0   : > { %v3489_v26 = vmul.f32 1.442695, %v3427_v47  ;;  %v3491_v43 = vmul.f32 1.442695, %v3428_v60  ;;  %v4902_v40 = vpop.eup %4901 }
 0xde1   : > { %3524 = vmatpush1.bf16.xpose.msra.mxu1 %v3503_v52  ;;  %3564 = vmatpush1.bf16.xpose.msra.mxu0 %v3503_v52  ;;  %v4904_v50 = vpop.eup %4903 }
 0xde2   : > { %4913 = vpow2.f32 %v3489_v26 }
 0xde3   : > { %4915 = vpow2.f32 %v3491_v43  ;;  %v3610_v41 = vpop.trf.xlu0 }
 0xde4   : > { %v4906_v11 = vpop.eup %4905 }
 0xde5   : > { %v4908_v15 = vpop.eup %4907  ;;  %v3505_v44 = vpack.c.bf16 %v4906_v11, %v4902_v40 }
 0xde6   : > { %v3506_v54 = vpack.c.bf16 %v4908_v15, %v4904_v50 }
 0xde7   : > { %v3611_v6 = vpop.trf.xlu0 }
 0xde8   : > { %3525 = vmatprep.subr.bf16.mxu1 %v3506_v54  ;;  %3565 = vmatprep.subr.bf16.mxu0 %v3506_v54  ;;  %v4910_v58 = vpop.eup %4909 }
 0xde9   : > { %3526 = vmatpush1.bf16.xpose.msra.mxu1 %v3505_v44  ;;  %3566 = vmatpush1.bf16.xpose.msra.mxu0 %v3505_v44  ;;  %v4912_v3 = vpop.eup %4911 }
 0xdeb   : > { %v3612_v34 = vpop.trf.xlu0 }
 0xdec   : > { %v4914_v29 = vpop.eup %4913 }
 0xded   : > { %v4916_v8 = vpop.eup %4915  ;;  %v3507_v38 = vpack.c.bf16 %v4914_v29, %v4910_v58 }
 0xdee   : > { %v3508_v48 = vpack.c.bf16 %v4916_v8, %v4912_v3 }
 0xdef   : > { %v3613_v27 = vpop.trf.xlu0 }
 0xdf0   : > { %3527 = vmatprep.subr.bf16.mxu1 %v3508_v48  ;;  %3567 = vmatprep.subr.bf16.mxu0 %v3508_v48  ;;  %v4025_v48 = vld [vmem:[%s6677_s7 + $0x8] sm:$0xff] }
 0xdf1   : > { %3528 = vmatpush1.bf16.xpose.msra.mxu1 %v3507_v38  ;;  %3568 = vmatpush1.bf16.xpose.msra.mxu0 %v3507_v38 }
 0xdf2   : > { %4320 = vmatprep.subr.msk.bf16.mxu1 %vm747_vm1, %v3619_v22 }
 0xdf3   : > { %v3614_v33 = vpop.trf.xlu0 }
 0xdf7   : > { %v3615_v59 = vpop.trf.xlu0 }
 0xdf8   : > { %3546 = vmatmul.mubr.bf16.vlgmr.msra.gmra.mrb[124].mxu1 %v3509_v28  ;;  %3586 = vmatmul.mubr.bf16.vlgmr.msra.gmra.mrb[168].mxu0 %v5082_v57 }
 0xdf9   : > { %3651 = vmatpush1.bf16.msra.mxu1 %v3645_v36  ;;  %3959 = vmatprep.mubr.bf16.mxu0 %v3924_v14 }
 0xdfa   : > { %3682 = vmatprep.mubr.bf16.mxu1 %v5081_v7 }
 0xdfb   : > { %v3616_v9 = vpop.trf.xlu0 }
 0xdff   : > { %v3617_v39 = vpop.trf.xlu0 }
 0xe00   : > { %4321 = vmatmul.mubr.msk.bf16.vlgmr.msra.gmra.mrb[128].mxu1 %vm722_vm2, %v3610_v41 }
 0xe01   : > { %3692 = vmatprep.mubr.bf16.mxu1 %v5081_v7 }
 0xe08   : > { %4322 = vmatmul.mubr.msk.bf16.gmra.mrb[132].mxu1 %vm722_vm2, %v3611_v6 }
 0xe09   : > { %3702 = vmatprep.mubr.bf16.mxu1 %v5081_v7 }
 0xe10   : > { %4323 = vmatmul.mubr.msk.bf16.gmra.mrb[136].mxu1 %vm722_vm2, %v3612_v34 }
 0xe11   : > { %3712 = vmatprep.mubr.bf16.mxu1 %v5081_v7 }
 0xe18   : > { %4324 = vmatmul.mubr.msk.bf16.gmra.mrb[140].mxu1 %vm722_vm2, %v3613_v27 }
 0xe19   : > { %3722 = vmatprep.mubr.bf16.mxu1 %v5081_v7 }
 0xe20   : > { %4325 = vmatmul.mubr.msk.bf16.gmra.mrb[144].mxu1 %vm722_vm2, %v3614_v33 }
 0xe21   : > { %3732 = vmatprep.mubr.bf16.mxu1 %v5081_v7 }
 0xe28   : > { %4326 = vmatmul.mubr.msk.bf16.gmra.mrb[148].mxu1 %vm722_vm2, %v3615_v59 }
 0xe29   : > { %3742 = vmatprep.mubr.bf16.mxu1 %v5081_v7 }
 0xe30   : > { %4327 = vmatmul.mubr.msk.bf16.gmra.mrb[152].mxu1 %vm722_vm2, %v3616_v9 }
 0xe31   : > { %3752 = vmatprep.mubr.bf16.mxu1 %v5081_v7 }
 0xe38   : > { %4328 = vmatmul.mubr.msk.bf16.gmra.mrb[156].mxu1 %vm722_vm2, %v3617_v39  ;;  %v4024_v39 = vld [vmem:[%s6677_s7] sm:$0xff] }
 0xe39   : > { %3999 = vmatprep.mubr.bf16.mxu1 %v5082_v57 }
 0xecb   : > { %v3547_v18 = vpop.f32.mrb[124].mxu1  ;;  %v3587_v32 = vpop.f32.mrb[168].mxu0 }
 0xecc   : > { %4917 = vrcp.f32 %v3587_v32  ;;  %v3549_v2 = vpop.f32.mrb[125].mxu1  ;;  %v3589_v30 = vpop.f32.mrb[169].mxu0  ;;  %v4027_v32 = vld [vmem:[%s6677_s7 + $0x18] sm:$0xff] }
 0xecd   : > { %v3550_v23 = vpop.f32.mrb[126].mxu1  ;;  %v3590_v13 = vpop.f32.mrb[170].mxu0 }
 0xece   : > { %v3551_v61 = vpop.f32.mrb[127].mxu1  ;;  %v3591_v16 = vpop.f32.mrb[171].mxu0 }
 0xed3   : > { %v6456_v55 = vpop.f32.mrb[128].mxu1 }
 0xed4   : > { %v6458_v10 = vpop.f32.mrb[129].mxu1 }
 0xed5   : > { %v3763_v7 = vmax.f32 %v6456_v55, %v6458_v10  ;;  %v6462_v5 = vpop.f32.mrb[130].mxu1 }
 0xed6   : > { %v4918_v19 = vpop.eup %4917  ;;  %v6464_v35 = vpop.f32.mrb[131].mxu1 }
 0xed7   : > { %v3597_v56 = vrot.slane %v4918_v19, %v5492_v62  ;;  %v3766_v49 = vmax.f32 %v6462_v5, %v6464_v35  ;;  %3764 = vmax.xlane.f32.xlu1 %v3763_v7 }
 0xed9   : > { %v3598_v53 = vmul.f32 %v3597_v56, %v3547_v18  ;;  %v4026_v18 = vld [vmem:[%s6677_s7 + $0x10] sm:$0xff] }
 0xedb   : > { %3599 = vst [vmem:[#allocation2 + $0x18] sm:$0xf] %v3598_v53  ;;  %3767 = vmax.xlane.f32.xlu1 %v3766_v49  ;;  %v6469_v1 = vpop.f32.mrb[132].mxu1 }
 0xedc   : > { %v6471_v24 = vpop.f32.mrb[133].mxu1 }
 0xedd   : > { %v3769_v63 = vmax.f32 %v6469_v1, %v6471_v24  ;;  %v6475_v4 = vpop.f32.mrb[134].mxu1 }
 0xede   : > { %v6477_v17 = vpop.f32.mrb[135].mxu1 }
 0xedf   : > { %v3772_v51 = vmax.f32 %v6475_v4, %v6477_v17  ;;  %3770 = vmax.xlane.f32.xlu1 %v3769_v63 }
 0xee3   : > { %3773 = vmax.xlane.f32.xlu1 %v3772_v51  ;;  %v6481_v31 = vpop.f32.mrb[136].mxu1 }
 0xee4   : > { %v6483_v21 = vpop.f32.mrb[137].mxu1 }
 0xee5   : > { %v3775_v25 = vmax.f32 %v6481_v31, %v6483_v21  ;;  %v6487_v0 = vpop.f32.mrb[138].mxu1 }
 0xee6   : > { %v6489_v52 = vpop.f32.mrb[139].mxu1 }
 0xee7   : > { %v3778_v45 = vmax.f32 %v6487_v0, %v6489_v52  ;;  %3776 = vmax.xlane.f32.xlu1 %v3775_v25 }
 0xeeb   : > { %3779 = vmax.xlane.f32.xlu1 %v3778_v45  ;;  %v6493_v37 = vpop.f32.mrb[140].mxu1 }
 0xeec   : > { %v6495_v12 = vpop.f32.mrb[141].mxu1 }
 0xeed   : > { %v3781_v46 = vmax.f32 %v6493_v37, %v6495_v12  ;;  %v6499_v47 = vpop.f32.mrb[142].mxu1 }
 0xeee   : > { %v6501_v60 = vpop.f32.mrb[143].mxu1 }
 0xeef   : > { %v3784_v26 = vmax.f32 %v6499_v47, %v6501_v60  ;;  %3782 = vmax.xlane.f32.xlu0 %v3781_v46 }
 0xef1   : > { %3785 = vmax.xlane.f32.xlu1 %v3784_v26 }
 0xef3   : > { %v6505_v43 = vpop.f32.mrb[144].mxu1 }
 0xef4   : > { %v6507_v40 = vpop.f32.mrb[145].mxu1 }
 0xef5   : > { %v3787_v50 = vmax.f32 %v6505_v43, %v6507_v40  ;;  %v6511_v11 = vpop.f32.mrb[146].mxu1 }
 0xef6   : > { %v6513_v15 = vpop.f32.mrb[147].mxu1 }
 0xef7   : > { %v3790_v44 = vmax.f32 %v6511_v11, %v6513_v15  ;;  %3788 = vmax.xlane.f32.xlu1 %v3787_v50 }
 0xefb   : > { %3791 = vmax.xlane.f32.xlu1 %v3790_v44  ;;  %v6517_v54 = vpop.f32.mrb[148].mxu1 }
 0xefc   : > { %v6519_v58 = vpop.f32.mrb[149].mxu1 }
 0xefd   : > { %v3793_v3 = vmax.f32 %v6517_v54, %v6519_v58  ;;  %v6523_v29 = vpop.f32.mrb[150].mxu1 }
 0xefe   : > { %v6525_v8 = vpop.f32.mrb[151].mxu1 }
 0xeff   : > { %v3796_v38 = vmax.f32 %v6523_v29, %v6525_v8  ;;  %3794 = vmax.xlane.f32.xlu1 %v3793_v3 }
 0xf03   : > { %3797 = vmax.xlane.f32.xlu1 %v3796_v38  ;;  %v6532_v22 = vpop.f32.mrb[152].mxu1 }
 0xf04   : > { %v6534_v20 = vpop.f32.mrb[153].mxu1 }
 0xf05   : > { %v3799_v28 = vmax.f32 %v6532_v22, %v6534_v20  ;;  %4035 = vperm.xlu0 %4439, %v4025_v48   ;;  %v6538_v14 = vpop.f32.mrb[154].mxu1 }
 0xf06   : > { %v6540_v36 = vpop.f32.mrb[155].mxu1 }
 0xf07   : > { %v3802_v41 = vmax.f32 %v6538_v14, %v6540_v36  ;;  %3800 = vmax.xlane.f32.xlu1 %v3799_v28 }
 0xf0b   : > { %3803 = vmax.xlane.f32.xlu1 %v3802_v41  ;;  %v6544_v6 = vpop.f32.mrb[156].mxu1 }
 0xf0c   : > { %v6546_v34 = vpop.f32.mrb[157].mxu1 }
 0xf0d   : > { %v3805_v27 = vmax.f32 %v6544_v6, %v6546_v34  ;;  %v6550_v33 = vpop.f32.mrb[158].mxu1 }
 0xf0e   : > { %v6552_v59 = vpop.f32.mrb[159].mxu1 }
 0xf0f   : > { %v3808_v9 = vmax.f32 %v6550_v33, %v6552_v59  ;;  %3806 = vmax.xlane.f32.xlu1 %v3805_v27 }
 0xf13   : > { %3809 = vmax.xlane.f32.xlu1 %v3808_v9 }
 0xf24   : > { %4030 = vperm.xlu1 %4440, %v4024_v39  }
 0xf28   : > { %4040 = vperm.xlu1 %4440, %v4026_v18  }
 0xf2c   : > { %4045 = vperm.xlu1 %4440, %v4027_v32  }
 0xf64   : > { %v3765_v2 = vpop.xlane.xlu1 %3764 }
 0xf65   : > { %v3811_v30 = vsub.f32 %v6456_v55, %v3765_v2  ;;  %v3812_v23 = vsub.f32 %v6458_v10, %v3765_v2 }
 0xf67   : > { %v3843_v13 = vmul.f32 1.442695, %v3811_v30  ;;  %v3845_v61 = vmul.f32 1.442695, %v3812_v23 }
 0xf68   : > { %v3768_v16 = vpop.xlane.xlu1 %3767 }
 0xf69   : > { %v3813_v7 = vsub.f32 %v6462_v5, %v3768_v16  ;;  %v3814_v19 = vsub.f32 %v6464_v35, %v3768_v16  ;;  %4919 = vpow2.f32 %v3843_v13 }
 0xf6a   : > { %4921 = vpow2.f32 %v3845_v61 }
 0xf6b   : > { %v3847_v56 = vmul.f32 1.442695, %v3813_v7  ;;  %v3849_v49 = vmul.f32 1.442695, %v3814_v19 }
 0xf6c   : > { %v3771_v53 = vpop.xlane.xlu1 %3770 }
 0xf6d   : > { %4923 = vpow2.f32 %v3847_v56  ;;  %v3815_v63 = vsub.f32 %v6469_v1, %v3771_v53  ;;  %v3816_v51 = vsub.f32 %v6471_v24, %v3771_v53 }
 0xf6e   : > { %4925 = vpow2.f32 %v3849_v49 }
 0xf6f   : > { %v3851_v55 = vmul.f32 1.442695, %v3815_v63  ;;  %v3853_v10 = vmul.f32 1.442695, %v3816_v51 }
 0xf70   : > { %v3774_v25 = vpop.xlane.xlu1 %3773 }
 0xf71   : > { %v3817_v45 = vsub.f32 %v6475_v4, %v3774_v25  ;;  %v3818_v5 = vsub.f32 %v6477_v17, %v3774_v25  ;;  %4927 = vpow2.f32 %v3851_v55 }
 0xf72   : > { %4929 = vpow2.f32 %v3853_v10 }
 0xf73   : > { %v3855_v35 = vmul.f32 1.442695, %v3817_v45  ;;  %v3857_v46 = vmul.f32 1.442695, %v3818_v5  ;;  %v4920_v50 = vpop.eup %4919 }
 0xf74   : > { %v3777_v26 = vpop.xlane.xlu1 %3776  ;;  %v4922_v24 = vpop.eup %4921 }
 0xf75   : > { %4931 = vpow2.f32 %v3855_v35  ;;  %v3819_v44 = vsub.f32 %v6481_v31, %v3777_v26  ;;  %v3820_v1 = vsub.f32 %v6483_v21, %v3777_v26 }
 0xf76   : > { %4933 = vpow2.f32 %v3857_v46 }
 0xf77   : > { %v4924_v3 = vpop.eup %4923  ;;  %v3859_v38 = vmul.f32 1.442695, %v3819_v44  ;;  %v3861_v28 = vmul.f32 1.442695, %v3820_v1 }
 0xf78   : > { %v4926_v48 = vpop.eup %4925  ;;  %v3780_v4 = vpop.xlane.xlu1 %3779  ;;  %v3907_v41 = vpack.c.bf16 %v4924_v3, %v4920_v50 }
 0xf79   : > { %v3821_v17 = vsub.f32 %v6487_v0, %v3780_v4  ;;  %v3822_v27 = vsub.f32 %v6489_v52, %v3780_v4  ;;  %v3908_v9 = vpack.c.bf16 %v4926_v48, %v4922_v24  ;;  %4935 = vpow2.f32 %v3859_v38 }
 0xf7a   : > { %4937 = vpow2.f32 %v3861_v28 }
 0xf7b   : > { %v3863_v39 = vmul.f32 1.442695, %v3821_v17  ;;  %v3865_v18 = vmul.f32 1.442695, %v3822_v27  ;;  %3927 = vmatprep.subr.bf16.mxu0 %v3908_v9  ;;  %3967 = vmatprep.subr.bf16.mxu1 %v3908_v9  ;;  %v4928_v21 = vpop.eup %4927 }
 0xf7c   : > { %3928 = vmatpush1.bf16.xpose.msra.mxu0 %v3907_v41  ;;  %3968 = vmatpush1.bf16.xpose.msra.mxu1 %v3907_v41  ;;  %v3783_v31 = vpop.xlane.xlu0 %3782  ;;  %v4930_v30 = vpop.eup %4929 }
 0xf7d   : > { %4939 = vpow2.f32 %v3863_v39  ;;  %v3823_v32 = vsub.f32 %v6493_v37, %v3783_v31  ;;  %v3824_v2 = vsub.f32 %v6495_v12, %v3783_v31 }
 0xf7e   : > { %4941 = vpow2.f32 %v3865_v18  ;;  %v3786_v0 = vpop.xlane.xlu1 %3785 }
 0xf7f   : > { %v4932_v52 = vpop.eup %4931  ;;  %v3867_v23 = vmul.f32 1.442695, %v3823_v32  ;;  %v3869_v13 = vmul.f32 1.442695, %v3824_v2  ;;  %v3825_v61 = vsub.f32 %v6499_v47, %v3786_v0  ;;  %v3826_v16 = vsub.f32 %v6501_v60, %v3786_v0 }
 0xf80   : > { %v4934_v7 = vpop.eup %4933  ;;  %v3909_v19 = vpack.c.bf16 %v4932_v52, %v4928_v21 }
 0xf81   : > { %4943 = vpow2.f32 %v3867_v23  ;;  %v3871_v56 = vmul.f32 1.442695, %v3825_v61  ;;  %v3873_v49 = vmul.f32 1.442695, %v3826_v16  ;;  %v3910_v53 = vpack.c.bf16 %v4934_v7, %v4930_v30 }
 0xf82   : > { %4945 = vpow2.f32 %v3869_v13 }
 0xf83   : > { %4947 = vpow2.f32 %v3871_v56  ;;  %3929 = vmatprep.subr.bf16.mxu0 %v3910_v53  ;;  %3969 = vmatprep.subr.bf16.mxu1 %v3910_v53  ;;  %v4936_v12 = vpop.eup %4935 }
 0xf84   : > { %4949 = vpow2.f32 %v3873_v49  ;;  %3930 = vmatpush1.bf16.xpose.msra.mxu0 %v3909_v19  ;;  %3970 = vmatpush1.bf16.xpose.msra.mxu1 %v3909_v19  ;;  %v3789_v37 = vpop.xlane.xlu1 %3788  ;;  %v4938_v60 = vpop.eup %4937 }
 0xf85   : > { %v3827_v63 = vsub.f32 %v6505_v43, %v3789_v37  ;;  %v3828_v47 = vsub.f32 %v6507_v40, %v3789_v37 }
 0xf87   : > { %v4940_v51 = vpop.eup %4939  ;;  %v3875_v55 = vmul.f32 1.442695, %v3827_v63  ;;  %v3877_v25 = vmul.f32 1.442695, %v3828_v47 }
 0xf88   : > { %v4942_v10 = vpop.eup %4941  ;;  %v3792_v45 = vpop.xlane.xlu1 %3791  ;;  %v3911_v5 = vpack.c.bf16 %v4940_v51, %v4936_v12 }
 0xf89   : > { %v3829_v35 = vsub.f32 %v6511_v11, %v3792_v45  ;;  %v3830_v46 = vsub.f32 %v6513_v15, %v3792_v45  ;;  %v3912_v26 = vpack.c.bf16 %v4942_v10, %v4938_v60  ;;  %4951 = vpow2.f32 %v3875_v55 }
 0xf8a   : > { %4953 = vpow2.f32 %v3877_v25 }
 0xf8b   : > { %v4944_v50 = vpop.eup %4943  ;;  %v3879_v44 = vmul.f32 1.442695, %v3829_v35  ;;  %v3881_v1 = vmul.f32 1.442695, %v3830_v46  ;;  %3931 = vmatprep.subr.bf16.mxu0 %v3912_v26  ;;  %3971 = vmatprep.subr.bf16.mxu1 %v3912_v26 }
 0xf8c   : > { %v4946_v43 = vpop.eup %4945  ;;  %3932 = vmatpush1.bf16.xpose.msra.mxu0 %v3911_v5  ;;  %3972 = vmatpush1.bf16.xpose.msra.mxu1 %v3911_v5  ;;  %v3795_v40 = vpop.xlane.xlu1 %3794 }
 0xf8d   : > { %v4948_v24 = vpop.eup %4947  ;;  %4955 = vpow2.f32 %v3879_v44  ;;  %v3831_v3 = vsub.f32 %v6517_v54, %v3795_v40  ;;  %v3832_v11 = vsub.f32 %v6519_v58, %v3795_v40  ;;  %v3923_v40 = vrot.slane %v6119_v42, 6 }
 0xf8e   : > { %v4950_v38 = vpop.eup %4949  ;;  %4957 = vpow2.f32 %v3881_v1  ;;  %v3913_v15 = vpack.c.bf16 %v4948_v24, %v4944_v50  ;;  %v4019_v50 = vld [vmem:[#allocation2 + $0x8] sm:$0xff]  ;;  %v4018_v1 = vld [vmem:[#allocation2] sm:$0xff] }
 0xf8f   : > { %v3883_v48 = vmul.f32 1.442695, %v3831_v3  ;;  %v3914_v28 = vpack.c.bf16 %v4950_v38, %v4946_v43  ;;  %v3885_v4 = vmul.f32 1.442695, %v3832_v11  ;;  %v4022_v43 = vpack.c.bf16 %v4019_v50, %v4018_v1  ;;  %v4455_v24 = vld [vmem:[%s6676_s6] sm:$0xff]  }
 0xf90   : > { %v3798_v41 = vpop.xlane.xlu1 %3797 }
 0xf91   : > { %v3833_v17 = vsub.f32 %v6523_v29, %v3798_v41  ;;  %v3834_v27 = vsub.f32 %v6525_v8, %v3798_v41  ;;  %3933 = vmatprep.subr.bf16.mxu0 %v3914_v28  ;;  %3973 = vmatprep.subr.bf16.mxu1 %v3914_v28  ;;  %4959 = vpow2.f32 %v3883_v48 }
 0xf92   : > { %4961 = vpow2.f32 %v3885_v4 }
 0xf93   : > { %v3887_v9 = vmul.f32 1.442695, %v3833_v17  ;;  %v3889_v39 = vmul.f32 1.442695, %v3834_v27  ;;  %v4952_v58 = vpop.eup %4951  ;;  %v4020_v27 = vld [vmem:[#allocation2 + $0x10] sm:$0xff] }
 0xf94   : > { %3934 = vmatpush1.bf16.xpose.msra.mxu0 %v3913_v15  ;;  %3974 = vmatpush1.bf16.xpose.msra.mxu1 %v3913_v15  ;;  %v3801_v54 = vpop.xlane.xlu1 %3800  ;;  %v4954_v21 = vpop.eup %4953 }
 0xf95   : > { %4963 = vpow2.f32 %v3887_v9  ;;  %v3835_v18 = vsub.f32 %v6532_v22, %v3801_v54  ;;  %v3836_v31 = vsub.f32 %v6534_v20, %v3801_v54  ;;  %v4456_v54 = vld [vmem:[%s6676_s6 + $0x8] sm:$0xff]  }
 0xf96   : > { %4965 = vpow2.f32 %v3889_v39 }
 0xf97   : > { %v4956_v29 = vpop.eup %4955  ;;  %v3891_v32 = vmul.f32 1.442695, %v3835_v18  ;;  %v3893_v2 = vmul.f32 1.442695, %v3836_v31 }
 0xf98   : > { %v4958_v8 = vpop.eup %4957  ;;  %v3804_v30 = vpop.xlane.xlu1 %3803  ;;  %v3915_v0 = vpack.c.bf16 %v4956_v29, %v4952_v58 }
 0xf99   : > { %v3837_v52 = vsub.f32 %v6538_v14, %v3804_v30  ;;  %v3838_v23 = vsub.f32 %v6540_v36, %v3804_v30  ;;  %v3916_v13 = vpack.c.bf16 %v4958_v8, %v4954_v21  ;;  %4967 = vpow2.f32 %v3891_v32 }
 0xf9a   : > { %4969 = vpow2.f32 %v3893_v2  ;;  %v4036_v2 = vpop.permute.xlu0 %4035 }
 0xf9b   : > { %v3895_v61 = vmul.f32 1.442695, %v3837_v52  ;;  %v3897_v16 = vmul.f32 1.442695, %v3838_v23  ;;  %3935 = vmatprep.subr.bf16.mxu0 %v3916_v13  ;;  %3975 = vmatprep.subr.bf16.mxu1 %v3916_v13  ;;  %v4960_v20 = vpop.eup %4959 }
 0xf9c   : > { %3936 = vmatpush1.bf16.xpose.msra.mxu0 %v3915_v0  ;;  %3976 = vmatpush1.bf16.xpose.msra.mxu1 %v3915_v0  ;;  %v3807_v22 = vpop.xlane.xlu1 %3806  ;;  %v4962_v56 = vpop.eup %4961 }
 0xf9d   : > { %4971 = vpow2.f32 %v3895_v61  ;;  %v3839_v7 = vsub.f32 %v6544_v6, %v3807_v22  ;;  %v3840_v19 = vsub.f32 %v6546_v34, %v3807_v22 }
 0xf9e   : > { %4973 = vpow2.f32 %v3897_v16 }
 0xf9f   : > { %v4964_v14 = vpop.eup %4963  ;;  %v3899_v36 = vmul.f32 1.442695, %v3839_v7  ;;  %v3901_v53 = vmul.f32 1.442695, %v3840_v19 }
 0xfa0   : > { %v4966_v49 = vpop.eup %4965  ;;  %v3810_v37 = vpop.xlane.xlu1 %3809  ;;  %v3917_v12 = vpack.c.bf16 %v4964_v14, %v4960_v20 }
 0xfa1   : > { %v3841_v63 = vsub.f32 %v6550_v33, %v3810_v37  ;;  %v3842_v47 = vsub.f32 %v6552_v59, %v3810_v37  ;;  %v3918_v60 = vpack.c.bf16 %v4966_v49, %v4962_v56  ;;  %4975 = vpow2.f32 %v3899_v36 }
 0xfa2   : > { %4977 = vpow2.f32 %v3901_v53 }
 0xfa3   : > { %v3903_v51 = vmul.f32 1.442695, %v3841_v63  ;;  %v3905_v55 = vmul.f32 1.442695, %v3842_v47  ;;  %3937 = vmatprep.subr.bf16.mxu0 %v3918_v60  ;;  %3977 = vmatprep.subr.bf16.mxu1 %v3918_v60  ;;  %v4968_v6 = vpop.eup %4967 }
 0xfa4   : > { %3938 = vmatpush1.bf16.xpose.msra.mxu0 %v3917_v12  ;;  %3978 = vmatpush1.bf16.xpose.msra.mxu1 %v3917_v12  ;;  %v4970_v34 = vpop.eup %4969  ;;  %v4031_v58 = vpop.permute.xlu1 %4030 }
 0xfa5   : > { %4979 = vpow2.f32 %v3903_v51 }
 0xfa6   : > { %4981 = vpow2.f32 %v3905_v55 }
 0xfa7   : > { %v4972_v10 = vpop.eup %4971 }
 0xfa8   : > { %v4974_v25 = vpop.eup %4973  ;;  %v3919_v45 = vpack.c.bf16 %v4972_v10, %v4968_v6  ;;  %v4041_v18 = vpop.permute.xlu1 %4040 }
 0xfa9   : > { %v3920_v5 = vpack.c.bf16 %v4974_v25, %v4970_v34 }
 0xfab   : > { %3939 = vmatprep.subr.bf16.mxu0 %v3920_v5  ;;  %3979 = vmatprep.subr.bf16.mxu1 %v3920_v5  ;;  %v4976_v33 = vpop.eup %4975 }
 0xfac   : > { %3940 = vmatpush1.bf16.xpose.msra.mxu0 %v3919_v45  ;;  %3980 = vmatpush1.bf16.xpose.msra.mxu1 %v3919_v45  ;;  %v4978_v59 = vpop.eup %4977  ;;  %v4046_v29 = vpop.permute.xlu1 %4045 }
 0xfaf   : > { %v4980_v35 = vpop.eup %4979 }
 0xfb0   : > { %v4982_v46 = vpop.eup %4981  ;;  %v3921_v26 = vpack.c.bf16 %v4980_v35, %v4976_v33 }
 0xfb1   : > { %v3922_v44 = vpack.c.bf16 %v4982_v46, %v4978_v59 }
 0xfb3   : > { %3941 = vmatprep.subr.bf16.mxu0 %v3922_v44  ;;  %3981 = vmatprep.subr.bf16.mxu1 %v3922_v44 }
 0xfb4   : > { %3942 = vmatpush1.bf16.xpose.msra.mxu0 %v3921_v26  ;;  %3982 = vmatpush1.bf16.xpose.msra.mxu1 %v3921_v26 }
 0xfb5   : > { %4355 = vmatprep.subr.bf16.mxu0 %v4022_v43 }
 0xfbb   : > { %3960 = vmatmul.mubr.bf16.vlgmr.msra.gmra.mrb[172].mxu0 %v3923_v40  ;;  %4000 = vmatmul.mubr.bf16.vlgmr.msra.gmra.mrb[160].mxu1 %v5082_v57 }
 0xfbc   : > { %4356 = vmatpush3.bf16.msra.mxu0 %v4022_v43  ;;  %4359 = vmatprep.mubr.msk.bf16.mxu0 %vm501_vm0, %v4455_v24 }
0x108e   : > { %v3961_v3 = vpop.f32.mrb[172].mxu0  ;;  %v4001_v11 = vpop.f32.mrb[160].mxu1 }
0x108f   : > { %4983 = vrcp.f32 %v4001_v11  ;;  %v3963_v38 = vpop.f32.mrb[173].mxu0  ;;  %v4003_v15 = vpop.f32.mrb[161].mxu1 }
0x1090   : > { %v3964_v48 = vpop.f32.mrb[174].mxu0  ;;  %v4004_v28 = vpop.f32.mrb[162].mxu1 }
0x1091   : > { %v3965_v42 = vpop.f32.mrb[175].mxu0  ;;  %v4005_v4 = vpop.f32.mrb[163].mxu1 }
0x1099   : > { %v4984_v57 = vpop.eup %4983 }
0x109a   : > { %v4011_v41 = vrot.slane %v4984_v57, %v5492_v62 }
0x109c   : > { %v4012_v17 = vmul.f32 %v4011_v41, %v3961_v3 }
0x109e   : > { %4013 = vst [vmem:[#allocation2 + $0x1c] sm:$0xf] %v4012_v17 }
0x10a5   : > { %v4021_v9 = vld [vmem:[#allocation2 + $0x18] sm:$0xff] }
0x10a6   : > { %v4023_v39 = vpack.c.bf16 %v4021_v9, %v4020_v27 }
0x10a8   : > { %4357 = vmatprep.subr.bf16.mxu0 %v4023_v39 }
0x10a9   : > { %4358 = vmatpush3.bf16.msra.mxu0 %v4023_v39 }
0x10ac   : > { %4360 = vmatmul.mubr.msk.bf16.vlgmr.msra.gmra.mrb[176].mxu0 %vm501_vm0, %v4456_v54 }
0x117f   : > { %v4361_v62 = vpop.f32.mrb[176].mxu0 }
0x1180   : > { %v4107_v31 = vadd.f32 %v4361_v62, %v4041_v18  ;;  %v4098_v21 = vpop.f32.mrb[177].mxu0 }
0x1181   : > { %v4099_v32 = vadd.f32 %v4098_v21, %v4031_v58  ;;  %v4362_v8 = vpop.f32.mrb[178].mxu0 }
0x1182   : > { %4115 = vst [vmem:[%s389_s25 + $0x10] sm:$0xff] %v4107_v31  ;;  %v4110_v30 = vadd.f32 %v4362_v8, %v4046_v29  ;;  %v4101_v0 = vpop.f32.mrb[179].mxu0 }
0x1183   : > { %4113 = vst [vmem:[%s389_s25] sm:$0xff] %v4099_v32  ;;  %v4102_v52 = vadd.f32 %v4101_v0, %v4036_v2 }
0x1184   : > { %4116 = vst [vmem:[%s389_s25 + $0x18] sm:$0xff] %v4110_v30 }
0x1185   : > { %4114 = vst [vmem:[%s389_s25 + $0x8] sm:$0xff] %v4102_v52 }
0x1186   : > { %4998 = shalt.err (!%p4995_p10)
}
0x1187   : > { %s4999_s18 = scalar_lea.hbm %s6616_s14, 512  ;;  %s5003_s13 = scalar_lea.hbm %s6678_s8, 2048 }
0x1188   : > { %p5000_p11 = scmp.ne.s32.totalorder %s6616_s14, %s4999_s18  ;;  %p5004_p0 = scmp.lt.u32.totalorder %s6616_s14, %s6678_s8 }
0x1189   : > { %p5005_p1 = scmp.lt.u32.totalorder %s5003_s13, %s4999_s18  ;;  %p5007_p3 = scmp.lt.u32.totalorder %s4999_s18, %s6616_s14 }
0x118a   : > { %p5001_p12 = pnand %p5000_p11, %p5192_p8 }
0x118b   : > { %p5006_p2 = por %p5005_p1, %p5004_p0 }
0x118c   : > { %p5002_p13 = pneg %p5001_p12 }
0x118d   : > { %p5008_p4 = por %p5007_p3, %p5006_p2 }
0x118f   : > { %p5009_p5 = pnand %p5008_p4, %p5002_p13 }
0x1191   : > { %5012 = shalt.err (!%p5009_p5)
}
0x1192   : > { %s5084_s21 = smov 128   ;;  %s5085_s22 = smov 256  }
0x1193   : > { %s5086_s1 = smov 8  }
0x1194   : > { %4363 = dma.vmem_to_hbm [thread:$0]  (%p5192_p8), %s6611_s26, 512, %s6616_s14, %s4118_s17, %s5084_s21, %s5085_s22, %s5086_s1  }
0x1195 PF: > { %p4369_p6 = scmp.ge.s32.totalorder %s5079_s12, 2  ;;  %s4147_s16 = sand.u32 1, %s5051_s27  }
0x1196   : > { %s4148_s18 = scalar_lea.sflag [#allocation5], %s4147_s16 }
0x1197   : > { %p4366_p7 = pnand %p4369_p6, %p5196_p9 }
0x1199   : > { %5046 = dma.done.wait (!%p4366_p7), %s4148_s18, 512  }
0x119a   : > { %5048 = vsyncadd (!%p4366_p7), %s4148_s18, 4294966784  ;;  %s21_s12 = sadd.s32 1, %s5079_s12   ;;  %s6688_s19 = sld [smem:[#allocation7_spill]] }
0x119b   : > { %p18_p10 = scmp.ge.s32.totalorder %s21_s12, 6   ;;  %s6689_s15 = sld [smem:[#allocation8_spill]] }
0x119c   : > { %s6690_s27 = smov %s5055_s28  ;;  %s6691_s28 = smov %s5059_s29 }
0x119d   : > { %s6692_s29 = smov %s5204_s24  ;;  %s6693_s30 = smov %s5071_s10 }
0x119e   : > { %s6694_s9 = smov %s5075_s11  ;;  %20 = sbr.rel (!%p18_p10) target bundleno = 7 (0x7), region = 136 }
0x11a0   : > { %s6695_s10 = smov %s6688_s19 }
0x11a1   : > { %s6696_s11 = smov %s6689_s15 }
0x11a5   :  { %4153 = vsyncpa [#allocation5], 1 }
0x11a6   :  { %4155 = vsyncpa [#allocation5 + $0x1], 1 }

</bundles_post_ra>
